<compile_context>
chip_gen: v5e
topology: v5e:2x2
jax: 0.10.0
libtpu: 0.0.40
codegen_flags: <defaults>
</compile_context>

<pallas_src>
import functools

import jax
import jax.numpy as jnp
from jax.experimental import pallas as pl
from jax.experimental.pallas import tpu as pltpu


# ---------------------------------------------------------------------------
# Pass 1: fused Q/K/V projection + RoPE (per batch, per KV group, per seq tile)
# ---------------------------------------------------------------------------
def _proj_rope_kernel(x_ref, cosq_ref, sinq_ref, cosk_ref, sink_ref, wq_ref, wkv_ref,
                      q_out_ref, kt_out_ref, v_out_ref, *,
                      rep, head_dim, compute_dtype):
    half = head_dim // 2
    x = x_ref[0]                                  # (ts, H) bf16

    # Fused K|V projection for this KV head: single N=2*head_dim matmul on the MXU.
    kv = jnp.dot(x, wkv_ref[...], preferred_element_type=jnp.float32)   # (ts, 2d) f32
    k = kv[:, :head_dim]
    v = kv[:, head_dim:]

    # RoPE on K (rotate_half sign already folded into sin_k on the host).
    cos_k = cosk_ref[...]
    sin_k = sink_ref[...]
    k_rot = k * cos_k + pltpu.roll(k, half, 1) * sin_k                   # (ts, d) f32

    # Store K pre-transposed so pass 2's QK^T is a plain (tq,d)@(d,tk) dot.
    kt_out_ref[0] = jnp.transpose(k_rot).astype(compute_dtype)          # (d, ts)
    v_out_ref[0] = v.astype(compute_dtype)                              # (ts, d)

    # Q projection for the rep query heads of this group; attention scale is folded
    # into cos_q/sin_q on the host, so no extra scaling multiply here.
    q_all = jnp.dot(x, wq_ref[...], preferred_element_type=jnp.float32)  # (ts, rep*d) f32
    cos_q = cosq_ref[...]
    sin_q = sinq_ref[...]
    for r in range(rep):
        lo = r * head_dim
        hi = (r + 1) * head_dim
        qh = q_all[:, lo:hi]
        q_out_ref[0, :, lo:hi] = (qh * cos_q
                                  + pltpu.roll(qh, half, 1) * sin_q).astype(compute_dtype)


# ---------------------------------------------------------------------------
# Pass 2: flash attention (online softmax over KV tiles) + per-q-tile o_proj
# ---------------------------------------------------------------------------
def _flash_oproj_kernel(q_ref, kt_ref, v_ref, wo_ref, o_ref,
                        acc_ref, ctx_ref, m_ref, l_ref, *,
                        rep, head_dim, compute_dtype):
    g = pl.program_id(2)
    kv = pl.program_id(3)
    n_g = pl.num_programs(2)
    n_kv = pl.num_programs(3)

    @pl.when((g == 0) & (kv == 0))
    def _init_out_acc():
        acc_ref[...] = jnp.zeros_like(acc_ref)

    @pl.when(kv == 0)
    def _init_flash():
        m_ref[...] = jnp.full_like(m_ref, -jnp.inf)
        l_ref[...] = jnp.zeros_like(l_ref)
        ctx_ref[...] = jnp.zeros_like(ctx_ref)

    kT = kt_ref[0]                                 # (d, tk) bf16, pre-transposed in pass 1
    v = v_ref[0]                                   # (tk, d) bf16

    # rep is small and static -> fully unrolled (LLO scheduler sees the whole body).
    for r in range(rep):
        lo = r * head_dim
        hi = (r + 1) * head_dim
        q_r = q_ref[0, :, lo:hi]                   # (tq, d) bf16, already RoPE'd + scaled
        s = jnp.dot(q_r, kT, preferred_element_type=jnp.float32)        # (tq, tk) f32

        m_prev = m_ref[r]                          # (tq, 1)
        m_new = jnp.maximum(m_prev, jnp.max(s, axis=-1, keepdims=True))
        alpha = jnp.exp(m_prev - m_new)
        p = jnp.exp(s - m_new)
        l_ref[r] = alpha * l_ref[r] + jnp.sum(p, axis=-1, keepdims=True)
        ctx_ref[:, lo:hi] = alpha * ctx_ref[:, lo:hi] + jnp.dot(
            p.astype(compute_dtype), v, preferred_element_type=jnp.float32)
        m_ref[r] = m_new

    @pl.when(kv == n_kv - 1)
    def _finish_group():
        # Normalize each head by its softmax denominator, then one wide o_proj matmul
        # (contraction dim = rep*head_dim) accumulated across groups into acc_ref.
        for r in range(rep):
            lo = r * head_dim
            hi = (r + 1) * head_dim
            inv = pl.reciprocal(l_ref[r], approx=True)
            ctx_ref[:, lo:hi] = ctx_ref[:, lo:hi] * inv
        acc_ref[...] += jnp.dot(ctx_ref[...].astype(compute_dtype), wo_ref[...],
                                preferred_element_type=jnp.float32)

    @pl.when((g == n_g - 1) & (kv == n_kv - 1))
    def _write_out():
        o_ref[0] = acc_ref[...].astype(o_ref.dtype)

    # TODO(synk): attention dropout omitted (inference semantics / attention_dropout == 0.0)


def _pick_tile(n, candidates):
    for c in candidates:
        if n % c == 0:
            return c
    return n


def llama_attention(x, cos, sin, wq, wk, wv, wo, num_heads, num_kv_heads,
                    *, compute_dtype=jnp.bfloat16):
    B, S, H = x.shape
    assert H % num_heads == 0 and num_heads % num_kv_heads == 0
    head_dim = H // num_heads
    rep = num_heads // num_kv_heads
    G = num_kv_heads
    kv_dim = G * head_dim
    group_dim = rep * head_dim
    scaling = head_dim ** -0.5

    # Lane-alignment guards (head_dim maps to the 128-lane axis; S tiles want >=128 rows).
    assert head_dim % 128 == 0, "this kernel requires head_dim to be a multiple of 128"
    assert S % 128 == 0, "this kernel requires seq_len to be a multiple of 128"

    ts = _pick_tile(S, (256, 128))        # pass-1 sequence tile
    tq = _pick_tile(S, (256, 128))        # pass-2 query tile
    tk = _pick_tile(S, (512, 256, 128))   # pass-2 key/value tile

    # ---- host-side RoPE coefficient prep ----
    # rotate_half(t) == roll(t, d/2) * sign, with sign = -1 on the first half lanes.
    # Fold the sign into sin, and the attention scale into the q coefficients.
    sign = jnp.where(jnp.arange(head_dim) < head_dim // 2, -1.0, 1.0).astype(jnp.float32)
    cos_f = cos.astype(jnp.float32)
    sin_signed = sin.astype(jnp.float32) * sign[None, :]
    cos_q = cos_f * scaling
    sin_q = sin_signed * scaling
    cos_k = cos_f
    sin_k = sin_signed

    # Fuse Wk|Wv per KV head: (H, G*2d), group g occupies columns [g*2d, (g+1)*2d).
    wkv = jnp.concatenate(
        [wk.reshape(H, G, head_dim), wv.reshape(H, G, head_dim)], axis=-1
    ).reshape(H, G * 2 * head_dim).astype(compute_dtype)

    x_c = x.astype(compute_dtype)
    wq_c = wq.astype(compute_dtype)
    wo_c = wo.astype(compute_dtype)

    # ---------------- pass 1: projections + RoPE ----------------
    q_rot, k_t, v_p = pl.pallas_call(
        functools.partial(_proj_rope_kernel, rep=rep, head_dim=head_dim,
                          compute_dtype=compute_dtype),
        out_shape=(
            jax.ShapeDtypeStruct((B, S, H), compute_dtype),        # q, RoPE'd + pre-scaled
            jax.ShapeDtypeStruct((B, kv_dim, S), compute_dtype),   # K^T, RoPE'd
            jax.ShapeDtypeStruct((B, S, kv_dim), compute_dtype),   # V
        ),
        grid_spec=pltpu.PrefetchScalarGridSpec(
            num_scalar_prefetch=0,
            grid=(B, G, S // ts),
            in_specs=[
                pl.BlockSpec((1, ts, H), lambda b, g, st: (b, st, 0)),          # x
                pl.BlockSpec((ts, head_dim), lambda b, g, st: (st, 0)),         # cos_q
                pl.BlockSpec((ts, head_dim), lambda b, g, st: (st, 0)),         # sin_q
                pl.BlockSpec((ts, head_dim), lambda b, g, st: (st, 0)),         # cos_k
                pl.BlockSpec((ts, head_dim), lambda b, g, st: (st, 0)),         # sin_k
                pl.BlockSpec((H, group_dim), lambda b, g, st: (0, g)),          # Wq cols (group)
                pl.BlockSpec((H, 2 * head_dim), lambda b, g, st: (0, g)),       # Wk|Wv cols (group)
            ],
            out_specs=(
                pl.BlockSpec((1, ts, group_dim), lambda b, g, st: (b, st, g)),
                pl.BlockSpec((1, head_dim, ts), lambda b, g, st: (b, g, st)),
                pl.BlockSpec((1, ts, head_dim), lambda b, g, st: (b, st, g)),
            ),
        ),
        compiler_params=pltpu.CompilerParams(
            dimension_semantics=("parallel", "parallel", "parallel"),
            vmem_limit_bytes=64 * 1024 * 1024),
    )(x_c, cos_q, sin_q, cos_k, sin_k, wq_c, wkv)

    # ---------------- pass 2: flash attention + o_proj ----------------
    out = pl.pallas_call(
        functools.partial(_flash_oproj_kernel, rep=rep, head_dim=head_dim,
                          compute_dtype=compute_dtype),
        out_shape=jax.ShapeDtypeStruct((B, S, H), compute_dtype),
        grid_spec=pltpu.PrefetchScalarGridSpec(
            num_scalar_prefetch=0,
            grid=(B, S // tq, G, S // tk),
            in_specs=[
                pl.BlockSpec((1, tq, group_dim), lambda b, qt, g, kt: (b, qt, g)),   # q tile
                pl.BlockSpec((1, head_dim, tk), lambda b, qt, g, kt: (b, g, kt)),    # K^T tile
                pl.BlockSpec((1, tk, head_dim), lambda b, qt, g, kt: (b, kt, g)),    # V tile
                pl.BlockSpec((group_dim, H), lambda b, qt, g, kt: (g, 0)),           # Wo rows
            ],
            out_specs=pl.BlockSpec((1, tq, H), lambda b, qt, g, kt: (b, qt, 0)),
            scratch_shapes=[
                pltpu.VMEM((tq, H), jnp.float32),          # o_proj accumulator (per q-tile)
                pltpu.VMEM((tq, group_dim), jnp.float32),  # per-group flash context accumulator
                pltpu.VMEM((rep, tq, 1), jnp.float32),     # running max per head
                pltpu.VMEM((rep, tq, 1), jnp.float32),     # running denom per head
            ],
        ),
        compiler_params=pltpu.CompilerParams(
            dimension_semantics=("parallel", "parallel", "arbitrary", "arbitrary"),
            vmem_limit_bytes=64 * 1024 * 1024),
    )(q_rot, k_t, v_p, wo_c)

    return out


def reference(x, cos, sin, wq, wk, wv, wo, num_heads, num_kv_heads):
    """Pure-JAX (f32) mirror of the PyTorch forward, cos/sin of shape (S, head_dim)."""
    B, S, H = x.shape
    d = H // num_heads
    rep = num_heads // num_kv_heads

    q = (x @ wq).reshape(B, S, num_heads, d)
    k = (x @ wk).reshape(B, S, num_kv_heads, d)
    v = (x @ wv).reshape(B, S, num_kv_heads, d)

    def rot(t):
        return jnp.concatenate([-t[..., d // 2:], t[..., :d // 2]], axis=-1)

    cos_e = cos[None, :, None, :]
    sin_e = sin[None, :, None, :]
    q = q * cos_e + rot(q) * sin_e
    k = k * cos_e + rot(k) * sin_e

    q = q.transpose(0, 2, 1, 3)
    k = k.transpose(0, 2, 1, 3)
    v = v.transpose(0, 2, 1, 3)
    k = jnp.repeat(k, rep, axis=1)
    v = jnp.repeat(v, rep, axis=1)

    scores = jnp.einsum("bhqd,bhkd->bhqk", q, k) * (d ** -0.5)
    p = jax.nn.softmax(scores, axis=-1)
    attn = jnp.einsum("bhqk,bhkd->bhqd", p, v)
    attn = attn.transpose(0, 2, 1, 3).reshape(B, S, H)
    return attn @ wo


if __name__ == "__main__":
    # Small but tiling-exercising shapes: S=1024 gives multiple seq/q/kv tiles,
    # head_dim=128 keeps every per-head block lane-aligned.
    B, S = 2, 1024
    num_heads, num_kv_heads = 4, 2
    head_dim = 128
    H = num_heads * head_dim                  # 512
    kv_dim = num_kv_heads * head_dim          # 256

    def bf16_grid(a):
        # quantize params/activations onto the bf16 grid so the bf16 kernel and the f32
        # reference see numerically identical inputs (remaining diff = in-kernel bf16 rounding).
        return a.astype(jnp.bfloat16).astype(jnp.float32)

    key = jax.random.PRNGKey(0)
    kx, kq, kk, kv_, ko = jax.random.split(key, 5)
    x = bf16_grid(jax.random.normal(kx, (B, S, H), jnp.float32))
    wq = bf16_grid(jax.random.normal(kq, (H, H), jnp.float32) * 0.05)
    wk = bf16_grid(jax.random.normal(kk, (H, kv_dim), jnp.float32) * 0.05)
    wv = bf16_grid(jax.random.normal(kv_, (H, kv_dim), jnp.float32) * 0.05)
    wo = bf16_grid(jax.random.normal(ko, (H, H), jnp.float32) * 0.05)

    # rotary embeddings shared across the batch (LlamaRotaryEmbedding): shape (S, head_dim)
    pos = jnp.arange(S, dtype=jnp.float32)
    inv_freq = 1.0 / (10000.0 ** (jnp.arange(0, head_dim, 2, dtype=jnp.float32) / head_dim))
    freqs = jnp.einsum("s,f->sf", pos, inv_freq)
    emb = jnp.concatenate([freqs, freqs], axis=-1)        # (S, head_dim)
    cos = jnp.cos(emb)
    sin = jnp.sin(emb)

    out = llama_attention(x, cos, sin, wq, wk, wv, wo, num_heads, num_kv_heads)
    out = jax.block_until_ready(out).astype(jnp.float32)

    ref = reference(x, cos, sin, wq, wk, wv, wo, num_heads, num_kv_heads)
    max_err = float(jnp.max(jnp.abs(out - ref)))
    assert jnp.allclose(out, ref, atol=5e-2, rtol=5e-2), f"max abs err = {max_err}"
    print("KERNEL_OK")
</pallas_src>

<mosaic_0001>
module attributes {stable_mosaic.version = 11 : i64} {
  func.func @_proj_rope_kernel(%arg0: i32, %arg1: i32, %arg2: i32, %arg3: memref<1x256x512xbf16, #tpu.memory_space<vmem>>, %arg4: memref<256x128xf32, #tpu.memory_space<vmem>>, %arg5: memref<256x128xf32, #tpu.memory_space<vmem>>, %arg6: memref<256x128xf32, #tpu.memory_space<vmem>>, %arg7: memref<256x128xf32, #tpu.memory_space<vmem>>, %arg8: memref<512x256xbf16, #tpu.memory_space<vmem>>, %arg9: memref<512x256xbf16, #tpu.memory_space<vmem>>, %arg10: memref<1x256x256xbf16, #tpu.memory_space<vmem>>, %arg11: memref<1x128x256xbf16, #tpu.memory_space<vmem>>, %arg12: memref<1x256x128xbf16, #tpu.memory_space<vmem>>) attributes {dimension_semantics = [#tpu.dimension_semantics<parallel>, #tpu.dimension_semantics<parallel>, #tpu.dimension_semantics<parallel>], iteration_bounds = array<i64: 2, 2, 4>, scalar_prefetch = 0 : i64, scratch_operands = 0 : i64, tpu.core_type = #tpu.core_type<tc>, window_params = [{transform_indices = @transform_0, window_bounds = array<i64: 1, 256, 512>}, {transform_indices = @transform_1, window_bounds = array<i64: 256, 128>}, {transform_indices = @transform_2, window_bounds = array<i64: 256, 128>}, {transform_indices = @transform_3, window_bounds = array<i64: 256, 128>}, {transform_indices = @transform_4, window_bounds = array<i64: 256, 128>}, {transform_indices = @transform_5, window_bounds = array<i64: 512, 256>}, {transform_indices = @transform_6, window_bounds = array<i64: 512, 256>}, {transform_indices = @transform_7, window_bounds = array<i64: 1, 256, 256>}, {transform_indices = @transform_8, window_bounds = array<i64: 1, 128, 256>}, {transform_indices = @transform_9, window_bounds = array<i64: 1, 256, 128>}]} {
    %c0 = arith.constant 0 : index
    %c0_0 = arith.constant 0 : index
    %c0_1 = arith.constant 0 : index
    %0 = vector.load %arg3[%c0, %c0_0, %c0_1] : memref<1x256x512xbf16, #tpu.memory_space<vmem>>, vector<1x256x512xbf16>
    %1 = vector.shape_cast %0 : vector<1x256x512xbf16> to vector<256x512xbf16>
    %c0_2 = arith.constant 0 : index
    %c0_3 = arith.constant 0 : index
    %2 = vector.load %arg9[%c0_2, %c0_3] : memref<512x256xbf16, #tpu.memory_space<vmem>>, vector<512x256xbf16>
    %cst = arith.constant dense<0.000000e+00> : vector<256x256xf32>
    %3 = tpu.matmul %1, %2, %cst {dimension_numbers = #tpu.dot_dimension_numbers<[1], [0], [0], [1], [0, 0, 1, 1], [], []>} : vector<256x512xbf16>, vector<512x256xbf16>, vector<256x256xf32> -> vector<256x256xf32>
    %4 = vector.extract_strided_slice %3 {offsets = [0, 0], sizes = [256, 128], strides = [1, 1]} : vector<256x256xf32> to vector<256x128xf32>
    %5 = vector.extract_strided_slice %3 {offsets = [0, 128], sizes = [256, 128], strides = [1, 1]} : vector<256x256xf32> to vector<256x128xf32>
    %c0_4 = arith.constant 0 : index
    %c0_5 = arith.constant 0 : index
    %6 = vector.load %arg6[%c0_4, %c0_5] : memref<256x128xf32, #tpu.memory_space<vmem>>, vector<256x128xf32>
    %c0_6 = arith.constant 0 : index
    %c0_7 = arith.constant 0 : index
    %7 = vector.load %arg7[%c0_6, %c0_7] : memref<256x128xf32, #tpu.memory_space<vmem>>, vector<256x128xf32>
    %8 = arith.mulf %4, %6 : vector<256x128xf32>
    %c64_i32 = arith.constant 64 : i32
    %9 = tpu.dynamic_rotate %4 by %c64_i32 dim 1 : vector<256x128xf32>, i32 -> vector<256x128xf32>
    %10 = arith.mulf %9, %7 : vector<256x128xf32>
    %11 = arith.addf %8, %10 : vector<256x128xf32>
    %12 = tpu.transpose %11, [1, 0] : vector<256x128xf32> -> vector<128x256xf32>
    %13 = arith.truncf %12 : vector<128x256xf32> to vector<128x256xbf16>
    %c0_8 = arith.constant 0 : index
    %c0_9 = arith.constant 0 : index
    %c0_10 = arith.constant 0 : index
    %14 = vector.load %arg11[%c0_8, %c0_9, %c0_10] : memref<1x128x256xbf16, #tpu.memory_space<vmem>>, vector<1x128x256xbf16>
    %15 = vector.shape_cast %14 : vector<1x128x256xbf16> to vector<128x256xbf16>
    %16 = vector.shape_cast %13 : vector<128x256xbf16> to vector<1x128x256xbf16>
    tpu.vector_store %arg11[%c0_8, %c0_9, %c0_10], %16 {strides = array<i32>} : memref<1x128x256xbf16, #tpu.memory_space<vmem>>, vector<1x128x256xbf16>,
    %17 = arith.truncf %5 : vector<256x128xf32> to vector<256x128xbf16>
    %c0_11 = arith.constant 0 : index
    %c0_12 = arith.constant 0 : index
    %c0_13 = arith.constant 0 : index
    %18 = vector.load %arg12[%c0_11, %c0_12, %c0_13] : memref<1x256x128xbf16, #tpu.memory_space<vmem>>, vector<1x256x128xbf16>
    %19 = vector.shape_cast %18 : vector<1x256x128xbf16> to vector<256x128xbf16>
    %20 = vector.shape_cast %17 : vector<256x128xbf16> to vector<1x256x128xbf16>
    tpu.vector_store %arg12[%c0_11, %c0_12, %c0_13], %20 {strides = array<i32>} : memref<1x256x128xbf16, #tpu.memory_space<vmem>>, vector<1x256x128xbf16>,
    %c0_14 = arith.constant 0 : index
    %c0_15 = arith.constant 0 : index
    %21 = vector.load %arg8[%c0_14, %c0_15] : memref<512x256xbf16, #tpu.memory_space<vmem>>, vector<512x256xbf16>
    %cst_16 = arith.constant dense<0.000000e+00> : vector<256x256xf32>
    %22 = tpu.matmul %1, %21, %cst_16 {dimension_numbers = #tpu.dot_dimension_numbers<[1], [0], [0], [1], [0, 0, 1, 1], [], []>} : vector<256x512xbf16>, vector<512x256xbf16>, vector<256x256xf32> -> vector<256x256xf32>
    %c0_17 = arith.constant 0 : index
    %c0_18 = arith.constant 0 : index
    %23 = vector.load %arg4[%c0_17, %c0_18] : memref<256x128xf32, #tpu.memory_space<vmem>>, vector<256x128xf32>
    %c0_19 = arith.constant 0 : index
    %c0_20 = arith.constant 0 : index
    %24 = vector.load %arg5[%c0_19, %c0_20] : memref<256x128xf32, #tpu.memory_space<vmem>>, vector<256x128xf32>
    %25 = vector.extract_strided_slice %22 {offsets = [0, 0], sizes = [256, 128], strides = [1, 1]} : vector<256x256xf32> to vector<256x128xf32>
    %26 = arith.mulf %25, %23 : vector<256x128xf32>
    %c64_i32_21 = arith.constant 64 : i32
    %27 = tpu.dynamic_rotate %25 by %c64_i32_21 dim 1 : vector<256x128xf32>, i32 -> vector<256x128xf32>
    %28 = arith.mulf %27, %24 : vector<256x128xf32>
    %29 = arith.addf %26, %28 : vector<256x128xf32>
    %30 = arith.truncf %29 : vector<256x128xf32> to vector<256x128xbf16>
    %c0_22 = arith.constant 0 : index
    %c0_23 = arith.constant 0 : index
    %c0_24 = arith.constant 0 : index
    %31 = vector.load %arg10[%c0_22, %c0_23, %c0_24] : memref<1x256x256xbf16, #tpu.memory_space<vmem>>, vector<1x256x128xbf16>
    %32 = vector.shape_cast %31 : vector<1x256x128xbf16> to vector<256x128xbf16>
    %33 = vector.shape_cast %30 : vector<256x128xbf16> to vector<1x256x128xbf16>
    tpu.vector_store %arg10[%c0_22, %c0_23, %c0_24], %33 {strides = array<i32>} : memref<1x256x256xbf16, #tpu.memory_space<vmem>>, vector<1x256x128xbf16>,
    %34 = vector.extract_strided_slice %22 {offsets = [0, 128], sizes = [256, 128], strides = [1, 1]} : vector<256x256xf32> to vector<256x128xf32>
    %35 = arith.mulf %34, %23 : vector<256x128xf32>
    %c64_i32_25 = arith.constant 64 : i32
    %36 = tpu.dynamic_rotate %34 by %c64_i32_25 dim 1 : vector<256x128xf32>, i32 -> vector<256x128xf32>
    %37 = arith.mulf %36, %24 : vector<256x128xf32>
    %38 = arith.addf %35, %37 : vector<256x128xf32>
    %39 = arith.truncf %38 : vector<256x128xf32> to vector<256x128xbf16>
    %c0_26 = arith.constant 0 : index
    %c0_27 = arith.constant 0 : index
    %c128 = arith.constant 128 : index
    %40 = vector.load %arg10[%c0_26, %c0_27, %c128] : memref<1x256x256xbf16, #tpu.memory_space<vmem>>, vector<1x256x128xbf16>
    %41 = vector.shape_cast %40 : vector<1x256x128xbf16> to vector<256x128xbf16>
    %42 = vector.shape_cast %39 : vector<256x128xbf16> to vector<1x256x128xbf16>
    tpu.vector_store %arg10[%c0_26, %c0_27, %c128], %42 {strides = array<i32>} : memref<1x256x256xbf16, #tpu.memory_space<vmem>>, vector<1x256x128xbf16>,
    return
  }
  func.func @transform_0(%arg0: i32, %arg1: i32, %arg2: i32) -> (i32, i32, i32) {
    %c0_i32 = arith.constant 0 : i32
    %c0_i32_0 = arith.constant 0 : i32
    return %arg0, %arg2, %c0_i32 : i32, i32, i32
  }
  func.func @transform_1(%arg0: i32, %arg1: i32, %arg2: i32) -> (i32, i32) {
    %c0_i32 = arith.constant 0 : i32
    %c0_i32_0 = arith.constant 0 : i32
    return %arg2, %c0_i32 : i32, i32
  }
  func.func @transform_2(%arg0: i32, %arg1: i32, %arg2: i32) -> (i32, i32) {
    %c0_i32 = arith.constant 0 : i32
    %c0_i32_0 = arith.constant 0 : i32
    return %arg2, %c0_i32 : i32, i32
  }
  func.func @transform_3(%arg0: i32, %arg1: i32, %arg2: i32) -> (i32, i32) {
    %c0_i32 = arith.constant 0 : i32
    %c0_i32_0 = arith.constant 0 : i32
    return %arg2, %c0_i32 : i32, i32
  }
  func.func @transform_4(%arg0: i32, %arg1: i32, %arg2: i32) -> (i32, i32) {
    %c0_i32 = arith.constant 0 : i32
    %c0_i32_0 = arith.constant 0 : i32
    return %arg2, %c0_i32 : i32, i32
  }
  func.func @transform_5(%arg0: i32, %arg1: i32, %arg2: i32) -> (i32, i32) {
    %c0_i32 = arith.constant 0 : i32
    %c0_i32_0 = arith.constant 0 : i32
    return %c0_i32, %arg1 : i32, i32
  }
  func.func @transform_6(%arg0: i32, %arg1: i32, %arg2: i32) -> (i32, i32) {
    %c0_i32 = arith.constant 0 : i32
    %c0_i32_0 = arith.constant 0 : i32
    return %c0_i32, %arg1 : i32, i32
  }
  func.func @transform_7(%arg0: i32, %arg1: i32, %arg2: i32) -> (i32, i32, i32) {
    %c0_i32 = arith.constant 0 : i32
    return %arg0, %arg2, %arg1 : i32, i32, i32
  }
  func.func @transform_8(%arg0: i32, %arg1: i32, %arg2: i32) -> (i32, i32, i32) {
    %c0_i32 = arith.constant 0 : i32
    return %arg0, %arg1, %arg2 : i32, i32, i32
  }
  func.func @transform_9(%arg0: i32, %arg1: i32, %arg2: i32) -> (i32, i32, i32) {
    %c0_i32 = arith.constant 0 : i32
    return %arg0, %arg2, %arg1 : i32, i32, i32
  }
}

</mosaic_0001>

<bundles_post_ra>
// kernel: tpu_custom_call.1
= control target key start
LH: loop header
LB: loop body
LE: loop exit
PB: predicated region body
PF: predicated region fallthrough
CT: control target
= control target key end

     0   :  { %s8889_s0 = inlined_call_operand.hbm [shape: bf16[2,1024,512], index: 0, kind: input, shape index: {}]   ;;  %s8890_s1 = inlined_call_operand.hbm [shape: f32[1024,128], index: 1, kind: input, shape index: {}]   ;;  %s8891_s2 = inlined_call_operand.hbm [shape: f32[1024,128], index: 2, kind: input, shape index: {}]   ;;  %s8892_s3 = inlined_call_operand.hbm [shape: f32[1024,128], index: 3, kind: input, shape index: {}]   ;;  %s8893_s4 = inlined_call_operand.hbm [shape: f32[1024,128], index: 4, kind: input, shape index: {}]   ;;  %s8894_s5 = inlined_call_operand.hbm [shape: bf16[512,512], index: 5, kind: input, shape index: {}]   ;;  %s8895_s6 = inlined_call_operand.hbm [shape: bf16[512,512], index: 6, kind: input, shape index: {}]   ;;  %s8896_s7 = inlined_call_operand.hbm [shape: bf16[2,1024,512], index: 7, kind: output, shape index: {0}]   ;;  %s8897_s8 = inlined_call_operand.hbm [shape: bf16[2,256,1024], index: 8, kind: output, shape index: {1}]   ;;  %s8898_s9 = inlined_call_operand.hbm [shape: bf16[2,1024,256], index: 9, kind: output, shape index: {2}]  }
   0x1   :  { %9072 = sst [smem:[#allocation118_spill]] %s8889_s0 }
   0x2   :  { %9073 = sst [smem:[#allocation119_spill]] %s8890_s1 }
   0x3   :  { %9074 = sst [smem:[#allocation120_spill]] %s8891_s2 }
   0x4   :  { %9075 = sst [smem:[#allocation121_spill]] %s8892_s3 }
   0x5   :  { %9076 = sst [smem:[#allocation122_spill]] %s8893_s4 }
   0x6   :  { %9077 = sst [smem:[#allocation123_spill]] %s8894_s5 }
   0x7   :  { %9078 = sst [smem:[#allocation124_spill]] %s8895_s6 }
   0x8   :  { %9079 = sst [smem:[#allocation125_spill]] %s8896_s7 }
   0x9   :  { %9080 = sst [smem:[#allocation126_spill]] %s8897_s8 }
   0xa   :  { %9081 = sst [smem:[#allocation127_spill]] %s8898_s9 }
   0xb   :  { %15 = vsyncpa [#allocation3], 0 }
   0xc   :  { %17 = vsyncpa [#allocation3 + $0x1], 0 }
   0xd   :  { %18 = vsyncpa [#allocation6], 0 }
   0xe   :  { %20 = vsyncpa [#allocation6 + $0x1], 0 }
   0xf   :  { %21 = vsyncpa [#allocation9], 0 }
  0x10   :  { %23 = vsyncpa [#allocation9 + $0x1], 0 }
  0x11   :  { %24 = vsyncpa [#allocation12], 0 }
  0x12   :  { %26 = vsyncpa [#allocation12 + $0x1], 0 }
  0x13   :  { %27 = vsyncpa [#allocation4], 0 }
  0x14   :  { %29 = vsyncpa [#allocation4 + $0x1], 0 }
  0x15   :  { %30 = vsyncpa [#allocation16], 0 }
  0x16   :  { %32 = vsyncpa [#allocation16 + $0x1], 0  ;;  %s6587_s30 = smov 0   ;;  %s6589_s10 = smov 0  }
  0x17   :  { %s6591_s11 = smov 0   ;;  %s6593_s12 = smov 0  }
  0x18   :  { %s6595_s13 = smov 0   ;;  %s6597_s14 = smov 0  }
  0x19   :  { %s6599_s15 = smov 0   ;;  %s6601_s16 = smov 0  }
  0x1a   :  { %s6603_s17 = smov 0   ;;  %s6605_s18 = smov 0  }
  0x1b   :  { %s6607_s19 = smov 0   ;;  %s6609_s20 = smov 0  }
  0x1c   :  { %s6611_s21 = smov 0   ;;  %s6613_s22 = smov 0  }
  0x1d   :  { %s6615_s23 = smov 0   ;;  %s6617_s24 = smov 0  }
  0x1e   :  { %s6619_s25 = smov 0   ;;  %s6621_s26 = smov 0  }
  0x1f   :  { %s6623_s27 = smov 0   ;;  %s6625_s28 = smov 0  }
  0x20   :  { %s6627_s29 = smov 0   ;;  %s6629_s7 = smov 0  }
  0x21 LB: > { %9082 = sst [smem:[#allocation25_spill]] %s6441_s30  ;;  %s6696_s9 = sadd.s32 4294967295, %s6525_s7   ;;  %s6525_s7 = sphi %s6629_s7, %s38_s7   ;;  %s6521_s29 = sphi %s6627_s29, %s9371_s29   ;;  %s6517_s28 = sphi %s6625_s28, %s9370_s28   ;;  %s6513_s27 = sphi %s6623_s27, %s9369_s27   ;;  %s6509_s26 = sphi %s6621_s26, %s9368_s26   ;;  %s6505_s25 = sphi %s6619_s25, %s9373_s25   ;;  %s6501_s24 = sphi %s6617_s24, %s9366_s24   ;;  %s6497_s23 = sphi %s6615_s23, %s9365_s23   ;;  %s6493_s22 = sphi %s6613_s22, %s9364_s22   ;;  %s6489_s21 = sphi %s6611_s21, %s9363_s21   ;;  %s6485_s20 = sphi %s6609_s20, %s9362_s20   ;;  %s6481_s19 = sphi %s6607_s19, %s9361_s19   ;;  %s6477_s18 = sphi %s6605_s18, %s9360_s18   ;;  %s6473_s17 = sphi %s6603_s17, %s9359_s17   ;;  %s6469_s16 = sphi %s6601_s16, %s9358_s16   ;;  %s6465_s15 = sphi %s6599_s15, %s9357_s15   ;;  %s6461_s14 = sphi %s6597_s14, %s9356_s14   ;;  %s6457_s13 = sphi %s6595_s13, %s9355_s13   ;;  %s6453_s12 = sphi %s6593_s12, %s9354_s12   ;;  %s6449_s11 = sphi %s6591_s11, %s9353_s11   ;;  %s6445_s10 = sphi %s6589_s10, %s9352_s10   ;;  %s6441_s30 = sphi %s6587_s30, %s9351_s30  }
  0x22   : > { %9083 = sst [smem:[#allocation26_spill]] %s6445_s10  ;;  %s50_s8 = sadd.s32 1, %s6513_s27 }
  0x23   : > { %9084 = sst [smem:[#allocation27_spill]] %s6449_s11  ;;  %p6699_p0 = scmp.ge.s32.totalorder %s50_s8, 4 }
  0x24   : > { %9085 = sst [smem:[#allocation28_spill]] %s6453_s12  ;;  %p74_p1 = scmp.eq.s32.totalorder %s6525_s7, 0 }
  0x25   : > { %9086 = sst [smem:[#allocation29_spill]] %s6457_s13  ;;  %p80_p2 = scmp.eq.s32.totalorder %s6696_s9, 0 }
  0x26   : > { %9087 = sst [smem:[#allocation30_spill]] %s6461_s14  ;;  %s9375_s8 = smov (%p6699_p0, %s50_s8), 0 }
  0x27   : > { %9088 = sst [smem:[#allocation31_spill]] %s6469_s16  ;;  %p99_p3 = scmp.ne.s32.totalorder %s6485_s20, %s6481_s19 }
  0x28   : > { %9089 = sst [smem:[#allocation32_spill]] %s6473_s17  ;;  %p105_p4 = scmp.ne.s32.totalorder %s6481_s19, %s6477_s18 }
  0x29   : > { %9090 = sst [smem:[#allocation33_spill]] %s6481_s19  ;;  %p8939_p5 = scmp.eq.s32.totalorder %s6696_s9, 15 }
  0x2a   : > { %9091 = sst [smem:[#allocation34_spill]] %s6485_s20  ;;  %p6721_p7 = por %p99_p3, %p74_p1 }
  0x2b   : > { %9092 = sst [smem:[#allocation35_spill]] %s6493_s22  ;;  %p6727_p8 = por %p105_p4, %p80_p2 }
  0x2c   : > { %9093 = sst [smem:[#allocation36_spill]] %s6497_s23  ;;  %p8929_p9 = scmp.lt.s32.totalorder %s6525_s7, 16 }
  0x2d   : > { %9094 = sst [smem:[#allocation37_spill]] %s6501_s24  ;;  %s6715_s24 = ssub.s32 %s6513_s27, %s9375_s8 }
  0x2e   : > { %9095 = sst [smem:[#allocation38_spill]] %s6505_s25  ;;  %s92_s25 = sadd.s32 1, %s6485_s20 }
  0x2f   : > { %9096 = sst [smem:[#allocation39_spill]] %s6509_s26  ;;  %p90_p6 = scmp.eq.s32.totalorder %s6715_s24, 0 }
  0x30   : > { %9097 = sst [smem:[#allocation40_spill]] %s6513_s27  ;;  %s376_s19 = sand.u32 1, %s6485_s20  }
  0x31   : > { %9098 = sst [smem:[#allocation41_spill]] %s6517_s28  ;;  %s6739_s0 = sshll.u32 %s376_s19, 8 }
  0x32   : > { %9099 = sst [smem:[#allocation42_spill]] %s6521_s29  ;;  %s6742_s30 = sshll.u32 %s6513_s27, 8 }
  0x33   : > { %9101 = sst [smem:[#allocation43_spill]] %s9375_s8  ;;  %s6736_s8 = sand.u32 1, %s6525_s7  }
  0x34   : > { %9102 = sst [smem:[#allocation44_spill]] %s6715_s24  ;;  %p6753_p10 = pnand %p8929_p9, %p6721_p7 }
  0x35   : > { %s9104_s2 = scalar_select %p6727_p8, 1, 0 }
  0x36   : > { %s6732_s18 = scalar_select %p90_p6, %s6485_s20, %s92_s25  }
  0x37   : > { %9105 = sst [smem:[#allocation45_spill]] %s9104_s2  ;;  %p4534_p11 = scmp.ge.s32.totalorder %s6525_s7, 1 }
  0x38   : > { %9106 = sst [smem:[#allocation46_spill]] %s6732_s18  ;;  %s378_s18 = scalar_lea.vmem [#allocation5], %s6739_s0 }
  0x39   : > { %s9107_s1 = sld [smem:[#allocation119_spill]]  ;;  %s386_s2 = sshll.u32 %s378_s18, 4  ;;  %s387_s2 = int_to_ptr.vmem [resolvable:$true] %s386_s2 }
  0x3a   : > { %p504_p12 = scmp.lt.s32.totalorder %s6525_s7, 17  ;;  %s8918_s10 = scalar_lea.sflag [#allocation6], %s6736_s8 }
  0x3b   : > { %s8919_s11 = smov 128   ;;  %s8921_s4 = smov 8  }
  0x3c   : > { %p6767_p13 = pnand %p4534_p11, %p504_p12  ;;  %s9111_s3 = sld [smem:[#allocation121_spill]] }
  0x3d   : > { %s422_s12 = scalar_lea.vmem [#allocation8], %s6739_s0  ;;  %s8917_s14 = scalar_lea.sflag [#allocation9], %s6736_s8 }
  0x3e   : > { %s430_s13 = sshll.u32 %s422_s12, 4  ;;  %p203_p3 = scmp.ne.s32.totalorder %s6473_s17, %s6469_s16  ;;  %s431_s13 = int_to_ptr.vmem [resolvable:$true] %s430_s13 }
  0x3f   : > { %s383_s24 = scalar_lea.hbm %s9107_s1, %s6742_s30  ;;  %s196_s1 = sadd.s32 1, %s6473_s17 }
  0x40   : > { %s384_s25 = sshll.u32 %s383_s24, 4  ;;  %p209_p4 = scmp.ne.s32.totalorder %s6469_s16, %s6465_s15  ;;  %s385_s25 = int_to_ptr.hbm [resolvable:$true] %s384_s25 }
  0x41   : > { %5655 = dma.hbm_to_vmem [thread:$0]  (!%p6753_p10), %s385_s25, 4096, %s387_s2, %s8918_s10, %s8919_s11, %s8919_s11, %s8921_s4  }
  0x42   : > { %s9109_s24 = scalar_select %p6767_p13, 1, 0 }
  0x43   : > { %s427_s20 = scalar_lea.hbm %s9111_s3, %s6742_s30  ;;  %s53_s2 = sadd.s32 1, %s6517_s28 }
  0x44   : > { %9110 = sst [smem:[#allocation47_spill]] %s9109_s24  ;;  %s428_s27 = sshll.u32 %s427_s20, 4  ;;  %s429_s27 = int_to_ptr.hbm [resolvable:$true] %s428_s27 }
  0x45   : > { %5661 = dma.hbm_to_vmem [thread:$0]  (!%p6753_p10), %s429_s27, 4096, %s431_s13, %s8917_s14, %s8919_s11, %s8919_s11, %s8921_s4  }
  0x46   : > { %s9377_s2 = smov (!%p6699_p0, %s53_s2), %s6517_s28  ;;  %p6798_p7 = por %p203_p3, %p74_p1 }
  0x47   : > { %p55_p6 = scmp.ge.s32.totalorder %s9377_s2, 2  ;;  %p6804_p11 = por %p209_p4, %p80_p2 }
  0x48   : > { %s464_s26 = sand.u32 1, %s6473_s17   ;;  %s5337_s25 = sshll.u32 %s6517_s28, 3 }
  0x49   : > { %s9113_s13 = scalar_select %p6804_p11, 1, 0 }
  0x4a   : > { %s6811_s20 = scalar_select %p55_p6, 0, %s9377_s2  }
  0x4b   : > { %9114 = sst [smem:[#allocation48_spill]] %s9113_s13  ;;  %s4528_s27 = sshll.u32 %s464_s26, 9 }
  0x4c   : > { %9115 = sst [smem:[#allocation49_spill]] %s6811_s20  ;;  %s6816_s15 = ssub.s32 %s6517_s28, %s6811_s20 }
  0x4d   : > { %p194_p0 = scmp.eq.s32.totalorder %s6816_s15, 0  ;;  %s466_s18 = scalar_lea.vmem [#allocation11], %s4528_s27 }
  0x4e   : > { %s474_s14 = sshll.u32 %s466_s18, 4  ;;  %s9117_s5 = sld [smem:[#allocation123_spill]]  ;;  %s475_s14 = int_to_ptr.vmem [resolvable:$true] %s474_s14 }
  0x4f   : > { %s6821_s10 = scalar_select %p194_p0, %s6473_s17, %s196_s1  }
  0x50   : > { %p6830_p12 = pnand %p8929_p9, %p6798_p7  ;;  %s9119_s6 = sld [smem:[#allocation124_spill]] }
  0x51   : > { %9116 = sst [smem:[#allocation50_spill]] %s6821_s10  ;;  %s8930_s4 = scalar_lea.sflag [#allocation12], %s6736_s8 }
  0x52   : > { %s9121_s12 = smov 8   ;;  %s9122_s28 = smov 128  }
  0x53   : > { %s9123_s17 = sld [smem:[#allocation29_spill]]  ;;  %s488_s13 = scalar_lea.vmem [#allocation13], %s4528_s27 }
  0x54   : > { %s471_s3 = scalar_lea.hbm %s9117_s5, %s5337_s25  ;;  %s9120_s5 = sld [smem:[#allocation30_spill]] }
  0x55   : > { %s472_s20 = sshll.u32 %s471_s3, 4  ;;  %s8932_s3 = smov 256   ;;  %s473_s20 = int_to_ptr.hbm [resolvable:$true] %s472_s20 }
  0x56   : > { %s493_s11 = scalar_lea.hbm %s9119_s6, %s5337_s25  ;;  %s6845_s1 = sshll.u32 %s488_s13, 4 }
  0x57   : > { %5667 = dma.hbm_to_vmem [thread:$0]  (!%p6830_p12), %s473_s20, 8192, %s475_s14, %s8930_s4, %s8932_s3, %s9122_s28, %s9121_s12  }
  0x58   : > { %s494_s10 = sshll.u32 %s493_s11, 4  ;;  %9124 = sst [smem:[#allocation51_spill]] %s6845_s1  ;;  %s6847_s10 = int_to_ptr.hbm [resolvable:$true] %s494_s10 }
  0x59   : > { %s9125_s25 = sld [smem:[#allocation28_spill]]  ;;  %s57_s16 = sadd.s32 1, %s6521_s29 }
  0x5a   : > { %s9126_s18 = sld [smem:[#allocation44_spill]]  ;;  %s9379_s16 = smov (!%p55_p6, %s57_s16), %s6521_s29 }
  0x5b   : > { %s66_s14 = sadd.s32 1, %s6497_s23  ;;  %p73_p3 = scmp.ne.s32.totalorder %s6497_s23, %s6493_s22 }
  0x5c   : > { %p59_p4 = scmp.ge.s32.totalorder %s9379_s16, 2  ;;  %p79_p7 = scmp.ne.s32.totalorder %s6493_s22, %s6489_s21 }
  0x5d   : > { %p6862_p0 = por %p74_p1, %p73_p3  ;;  %s252_s20 = sadd.s32 1, %s9120_s5 }
  0x5e   : > { %s9381_s16 = smov (%p59_p4, %s9379_s16), 0  ;;  %s9129_s2 = sld [smem:[#allocation27_spill]] }
  0x5f   : > { %9128 = sst [smem:[#allocation52_spill]] %s9381_s16  ;;  %p6871_p6 = por %p80_p2, %p79_p7 }
  0x60   : > { %p262_p9 = scmp.ne.s32.totalorder %s9120_s5, %s9123_s17  ;;  %s9132_s11 = sld [smem:[#allocation26_spill]] }
  0x61   : > { %s9130_s27 = scalar_select %p6871_p6, 1, 0 }
  0x62   : > { %s61_s21 = ssub.s32 %s6521_s29, %s9381_s16  ;;  %s9133_s4 = sld [smem:[#allocation25_spill]] }
  0x63   : > { %9131 = sst [smem:[#allocation44_spill]] %s9130_s27  ;;  %p268_p1 = scmp.ne.s32.totalorder %s9123_s17, %s9125_s25 }
  0x64   : > { %s63_s1 = sor.u32 %s9126_s18, %s61_s21  ;;  %p6884_p3 = por %p8939_p5, %p262_p9 }
  0x65   : > { %p64_p2 = scmp.eq.s32.totalorder %s63_s1, 0  ;;  %s249_s6 = sor.u32 %s6816_s15, %s63_s1 }
  0x66   : > { %s9134_s3 = scalar_select %p6884_p3, 1, 0 }
  0x67   : > { %p250_p4 = scmp.eq.s32.totalorder %s249_s6, 0  ;;  %s9135_s27 = sadd.s32 4294967294, %s6525_s7  }
  0x68   : > { %s9136_s22 = sld [smem:[#allocation40_spill]]  ;;  %p6891_p7 = scmp.eq.s32.totalorder %s9135_s27, 15 }
  0x69   : > { %s6896_s17 = scalar_select %p64_p2, %s6497_s23, %s66_s14  }
  0x6a   : > { %s9383_s5 = smov (!%p250_p4, %s9120_s5), %s252_s20  ;;  %p6903_p9 = por %p6891_p7, %p268_p1 }
  0x6b   : > { %9138 = sst [smem:[#allocation53_spill]] %s6896_s17  ;;  %s277_s1 = sor.u32 %s6816_s15, %s61_s21 }
  0x6c   : > { %9139 = sst [smem:[#allocation54_spill]] %s9383_s5  ;;  %s279_s6 = sor.u32 %s277_s1, %s9126_s18 }
  0x6d   : > { %s282_s16 = sadd.s32 1, %s9129_s2  ;;  %p280_p5 = scmp.eq.s32.totalorder %s279_s6, 0 }
  0x6e   : > { %p292_p3 = scmp.ne.s32.totalorder %s9129_s2, %s9132_s11  ;;  %p298_p11 = scmp.ne.s32.totalorder %s9132_s11, %s9133_s4 }
  0x6f   : > { %s349_s27 = sand.u32 1, %s6497_s23   ;;  %s9385_s2 = smov (!%p280_p5, %s9129_s2), %s282_s16 }
  0x70   : > { %9141 = sst [smem:[#allocation55_spill]] %s9385_s2  ;;  %p9142_p2 = scmp.eq.s32.totalorder %s6696_s9, 15 }
  0x71   : > { %p6926_p1 = por %p298_p11, %p6891_p7  ;;  %s4511_s15 = sshll.u32 %s349_s27, 9 }
  0x72   : > { %p6920_p8 = por %p292_p3, %p9142_p2  ;;  %s5332_s18 = sshll.u32 %s9136_s22, 7 }
  0x73   : > { %s9144_s20 = scalar_select %p6926_p1, 1, 0 }
  0x74   : > { %s4514_s21 = sshll.u32 %s6521_s29, 9  ;;  %s353_s1 = scalar_lea.vmem [#allocation2], %s4511_s15 }
  0x75   : > { %9145 = sst [smem:[#allocation25_spill]] %s9144_s20  ;;  %s364_s4 = sshll.u32 %s353_s1, 4  ;;  %s365_s4 = int_to_ptr.vmem [resolvable:$true] %s364_s4 }
  0x76   : > { %s359_s11 = sadd.s32 %s5332_s18, %s4514_s21  ;;  %p9146_p5 = scmp.lt.s32.totalorder %s6525_s7, 16 }
  0x77   : > { %s4515_s16 = sshll.u32 %s359_s11, 2  ;;  %s9147_s17 = sld [smem:[#allocation118_spill]] }
  0x78   : > { %p5650_p11 = pnand %p9146_p5, %p6862_p0  ;;  %s350_s22 = scalar_lea.sflag [#allocation3], %s349_s27 }
  0x79   : > { %s6530_s15 = smov 16   ;;  %s9148_s18 = smov 256  }
  0x7a   : > { %s9149_s21 = sld [smem:[#allocation51_spill]]  ;;  %s400_s2 = scalar_lea.vmem [#allocation7], %s6739_s0 }
  0x7b   : > { %s9150_s11 = sld [smem:[#allocation120_spill]]  ;;  %s408_s24 = sshll.u32 %s400_s2, 4  ;;  %s409_s24 = int_to_ptr.vmem [resolvable:$true] %s408_s24 }
  0x7c   : > { %s9152_s6 = sld [smem:[#allocation122_spill]]  ;;  %s9154_s2 = scalar_lea.sflag [#allocation12], %s6736_s8 }
  0x7d   : > { %s361_s23 = scalar_lea.hbm %s9147_s17, %s4515_s16 }
  0x7e   : > { %s362_s5 = sshll.u32 %s361_s23, 4  ;;  %s9151_s23 = scalar_lea.sflag [#allocation6], %s6736_s8  ;;  %s363_s5 = int_to_ptr.hbm [resolvable:$true] %s362_s5 }
  0x7f   : > { %5652 = dma.hbm_to_vmem [thread:$0]  (!%p5650_p11), %s363_s5, 8192, %s365_s4, %s350_s22, %s9148_s18, %s9148_s18, %s6530_s15  }
  0x80   : > { %s444_s5 = scalar_lea.vmem [#allocation10], %s6739_s0  ;;  %s9155_s15 = int_to_ptr.vmem [resolvable:$true] %s9149_s21 }
  0x81   : > { %s405_s29 = scalar_lea.hbm %s9150_s11, %s6742_s30  ;;  %s452_s4 = sshll.u32 %s444_s5, 4  ;;  %s453_s4 = int_to_ptr.vmem [resolvable:$true] %s452_s4 }
  0x82   : > { %s406_s17 = sshll.u32 %s405_s29, 4  ;;  %s449_s20 = scalar_lea.hbm %s9152_s6, %s6742_s30  ;;  %s407_s17 = int_to_ptr.hbm [resolvable:$true] %s406_s17 }
  0x83   : > { %5658 = dma.hbm_to_vmem [thread:$0]  (!%p6753_p10), %s407_s17, 4096, %s409_s24, %s9151_s23, %s9122_s28, %s9122_s28, %s9121_s12  }
  0x84   : > { %s450_s22 = sshll.u32 %s449_s20, 4  ;;  %s9153_s29 = scalar_lea.sflag [#allocation9], %s6736_s8  ;;  %s451_s22 = int_to_ptr.hbm [resolvable:$true] %s450_s22 }
  0x85   : > { %5664 = dma.hbm_to_vmem [thread:$0]  (!%p6753_p10), %s451_s22, 4096, %s453_s4, %s9153_s29, %s9122_s28, %s9122_s28, %s9121_s12  }
  0x86   : > { %5670 = dma.hbm_to_vmem [thread:$0]  (!%p6830_p12), %s6847_s10, 8192, %s9155_s15, %s9154_s2, %s9148_s18, %s9122_s28, %s9121_s12  }
  0x87   : > { %508 = sbr.rel (%p6767_p13) target bundleno = 1488 (0x5d0), region = 48 }
  0x8c   : > { %s9157_s0 = sld [smem:[#allocation35_spill]] }
  0x92   : > { %s510_s20 = sand.u32 1, %s9157_s0  }
  0x93   : > { %s4535_s1 = sshll.u32 %s510_s20, 9  ;;  %s511_s19 = scalar_lea.sflag [#allocation3], %s510_s20 }
  0x94   : > { %s6978_s11 = scalar_lea.vmem [#allocation2], %s4535_s1 }
  0x95   : > { %6412 = dma.done.wait (%p6871_p6), %s511_s19, 8192  }
  0x96   : > { %6414 = vsyncadd (%p6871_p6), %s511_s19, 4294959104  ;;  %s9159_s26 = sld [smem:[#allocation33_spill]]  ;;  %s6985_s21 = sand.u32 1, %s6696_s9  }
  0x97   : > { %s9160_s8 = sld [smem:[#allocation45_spill]]  ;;  %s521_s12 = scalar_lea.sflag [#allocation6], %s6985_s21 }
  0x9c   : > { %s522_s28 = sand.u32 1, %s9159_s26  }
  0x9d   : > { %s4536_s10 = sshll.u32 %s522_s28, 8  ;;  %p9161_p10 = scmp.ne.s32.totalorder %s9160_s8, 0 }
  0x9e   : > { %s6989_s18 = scalar_lea.vmem [#allocation5], %s4536_s10 }
  0x9f   : > { %6416 = dma.done.wait (%p9161_p10), %s521_s12, 8192  }
  0xa0   : > { %6418 = vsyncadd (%p9161_p10), %s521_s12, 4294959104  ;;  %s6995_s24 = scalar_lea.vmem [#allocation7], %s4536_s10  ;;  %s541_s17 = scalar_lea.sflag [#allocation9], %s6985_s21 }
  0xa1   : > { %s6998_s23 = scalar_lea.vmem [#allocation8], %s4536_s10 }
  0xa2   : > { %6420 = dma.done.wait (%p9161_p10), %s541_s17, 8192  }
  0xa3   : > { %6422 = vsyncadd (%p9161_p10), %s541_s17, 4294959104  ;;  %s9162_s9 = sld [smem:[#allocation31_spill]]  ;;  %s7005_s5 = scalar_lea.vmem [#allocation10], %s4536_s10 }
  0xa4   : > { %s9163_s27 = sld [smem:[#allocation48_spill]]  ;;  %s561_s4 = scalar_lea.sflag [#allocation12], %s6985_s21 }
  0xa9   : > { %s562_s16 = sand.u32 1, %s9162_s9  }
  0xaa   : > { %s4540_s6 = sshll.u32 %s562_s16, 9  ;;  %p9164_p13 = scmp.ne.s32.totalorder %s9163_s27, 0 }
  0xab   : > { %s7008_s22 = scalar_lea.vmem [#allocation11], %s4540_s6 }
  0xac   : > { %6424 = dma.done.wait (%p9164_p13), %s561_s4, 16384  }
  0xad   : > { %6426 = vsyncadd (%p9164_p13), %s561_s4, 4294950912  ;;  %s7014_s29 = scalar_lea.vmem [#allocation13], %s4540_s6  ;;  %s6531_s2 = smov 64  }
  0xae   : > { %v4859_v0 = vld [vmem:[%s7014_s29 + $0x70] sm:$0xf]  ;;  %v5418_v1 = vld [vmem:[%s7014_s29 + $0x74] sm:$0xf0]  ;;  %v4851_v11 = vld [vmem:[%s7014_s29 + $0x60] sm:$0xf] }
  0xaf   : > { %v4923_v2 = vld [vmem:[%s7014_s29 + $0xf0] sm:$0xf]  ;;  %v4860_v3 = vor.u32 %v5418_v1, %v4859_v0  ;;  %v5434_v4 = vld [vmem:[%s7014_s29 + $0xf4] sm:$0xf0]  ;;  %v5416_v13 = vld [vmem:[%s7014_s29 + $0x64] sm:$0xf0] }
  0xb0   : > { %v4987_v5 = vld [vmem:[%s7014_s29 + $0x170] sm:$0xf]  ;;  %v5450_v6 = vld [vmem:[%s7014_s29 + $0x174] sm:$0xf0]  ;;  %v4924_v7 = vor.u32 %v5434_v4, %v4923_v2  ;;  %v4915_v14 = vld [vmem:[%s7014_s29 + $0xe0] sm:$0xf]  ;;  %v4852_v16 = vor.u32 %v5416_v13, %v4851_v11 }
  0xb1   : > { %v4988_v8 = vor.u32 %v5450_v6, %v4987_v5  ;;  %v5051_v9 = vld [vmem:[%s7014_s29 + $0x1f0] sm:$0xf]  ;;  %v5466_v10 = vld [vmem:[%s7014_s29 + $0x1f4] sm:$0xf0]  ;;  %1430 = vmatpush.bf16.msra.mxu0 %v4860_v3  ;;  %v5432_v15 = vld [vmem:[%s7014_s29 + $0xe4] sm:$0xf0] }
  0xb2   : > { %v5052_v12 = vor.u32 %v5466_v10, %v5051_v9  ;;  %1519 = vmatpush.bf16.msra.mxu1 %v4924_v7  ;;  %v4916_v17 = vor.u32 %v5432_v15, %v4915_v14  ;;  %v4979_v18 = vld [vmem:[%s7014_s29 + $0x160] sm:$0xf]  ;;  %v5448_v19 = vld [vmem:[%s7014_s29 + $0x164] sm:$0xf0]  ;;  %v4843_v23 = vld [vmem:[%s7014_s29 + $0x50] sm:$0xf] }
  0xb3   : > { %1608 = vmatpush.bf16.msra.mxu2 %v4988_v8  ;;  %v5043_v20 = vld [vmem:[%s7014_s29 + $0x1e0] sm:$0xf]  ;;  %v4980_v21 = vor.u32 %v5448_v19, %v4979_v18  ;;  %v5464_v22 = vld [vmem:[%s7014_s29 + $0x1e4] sm:$0xf0]  ;;  %v5414_v24 = vld [vmem:[%s7014_s29 + $0x54] sm:$0xf0] }
  0xb4   : > { %1697 = vmatpush.bf16.msra.mxu3 %v5052_v12  ;;  %v5044_v25 = vor.u32 %v5464_v22, %v5043_v20  ;;  %v4907_v26 = vld [vmem:[%s7014_s29 + $0xd0] sm:$0xf]  ;;  %v5430_v27 = vld [vmem:[%s7014_s29 + $0xd4] sm:$0xf0]  ;;  %v4844_v29 = vor.u32 %v5414_v24, %v4843_v23  ;;  %v4835_v35 = vld [vmem:[%s7014_s29 + $0x40] sm:$0xf] }
  0xb5   : > { %v4971_v28 = vld [vmem:[%s7014_s29 + $0x150] sm:$0xf]  ;;  %1431 = vmatpush.bf16.msra.mxu0 %v4852_v16  ;;  %v5446_v30 = vld [vmem:[%s7014_s29 + $0x154] sm:$0xf0]  ;;  %v4908_v33 = vor.u32 %v5430_v27, %v4907_v26  ;;  %v5412_v36 = vld [vmem:[%s7014_s29 + $0x44] sm:$0xf0] }
  0xb6   : > { %v5035_v31 = vld [vmem:[%s7014_s29 + $0x1d0] sm:$0xf]  ;;  %v5462_v32 = vld [vmem:[%s7014_s29 + $0x1d4] sm:$0xf0]  ;;  %1520 = vmatpush.bf16.msra.mxu1 %v4916_v17  ;;  %v4972_v34 = vor.u32 %v5446_v30, %v4971_v28  ;;  %v4899_v37 = vld [vmem:[%s7014_s29 + $0xc0] sm:$0xf]  ;;  %v4836_v44 = vor.u32 %v5412_v36, %v4835_v35 }
  0xb7   : > { %1609 = vmatpush.bf16.msra.mxu2 %v4980_v21  ;;  %v5036_v38 = vor.u32 %v5462_v32, %v5035_v31  ;;  %v5428_v39 = vld [vmem:[%s7014_s29 + $0xc4] sm:$0xf0]  ;;  %v4963_v40 = vld [vmem:[%s7014_s29 + $0x140] sm:$0xf]  ;;  %v4827_v47 = vld [vmem:[%s7014_s29 + $0x30] sm:$0xf] }
  0xb8   : > { %1698 = vmatpush.bf16.msra.mxu3 %v5044_v25  ;;  %v5444_v41 = vld [vmem:[%s7014_s29 + $0x144] sm:$0xf0]  ;;  %v5027_v42 = vld [vmem:[%s7014_s29 + $0x1c0] sm:$0xf]  ;;  %v4900_v45 = vor.u32 %v5428_v39, %v4899_v37  ;;  %v5410_v48 = vld [vmem:[%s7014_s29 + $0x34] sm:$0xf0] }
  0xb9   : > { %v5460_v43 = vld [vmem:[%s7014_s29 + $0x1c4] sm:$0xf0]  ;;  %1432 = vmatpush.bf16.msra.mxu0 %v4844_v29  ;;  %v4964_v46 = vor.u32 %v5444_v41, %v4963_v40  ;;  %v4891_v49 = vld [vmem:[%s7014_s29 + $0xb0] sm:$0xf]  ;;  %v5426_v51 = vld [vmem:[%s7014_s29 + $0xb4] sm:$0xf0]  ;;  %v4828_v56 = vor.u32 %v5410_v48, %v4827_v47 }
  0xba   : > { %1521 = vmatpush.bf16.msra.mxu1 %v4908_v33  ;;  %v5028_v50 = vor.u32 %v5460_v43, %v5027_v42  ;;  %v4955_v52 = vld [vmem:[%s7014_s29 + $0x130] sm:$0xf]  ;;  %v5442_v53 = vld [vmem:[%s7014_s29 + $0x134] sm:$0xf0]  ;;  %v4892_v57 = vor.u32 %v5426_v51, %v4891_v49  ;;  %v4819_v59 = vld [vmem:[%s7014_s29 + $0x20] sm:$0xf] }
  0xbb   : > { %1610 = vmatpush.bf16.msra.mxu2 %v4972_v34  ;;  %v5019_v54 = vld [vmem:[%s7014_s29 + $0x1b0] sm:$0xf]  ;;  %v5458_v55 = vld [vmem:[%s7014_s29 + $0x1b4] sm:$0xf0]  ;;  %v4956_v58 = vor.u32 %v5442_v53, %v4955_v52  ;;  %v5408_v60 = vld [vmem:[%s7014_s29 + $0x24] sm:$0xf0] }
  0xbc   : > { %1699 = vmatpush.bf16.msra.mxu3 %v5036_v38  ;;  %v4883_v61 = vld [vmem:[%s7014_s29 + $0xa0] sm:$0xf]  ;;  %v5020_v62 = vor.u32 %v5458_v55, %v5019_v54  ;;  %v5424_v63 = vld [vmem:[%s7014_s29 + $0xa4] sm:$0xf0]  ;;  %v4820_v4 = vor.u32 %v5408_v60, %v4819_v59  ;;  %v4811_v7 = vld [vmem:[%s7014_s29 + $0x10] sm:$0xf] }
  0xbd   : > { %1433 = vmatpush.bf16.msra.mxu0 %v4836_v44  ;;  %v4947_v0 = vld [vmem:[%s7014_s29 + $0x120] sm:$0xf]  ;;  %v5440_v1 = vld [vmem:[%s7014_s29 + $0x124] sm:$0xf0]  ;;  %v4884_v5 = vor.u32 %v5424_v63, %v4883_v61  ;;  %v5406_v8 = vld [vmem:[%s7014_s29 + $0x14] sm:$0xf0] }
  0xbe   : > { %1522 = vmatpush.bf16.msra.mxu1 %v4900_v45  ;;  %v5011_v2 = vld [vmem:[%s7014_s29 + $0x1a0] sm:$0xf]  ;;  %v5456_v3 = vld [vmem:[%s7014_s29 + $0x1a4] sm:$0xf0]  ;;  %v4948_v6 = vor.u32 %v5440_v1, %v4947_v0  ;;  %v4875_v9 = vld [vmem:[%s7014_s29 + $0x90] sm:$0xf]  ;;  %v4812_v17 = vor.u32 %v5406_v8, %v4811_v7 }
  0xbf   : > { %1611 = vmatpush.bf16.msra.mxu2 %v4964_v46  ;;  %v5012_v10 = vor.u32 %v5456_v3, %v5011_v2  ;;  %v5422_v11 = vld [vmem:[%s7014_s29 + $0x94] sm:$0xf0]  ;;  %v4939_v12 = vld [vmem:[%s7014_s29 + $0x110] sm:$0xf]  ;;  %v4803_v16 = vld [vmem:[%s7014_s29] sm:$0xf] }
  0xc0   : > { %1700 = vmatpush.bf16.msra.mxu3 %v5028_v50  ;;  %v5438_v13 = vld [vmem:[%s7014_s29 + $0x114] sm:$0xf0]  ;;  %v5003_v14 = vld [vmem:[%s7014_s29 + $0x190] sm:$0xf]  ;;  %v5404_v18 = vld [vmem:[%s7014_s29 + $0x4] sm:$0xf0]  ;;  %v4876_v21 = vor.u32 %v5422_v11, %v4875_v9 }
  0xc1   : > { %1434 = vmatpush.bf16.msra.mxu0 %v4828_v56  ;;  %v5454_v15 = vld [vmem:[%s7014_s29 + $0x194] sm:$0xf0]  ;;  %v4867_v19 = vld [vmem:[%s7014_s29 + $0x80] sm:$0xf]  ;;  %v5420_v20 = vld [vmem:[%s7014_s29 + $0x84] sm:$0xf0]  ;;  %v4940_v22 = vor.u32 %v5438_v13, %v4939_v12  ;;  %v4804_v33 = vor.u32 %v5404_v18, %v4803_v16 }
  0xc2   : > { %1523 = vmatpush.bf16.msra.mxu1 %v4892_v57  ;;  %v4931_v23 = vld [vmem:[%s7014_s29 + $0x100] sm:$0xf]  ;;  %v5436_v24 = vld [vmem:[%s7014_s29 + $0x104] sm:$0xf0]  ;;  %v5004_v26 = vor.u32 %v5454_v15, %v5003_v14  ;;  %v5341_v29 = vld [vmem:[%s6978_s11 + $0xc] sm:$0xf0]  ;;  %v4868_v37 = vor.u32 %v5420_v20, %v4867_v19 }
  0xc3   : > { %1612 = vmatpush.bf16.msra.mxu2 %v4956_v58  ;;  %v4995_v25 = vld [vmem:[%s7014_s29 + $0x180] sm:$0xf]  ;;  %v5452_v27 = vld [vmem:[%s7014_s29 + $0x184] sm:$0xf0]  ;;  %v5339_v30 = vld [vmem:[%s6978_s11 + $0x4] sm:$0xf]  ;;  %v4932_v38 = vor.u32 %v5436_v24, %v4931_v23 }
  0xc4   : > { %1701 = vmatpush.bf16.msra.mxu3 %v5020_v62  ;;  %v4547_v28 = vld [vmem:[%s6978_s11] sm:$0xf]  ;;  %v5449_v31 = vld [vmem:[%s7014_s29 + $0x174] sm:$0xf]  ;;  %v4989_v32 = vld [vmem:[%s7014_s29 + $0x178] sm:$0xf0]  ;;  %v4996_v42 = vor.u32 %v5452_v27, %v4995_v25 }
  0xc5   : > { %1435 = vmatpush.bf16.msra.mxu0 %v4820_v4  ;;  %v4549_v34 = vld [vmem:[%s6978_s11 + $0x10] sm:$0xf0]  ;;  %v5053_v36 = vld [vmem:[%s7014_s29 + $0x1f8] sm:$0xf0]  ;;  %v4555_v39 = vld [vmem:[%s6978_s11 + $0x8] sm:$0xf]  ;;  %v4992_v44 = vor.u32 %v5449_v31, %v4989_v32  ;;  %v7094_v47 = vor.u32 %v5341_v29, %v4547_v28 }
  0xc6   : > { %1524 = vmatpush.bf16.msra.mxu1 %v4884_v5  ;;  %v5465_v35 = vld [vmem:[%s7014_s29 + $0x1f4] sm:$0xf]  ;;  %v5342_v40 = vld [vmem:[%s6978_s11 + $0x14] sm:$0xf0]  ;;  %v5340_v41 = vld [vmem:[%s6978_s11 + $0xc] sm:$0xf]  ;;  %v7098_v51 = vor.u32 %v5339_v30, %v4549_v34 }
  0xc7   : > { %1613 = vmatpush.bf16.msra.mxu2 %v4948_v6  ;;  %v4557_v43 = vld [vmem:[%s6978_s11 + $0x18] sm:$0xf0]  ;;  %v5417_v45 = vld [vmem:[%s7014_s29 + $0x74] sm:$0xf]  ;;  %v5056_v48 = vor.u32 %v5465_v35, %v5053_v36  ;;  %v7100_v52 = vor.u32 %v5342_v40, %v4555_v39  ;;  %v5447_v56 = vld [vmem:[%s7014_s29 + $0x164] sm:$0xf] }
  0xc8   : > { %1702 = vmatpush.bf16.msra.mxu3 %v5012_v10  ;;  %v4861_v46 = vld [vmem:[%s7014_s29 + $0x78] sm:$0xf0]  ;;  %v5433_v49 = vld [vmem:[%s7014_s29 + $0xf4] sm:$0xf]  ;;  %9165 = vst [vmem:[#allocation56_spill] sm:$0xff] %v7098_v51  ;;  %v7102_v53 = vor.u32 %v5340_v41, %v4557_v43  ;;  %s9236_s15 = sld [smem:[#allocation29_spill]] }
  0xc9   : > { %1436 = vmatpush.bf16.msra.mxu0 %v4812_v17  ;;  %v4925_v50 = vld [vmem:[%s7014_s29 + $0xf8] sm:$0xf0]  ;;  %9166 = vst [vmem:[#allocation57_spill] sm:$0xff] %v7100_v52  ;;  %v4864_v54 = vor.u32 %v5417_v45, %v4861_v46  ;;  %v4981_v57 = vld [vmem:[%s7014_s29 + $0x168] sm:$0xf0]  ;;  %s9318_s19 = sld [smem:[#allocation26_spill]] }
  0xca   : > { %1525 = vmatpush.bf16.msra.mxu1 %v4876_v21  ;;  %9167 = vst [vmem:[#allocation58_spill] sm:$0xff] %v7102_v53  ;;  %v4928_v55 = vor.u32 %v5433_v49, %v4925_v50  ;;  %v5463_v58 = vld [vmem:[%s7014_s29 + $0x1e4] sm:$0xf]  ;;  %v4984_v59 = vor.u32 %v5447_v56, %v4981_v57  ;;  %v5045_v60 = vld [vmem:[%s7014_s29 + $0x1e8] sm:$0xf0]  ;;  %s9338_s28 = sld [smem:[#allocation37_spill]] }
  0xcb   : > { %1614 = vmatpush.bf16.msra.mxu2 %v4940_v22  ;;  %v5415_v61 = vld [vmem:[%s7014_s29 + $0x64] sm:$0xf]  ;;  %v4853_v62 = vld [vmem:[%s7014_s29 + $0x68] sm:$0xf0]  ;;  %v5048_v63 = vor.u32 %v5463_v58, %v5045_v60  ;;  %v4563_v4 = vld [vmem:[%s6978_s11 + $0x20] sm:$0xf] }
  0xcc   : > { %1703 = vmatpush.bf16.msra.mxu3 %v5004_v26  ;;  %v4856_v0 = vor.u32 %v5415_v61, %v4853_v62  ;;  %v5431_v1 = vld [vmem:[%s7014_s29 + $0xe4] sm:$0xf]  ;;  %v4917_v2 = vld [vmem:[%s7014_s29 + $0xe8] sm:$0xf0]  ;;  %v5345_v5 = vld [vmem:[%s6978_s11 + $0x2c] sm:$0xf0] }
  0xcd   : > { %1437 = vmatpush.bf16.msra.mxu0 %v4804_v33  ;;  %v4920_v3 = vor.u32 %v5431_v1, %v4917_v2  ;;  %v5343_v6 = vld [vmem:[%s6978_s11 + $0x24] sm:$0xf]  ;;  %v4565_v7 = vld [vmem:[%s6978_s11 + $0x30] sm:$0xf0]  ;;  %v4571_v8 = vld [vmem:[%s6978_s11 + $0x28] sm:$0xf]  ;;  %v7124_v12 = vor.u32 %v5345_v5, %v4563_v4 }
  0xce   : > { %1526 = vmatpush.bf16.msra.mxu1 %v4868_v37  ;;  %v5346_v9 = vld [vmem:[%s6978_s11 + $0x34] sm:$0xf0]  ;;  %v5344_v10 = vld [vmem:[%s6978_s11 + $0x2c] sm:$0xf]  ;;  %v4573_v11 = vld [vmem:[%s6978_s11 + $0x38] sm:$0xf0]  ;;  %v7126_v13 = vor.u32 %v5343_v6, %v4565_v7 }
  0xcf   : > { %1615 = vmatpush.bf16.msra.mxu2 %v4932_v38  ;;  %v7128_v14 = vor.u32 %v5346_v9, %v4571_v8  ;;  %v7130_v15 = vor.u32 %v5344_v10, %v4573_v11  ;;  %v4579_v16 = vld [vmem:[%s6978_s11 + $0x40] sm:$0xf]  ;;  %v5349_v17 = vld [vmem:[%s6978_s11 + $0x4c] sm:$0xf0]  ;;  %v5347_v18 = vld [vmem:[%s6978_s11 + $0x44] sm:$0xf] }
  0xd0   : > { %1704 = vmatpush.bf16.msra.mxu3 %v4996_v42  ;;  %1438 = vmatmul.bf16.vlgmr.msra.gmra.mxu0 %v7094_v47  ;;  %v4581_v19 = vld [vmem:[%s6978_s11 + $0x50] sm:$0xf0]  ;;  %v4587_v20 = vld [vmem:[%s6978_s11 + $0x48] sm:$0xf]  ;;  %v5350_v21 = vld [vmem:[%s6978_s11 + $0x54] sm:$0xf0]  ;;  %v7144_v24 = vor.u32 %v5349_v17, %v4579_v16 }
  0xd1   : > { %1527 = vmatmul.bf16.vlgmr.msra.gmra.mxu1 %v7098_v51  ;;  %1786 = vmatpush.bf16.msrb.mxu0 %v4864_v54  ;;  %9168 = vst [vmem:[#allocation59_spill] sm:$0xff] %v7128_v14  ;;  %v5348_v22 = vld [vmem:[%s6978_s11 + $0x4c] sm:$0xf]  ;;  %v4589_v23 = vld [vmem:[%s6978_s11 + $0x58] sm:$0xf0]  ;;  %v7146_v25 = vor.u32 %v5347_v18, %v4581_v19  ;;  %v7148_v26 = vor.u32 %v5350_v21, %v4587_v20  ;;  %s7783_s13 = sand.u32 1, %s9236_s15  }
  0xd2   : > { %1616 = vmatmul.bf16.vlgmr.msra.gmra.mxu2 %v7100_v52  ;;  %1875 = vmatpush.bf16.msrb.mxu1 %v4928_v55  ;;  %9169 = vst [vmem:[#allocation60_spill] sm:$0xff] %v7130_v15  ;;  %v7150_v27 = vor.u32 %v5348_v22, %v4589_v23  ;;  %v5445_v28 = vld [vmem:[%s7014_s29 + $0x154] sm:$0xf]  ;;  %v4973_v29 = vld [vmem:[%s7014_s29 + $0x158] sm:$0xf0]  ;;  %s4544_s0 = sshll.u32 %s7783_s13, 7 }
  0xd3   : > { %1964 = vmatpush.bf16.msrb.mxu2 %v4992_v44  ;;  %1705 = vmatmul.bf16.vlgmr.msra.gmra.mxu3 %v7102_v53  ;;  %9170 = vst [vmem:[#allocation61_spill] sm:$0xff] %v7144_v24  ;;  %v5461_v30 = vld [vmem:[%s7014_s29 + $0x1d4] sm:$0xf]  ;;  %v4976_v31 = vor.u32 %v5445_v28, %v4973_v29  ;;  %v5037_v32 = vld [vmem:[%s7014_s29 + $0x1d8] sm:$0xf0]  ;;  %s7803_s30 = scalar_lea.vmem [#allocation17], %s4544_s0 }
  0xd4   : > { %2053 = vmatpush.bf16.msrb.mxu3 %v5056_v48  ;;  %9171 = vst [vmem:[#allocation62_spill] sm:$0xff] %v7146_v25  ;;  %v5413_v33 = vld [vmem:[%s7014_s29 + $0x54] sm:$0xf]  ;;  %v4845_v34 = vld [vmem:[%s7014_s29 + $0x58] sm:$0xf0]  ;;  %v5040_v35 = vor.u32 %v5461_v30, %v5037_v32  ;;  %s4542_s20 = sshll.u32 %s7783_s13, 8 }
  0xd5   : > { %1787 = vmatpush.bf16.msrb.mxu0 %v4856_v0  ;;  %9172 = vst [vmem:[#allocation63_spill] sm:$0xff] %v7148_v26  ;;  %v4848_v36 = vor.u32 %v5413_v33, %v4845_v34  ;;  %v5429_v37 = vld [vmem:[%s7014_s29 + $0xd4] sm:$0xf]  ;;  %v4909_v38 = vld [vmem:[%s7014_s29 + $0xd8] sm:$0xf0]  ;;  %s8168_s1 = scalar_lea.vmem [#allocation14], %s4542_s20 }
  0xd6   : > { %1876 = vmatpush.bf16.msrb.mxu1 %v4920_v3  ;;  %9173 = vst [vmem:[#allocation64_spill] sm:$0xff] %v7150_v27  ;;  %v4912_v39 = vor.u32 %v5429_v37, %v4909_v38  ;;  %v4595_v40 = vld [vmem:[%s6978_s11 + $0x60] sm:$0xf]  ;;  %v5353_v41 = vld [vmem:[%s6978_s11 + $0x6c] sm:$0xf0]  ;;  %s9339_s10 = sld [smem:[#allocation38_spill]] }
  0xd7   : > { %1965 = vmatpush.bf16.msrb.mxu2 %v4984_v59  ;;  %v5351_v42 = vld [vmem:[%s6978_s11 + $0x64] sm:$0xf]  ;;  %v4597_v43 = vld [vmem:[%s6978_s11 + $0x70] sm:$0xf0]  ;;  %v4603_v44 = vld [vmem:[%s6978_s11 + $0x68] sm:$0xf]  ;;  %v7172_v49 = vor.u32 %v5353_v41, %v4595_v40 }
  0xd8   : > { %2054 = vmatpush.bf16.msrb.mxu3 %v5048_v63  ;;  %v5354_v45 = vld [vmem:[%s6978_s11 + $0x74] sm:$0xf0]  ;;  %v5352_v46 = vld [vmem:[%s6978_s11 + $0x6c] sm:$0xf]  ;;  %v4605_v48 = vld [vmem:[%s6978_s11 + $0x78] sm:$0xf0]  ;;  %v7174_v50 = vor.u32 %v5351_v42, %v4597_v43 }
  0xd9   : > { %1788 = vmatpush.bf16.msrb.mxu0 %v4848_v36  ;;  %v7176_v54 = vor.u32 %v5354_v45, %v4603_v44  ;;  %v7178_v55 = vor.u32 %v5352_v46, %v4605_v48  ;;  %v4611_v56 = vld [vmem:[%s6978_s11 + $0x80] sm:$0xf]  ;;  %v5357_v57 = vld [vmem:[%s6978_s11 + $0x8c] sm:$0xf0]  ;;  %v5355_v58 = vld [vmem:[%s6978_s11 + $0x84] sm:$0xf] }
  0xda   : > { %1877 = vmatpush.bf16.msrb.mxu1 %v4912_v39  ;;  %v4613_v59 = vld [vmem:[%s6978_s11 + $0x90] sm:$0xf0]  ;;  %v4619_v60 = vld [vmem:[%s6978_s11 + $0x88] sm:$0xf]  ;;  %v5358_v61 = vld [vmem:[%s6978_s11 + $0x94] sm:$0xf0]  ;;  %v7192_v0 = vor.u32 %v5357_v57, %v4611_v56 }
  0xdb   : > { %1966 = vmatpush.bf16.msrb.mxu2 %v4976_v31  ;;  %9174 = vst [vmem:[#allocation65_spill] sm:$0xff] %v7176_v54  ;;  %v5356_v62 = vld [vmem:[%s6978_s11 + $0x8c] sm:$0xf]  ;;  %v4621_v63 = vld [vmem:[%s6978_s11 + $0x98] sm:$0xf0]  ;;  %v7194_v1 = vor.u32 %v5355_v58, %v4613_v59  ;;  %v7196_v2 = vor.u32 %v5358_v61, %v4619_v60  ;;  %s9340_s12 = sld [smem:[#allocation39_spill]] }
  0xdc   : > { %2055 = vmatpush.bf16.msrb.mxu3 %v5040_v35  ;;  %9175 = vst [vmem:[#allocation66_spill] sm:$0xff] %v7178_v55  ;;  %v7198_v3 = vor.u32 %v5356_v62, %v4621_v63  ;;  %v5443_v4 = vld [vmem:[%s7014_s29 + $0x144] sm:$0xf]  ;;  %v4965_v5 = vld [vmem:[%s7014_s29 + $0x148] sm:$0xf0]  ;;  %s5322_s17 = sshll.u32 %s9338_s28, 1 }
  0xdd   : > { %9176 = vst [vmem:[#allocation67_spill] sm:$0xff] %v7192_v0  ;;  %v5459_v6 = vld [vmem:[%s7014_s29 + $0x1c4] sm:$0xf]  ;;  %v4968_v7 = vor.u32 %v5443_v4, %v4965_v5  ;;  %v5029_v8 = vld [vmem:[%s7014_s29 + $0x1c8] sm:$0xf0]  ;;  %s5533_s6 = sshll.u32 %s9338_s28, 6 }
  0xde   : > { %9177 = vst [vmem:[#allocation68_spill] sm:$0xff] %v7194_v1  ;;  %v5411_v9 = vld [vmem:[%s7014_s29 + $0x44] sm:$0xf]  ;;  %v4837_v10 = vld [vmem:[%s7014_s29 + $0x48] sm:$0xf0]  ;;  %v5032_v11 = vor.u32 %v5459_v6, %v5029_v8  ;;  %s4200_s4 = sadd.s32 %s9339_s10, %s5533_s6  ;;  %s9341_s15 = sld [smem:[#allocation126_spill]] }
  0xdf   : > { %9178 = vst [vmem:[#allocation69_spill] sm:$0xff] %v7196_v2  ;;  %v4840_v16 = vor.u32 %v5411_v9, %v4837_v10  ;;  %v5427_v17 = vld [vmem:[%s7014_s29 + $0xc4] sm:$0xf]  ;;  %v4901_v18 = vld [vmem:[%s7014_s29 + $0xc8] sm:$0xf0]  ;;  %1967 = vmatpush.bf16.msrb.mxu2 %v4968_v7 }
  0xe0   : > { %1443 = vmatmul.bf16.gmra.mxu0 %v7124_v12  ;;  %9179 = vst [vmem:[#allocation70_spill] sm:$0xff] %v7198_v3  ;;  %v4904_v19 = vor.u32 %v5427_v17, %v4901_v18  ;;  %2056 = vmatpush.bf16.msrb.mxu3 %v5032_v11  ;;  %v4627_v20 = vld [vmem:[%s6978_s11 + $0xa0] sm:$0xf]  ;;  %v5361_v21 = vld [vmem:[%s6978_s11 + $0xac] sm:$0xf0] }
  0xe1   : > { %1532 = vmatmul.bf16.gmra.mxu1 %v7126_v13  ;;  %1789 = vmatpush.bf16.msrb.mxu0 %v4840_v16  ;;  %v5359_v22 = vld [vmem:[%s6978_s11 + $0xa4] sm:$0xf]  ;;  %v4629_v23 = vld [vmem:[%s6978_s11 + $0xb0] sm:$0xf0]  ;;  %v4635_v28 = vld [vmem:[%s6978_s11 + $0xa8] sm:$0xf]  ;;  %v7220_v32 = vor.u32 %v5361_v21, %v4627_v20 }
  0xe2   : > { %1621 = vmatmul.bf16.gmra.mxu2 %v7128_v14  ;;  %1878 = vmatpush.bf16.msrb.mxu1 %v4904_v19  ;;  %v5362_v29 = vld [vmem:[%s6978_s11 + $0xb4] sm:$0xf0]  ;;  %v5360_v30 = vld [vmem:[%s6978_s11 + $0xac] sm:$0xf]  ;;  %v4637_v31 = vld [vmem:[%s6978_s11 + $0xb8] sm:$0xf0]  ;;  %v7222_v33 = vor.u32 %v5359_v22, %v4629_v23 }
  0xe3   : > { %1710 = vmatmul.bf16.gmra.mxu3 %v7130_v15  ;;  %9180 = vst [vmem:[#allocation71_spill] sm:$0xff] %v7220_v32  ;;  %v7224_v34 = vor.u32 %v5362_v29, %v4635_v28  ;;  %v7226_v35 = vor.u32 %v5360_v30, %v4637_v31  ;;  %v4643_v36 = vld [vmem:[%s6978_s11 + $0xc0] sm:$0xf]  ;;  %v5365_v37 = vld [vmem:[%s6978_s11 + $0xcc] sm:$0xf0]  ;;  %s5324_s27 = sshll.u32 %s9340_s12, 8 }
  0xe4   : > { %9181 = vst [vmem:[#allocation72_spill] sm:$0xff] %v7222_v33  ;;  %v5363_v38 = vld [vmem:[%s6978_s11 + $0xc4] sm:$0xf]  ;;  %v4645_v39 = vld [vmem:[%s6978_s11 + $0xd0] sm:$0xf0]  ;;  %v7240_v44 = vor.u32 %v5365_v37, %v4643_v36  ;;  %s9342_s0 = smov %s9341_s15 }
  0xe5   : > { %9182 = vst [vmem:[#allocation73_spill] sm:$0xff] %v7224_v34  ;;  %v4651_v40 = vld [vmem:[%s6978_s11 + $0xc8] sm:$0xf]  ;;  %v5366_v41 = vld [vmem:[%s6978_s11 + $0xd4] sm:$0xf0]  ;;  %v7242_v45 = vor.u32 %v5363_v38, %v4645_v39 }
  0xe6   : > { %9183 = vst [vmem:[#allocation74_spill] sm:$0xff] %v7226_v35  ;;  %v5364_v42 = vld [vmem:[%s6978_s11 + $0xcc] sm:$0xf]  ;;  %v4653_v43 = vld [vmem:[%s6978_s11 + $0xd8] sm:$0xf0]  ;;  %v7244_v46 = vor.u32 %v5366_v41, %v4651_v40 }
  0xe7   : > { %9184 = vst [vmem:[#allocation75_spill] sm:$0xff] %v7240_v44  ;;  %v7246_v48 = vor.u32 %v5364_v42, %v4653_v43  ;;  %v5441_v56 = vld [vmem:[%s7014_s29 + $0x134] sm:$0xf]  ;;  %v4957_v57 = vld [vmem:[%s7014_s29 + $0x138] sm:$0xf0] }
  0xe8   : > { %9185 = vst [vmem:[#allocation76_spill] sm:$0xff] %v7242_v45  ;;  %v5457_v58 = vld [vmem:[%s7014_s29 + $0x1b4] sm:$0xf]  ;;  %v4960_v59 = vor.u32 %v5441_v56, %v4957_v57  ;;  %v5021_v60 = vld [vmem:[%s7014_s29 + $0x1b8] sm:$0xf0] }
  0xe9   : > { %9186 = vst [vmem:[#allocation77_spill] sm:$0xff] %v7244_v46  ;;  %v5024_v61 = vor.u32 %v5457_v58, %v5021_v60  ;;  %v4659_v62 = vld [vmem:[%s6978_s11 + $0xe0] sm:$0xf]  ;;  %v5369_v63 = vld [vmem:[%s6978_s11 + $0xec] sm:$0xf0] }
  0xea   : > { %9187 = vst [vmem:[#allocation78_spill] sm:$0xff] %v7246_v48  ;;  %1968 = vmatpush.bf16.msrb.mxu2 %v4960_v59  ;;  %v5367_v4 = vld [vmem:[%s6978_s11 + $0xe4] sm:$0xf]  ;;  %v4661_v5 = vld [vmem:[%s6978_s11 + $0xf0] sm:$0xf0]  ;;  %v7268_v20 = vor.u32 %v5369_v63, %v4659_v62 }
  0xeb   : > { %2057 = vmatpush.bf16.msrb.mxu3 %v5024_v61  ;;  %v5409_v6 = vld [vmem:[%s7014_s29 + $0x34] sm:$0xf]  ;;  %v4829_v7 = vld [vmem:[%s7014_s29 + $0x38] sm:$0xf0]  ;;  %v4667_v9 = vld [vmem:[%s6978_s11 + $0xe8] sm:$0xf]  ;;  %v7270_v21 = vor.u32 %v5367_v4, %v4661_v5 }
  0xec   : > { %v5425_v8 = vld [vmem:[%s7014_s29 + $0xb4] sm:$0xf]  ;;  %v5370_v10 = vld [vmem:[%s6978_s11 + $0xf4] sm:$0xf0]  ;;  %v4832_v11 = vor.u32 %v5409_v6, %v4829_v7  ;;  %v4893_v16 = vld [vmem:[%s7014_s29 + $0xb8] sm:$0xf0] }
  0xed   : > { %v5368_v17 = vld [vmem:[%s6978_s11 + $0xec] sm:$0xf]  ;;  %v4669_v18 = vld [vmem:[%s6978_s11 + $0xf8] sm:$0xf0]  ;;  %v4896_v19 = vor.u32 %v5425_v8, %v4893_v16  ;;  %9188 = vst [vmem:[#allocation79_spill] sm:$0xff] %v7268_v20  ;;  %v7272_v22 = vor.u32 %v5370_v10, %v4667_v9 }
  0xee   : > { %1790 = vmatpush.bf16.msrb.mxu0 %v4832_v11  ;;  %9189 = vst [vmem:[#allocation80_spill] sm:$0xff] %v7270_v21  ;;  %v7274_v23 = vor.u32 %v5368_v17, %v4669_v18  ;;  %v4675_v28 = vld [vmem:[%s6978_s11 + $0x100] sm:$0xf]  ;;  %v5373_v29 = vld [vmem:[%s6978_s11 + $0x10c] sm:$0xf0] }
  0xef   : > { %9190 = vst [vmem:[#allocation81_spill] sm:$0xff] %v7272_v22  ;;  %1879 = vmatpush.bf16.msrb.mxu1 %v4896_v19  ;;  %v5371_v30 = vld [vmem:[%s6978_s11 + $0x104] sm:$0xf]  ;;  %v4677_v31 = vld [vmem:[%s6978_s11 + $0x110] sm:$0xf0]  ;;  %v7288_v40 = vor.u32 %v5373_v29, %v4675_v28 }
  0xf0   : > { %1448 = vmatmul.bf16.gmra.mxu0 %v7144_v24  ;;  %9191 = vst [vmem:[#allocation82_spill] sm:$0xff] %v7274_v23  ;;  %v4683_v36 = vld [vmem:[%s6978_s11 + $0x108] sm:$0xf]  ;;  %v5374_v37 = vld [vmem:[%s6978_s11 + $0x114] sm:$0xf0]  ;;  %v7290_v42 = vor.u32 %v5371_v30, %v4677_v31 }
  0xf1   : > { %1537 = vmatmul.bf16.gmra.mxu1 %v7146_v25  ;;  %v5372_v38 = vld [vmem:[%s6978_s11 + $0x10c] sm:$0xf]  ;;  %v4685_v39 = vld [vmem:[%s6978_s11 + $0x118] sm:$0xf0]  ;;  %9192 = vst [vmem:[#allocation83_spill] sm:$0xff] %v7288_v40  ;;  %v7292_v43 = vor.u32 %v5374_v37, %v4683_v36 }
  0xf2   : > { %1626 = vmatmul.bf16.gmra.mxu2 %v7148_v26  ;;  %9193 = vst [vmem:[#allocation84_spill] sm:$0xff] %v7290_v42  ;;  %v7294_v57 = vor.u32 %v5372_v38, %v4685_v39  ;;  %v5439_v59 = vld [vmem:[%s7014_s29 + $0x124] sm:$0xf]  ;;  %v4949_v60 = vld [vmem:[%s7014_s29 + $0x128] sm:$0xf0] }
  0xf3   : > { %1715 = vmatmul.bf16.gmra.mxu3 %v7150_v27  ;;  %9194 = vst [vmem:[#allocation85_spill] sm:$0xff] %v7292_v43  ;;  %v5455_v61 = vld [vmem:[%s7014_s29 + $0x1a4] sm:$0xf]  ;;  %v4952_v62 = vor.u32 %v5439_v59, %v4949_v60  ;;  %v5013_v63 = vld [vmem:[%s7014_s29 + $0x1a8] sm:$0xf0] }
  0xf4   : > { %9195 = vst [vmem:[#allocation86_spill] sm:$0xff] %v7294_v57  ;;  %v5016_v5 = vor.u32 %v5455_v61, %v5013_v63  ;;  %v4691_v11 = vld [vmem:[%s6978_s11 + $0x120] sm:$0xf]  ;;  %v5377_v16 = vld [vmem:[%s6978_s11 + $0x12c] sm:$0xf0] }
  0xf5   : > { %1969 = vmatpush.bf16.msrb.mxu2 %v4952_v62  ;;  %v5375_v17 = vld [vmem:[%s6978_s11 + $0x124] sm:$0xf]  ;;  %v4693_v18 = vld [vmem:[%s6978_s11 + $0x130] sm:$0xf0]  ;;  %v4821_v28 = vld [vmem:[%s7014_s29 + $0x28] sm:$0xf0]  ;;  %v7320_v59 = vor.u32 %v5377_v16, %v4691_v11 }
  0xf6   : > { %2058 = vmatpush.bf16.msrb.mxu3 %v5016_v5  ;;  %v5407_v19 = vld [vmem:[%s7014_s29 + $0x24] sm:$0xf]  ;;  %v4699_v30 = vld [vmem:[%s6978_s11 + $0x128] sm:$0xf]  ;;  %v5378_v31 = vld [vmem:[%s6978_s11 + $0x134] sm:$0xf0]  ;;  %v7322_v63 = vor.u32 %v5375_v17, %v4693_v18 }
  0xf7   : > { %v5423_v29 = vld [vmem:[%s7014_s29 + $0xa4] sm:$0xf]  ;;  %v4824_v36 = vor.u32 %v5407_v19, %v4821_v28  ;;  %v4885_v37 = vld [vmem:[%s7014_s29 + $0xa8] sm:$0xf0]  ;;  %9197 = vst [vmem:[#allocation88_spill] sm:$0xff] %v7320_v59 }
  0xf8   : > { %v5376_v39 = vld [vmem:[%s6978_s11 + $0x12c] sm:$0xf]  ;;  %9198 = vst [vmem:[#allocation89_spill] sm:$0xff] %v7322_v63  ;;  %v4707_v28 = vld [vmem:[%s6978_s11 + $0x140] sm:$0xf] }
  0xf9   : > { %1791 = vmatpush.bf16.msrb.mxu0 %v4824_v36  ;;  %v4715_v36 = vld [vmem:[%s6978_s11 + $0x148] sm:$0xf] }
 0x100   : > { %1453 = vmatmul.bf16.gmra.mxu0 %v7172_v49 }
 0x101   : > { %1542 = vmatmul.bf16.gmra.mxu1 %v7174_v50 }
 0x102   : > { %1631 = vmatmul.bf16.gmra.mxu2 %v7176_v54 }
 0x103   : > { %1720 = vmatmul.bf16.gmra.mxu3 %v7178_v55 }
 0x110   : > { %1458 = vmatmul.bf16.gmra.mxu0 %v7192_v0 }
 0x111   : > { %1547 = vmatmul.bf16.gmra.mxu1 %v7194_v1 }
 0x112   : > { %1636 = vmatmul.bf16.gmra.mxu2 %v7196_v2 }
 0x113   : > { %1725 = vmatmul.bf16.gmra.mxu3 %v7198_v3 }
 0x120   : > { %1463 = vmatmul.bf16.gmra.mxu0 %v7220_v32 }
 0x121   : > { %1552 = vmatmul.bf16.gmra.mxu1 %v7222_v33 }
 0x122   : > { %1641 = vmatmul.bf16.gmra.mxu2 %v7224_v34 }
 0x123   : > { %1730 = vmatmul.bf16.gmra.mxu3 %v7226_v35 }
 0x130   : > { %1468 = vmatmul.bf16.gmra.mxu0 %v7240_v44 }
 0x131   : > { %1557 = vmatmul.bf16.gmra.mxu1 %v7242_v45 }
 0x132   : > { %1646 = vmatmul.bf16.gmra.mxu2 %v7244_v46 }
 0x133   : > { %1735 = vmatmul.bf16.gmra.mxu3 %v7246_v48 }
 0x140   : > { %1473 = vmatmul.bf16.gmra.mxu0 %v7268_v20 }
 0x141   : > { %1562 = vmatmul.bf16.gmra.mxu1 %v7270_v21 }
 0x142   : > { %1651 = vmatmul.bf16.gmra.mxu2 %v7272_v22 }
 0x143   : > { %1740 = vmatmul.bf16.gmra.mxu3 %v7274_v23 }
 0x14d   : > { %v1439_v41 = vpop.f32.mrf.mxu0 }
 0x14e   : > { %v1528_v56 = vpop.f32.mrf.mxu1 }
 0x14f   : > { %v1529_v58 = vadd.f32 %v1528_v56, %v1439_v41  ;;  %v4701_v41 = vld [vmem:[%s6978_s11 + $0x138] sm:$0xf0]  ;;  %v4888_v56 = vor.u32 %v5423_v29, %v4885_v37  ;;  %v5381_v29 = vld [vmem:[%s6978_s11 + $0x14c] sm:$0xf0]  ;;  %v5382_v37 = vld [vmem:[%s6978_s11 + $0x154] sm:$0xf0] }
 0x150   : > { %1478 = vmatmul.bf16.gmra.mxu0 %v7288_v40 }
 0x151   : > { %1567 = vmatmul.bf16.gmra.mxu1 %v7290_v42 }
 0x152   : > { %1656 = vmatmul.bf16.gmra.mxu2 %v7292_v43  ;;  %1880 = vmatpush.bf16.msrb.mxu1 %v4888_v56 }
 0x153   : > { %1745 = vmatmul.bf16.gmra.mxu3 %v7294_v57 }
 0x155   : > { %v1617_v4 = vpop.f32.mrf.mxu2  ;;  %v1441_v8 = vpop.f32.mrf.mxu0 }
 0x156   : > { %v1618_v6 = vadd.f32 %v1617_v4, %v1529_v58  ;;  %v1706_v7 = vpop.f32.mrf.mxu3  ;;  %v1530_v9 = vpop.f32.mrf.mxu1  ;;  %v7324_v4 = vor.u32 %v5378_v31, %v4699_v30  ;;  %v5379_v30 = vld [vmem:[%s6978_s11 + $0x144] sm:$0xf]  ;;  %v4709_v31 = vld [vmem:[%s6978_s11 + $0x150] sm:$0xf0] }
 0x157   : > { %v1531_v38 = vadd.f32 %v1530_v9, %v1441_v8 }
 0x158   : > { %v7304_v10 = vadd.f32 %v1706_v7, %v1618_v6  ;;  %9199 = vst [vmem:[#allocation90_spill] sm:$0xff] %v7324_v4  ;;  %v7326_v6 = vor.u32 %v5376_v39, %v4701_v41  ;;  %v5380_v39 = vld [vmem:[%s6978_s11 + $0x14c] sm:$0xf]  ;;  %v4717_v41 = vld [vmem:[%s6978_s11 + $0x158] sm:$0xf0] }
 0x15a   : > { %9196 = vst [vmem:[#allocation87_spill] sm:$0xff] %v7304_v10  ;;  %2238 = vrot.lane.b32.xlu0 %v7304_v10, %s6531_s2 }
 0x15b   : > { %9200 = vst [vmem:[#allocation91_spill] sm:$0xff] %v7326_v6 }
 0x15d   : > { %v1619_v58 = vpop.f32.mrf.mxu2  ;;  %v1444_v62 = vpop.f32.mrf.mxu0 }
 0x15e   : > { %v1620_v60 = vadd.f32 %v1619_v58, %v1531_v38  ;;  %v1708_v61 = vpop.f32.mrf.mxu3  ;;  %v1533_v5 = vpop.f32.mrf.mxu1  ;;  %v7348_v58 = vor.u32 %v5381_v29, %v4707_v28  ;;  %v4941_v28 = vld [vmem:[%s7014_s29 + $0x118] sm:$0xf0]  ;;  %v5453_v29 = vld [vmem:[%s7014_s29 + $0x194] sm:$0xf] }
 0x15f   : > { %v1534_v8 = vadd.f32 %v1533_v5, %v1444_v62  ;;  %v7350_v5 = vor.u32 %v5379_v30, %v4709_v31  ;;  %v5005_v31 = vld [vmem:[%s7014_s29 + $0x198] sm:$0xf0] }
 0x160   : > { %v7328_v7 = vadd.f32 %v1708_v61, %v1620_v60  ;;  %1483 = vmatmul.bf16.gmra.mxu0 %v7320_v59  ;;  %9202 = vst [vmem:[#allocation93_spill] sm:$0xff] %v7348_v58 }
 0x161   : > { %1572 = vmatmul.bf16.gmra.mxu1 %v7322_v63  ;;  %9203 = vst [vmem:[#allocation94_spill] sm:$0xff] %v7350_v5 }
 0x162   : > { %1661 = vmatmul.bf16.gmra.mxu2 %v7324_v4  ;;  %2240 = vrot.lane.b32.xlu0 %v7328_v7, %s6531_s2 }
 0x163   : > { %1750 = vmatmul.bf16.gmra.mxu3 %v7326_v6 }
 0x165   : > { %v1622_v9 = vpop.f32.mrf.mxu2  ;;  %v1446_v17 = vpop.f32.mrf.mxu0 }
 0x166   : > { %v1623_v11 = vadd.f32 %v1622_v9, %v1534_v8  ;;  %v1711_v16 = vpop.f32.mrf.mxu3  ;;  %v1535_v18 = vpop.f32.mrf.mxu1  ;;  %v7352_v8 = vor.u32 %v5382_v37, %v4715_v36  ;;  %v5008_v37 = vor.u32 %v5453_v29, %v5005_v31  ;;  %v5421_v29 = vld [vmem:[%s7014_s29 + $0x94] sm:$0xf]  ;;  %v4731_v31 = vld [vmem:[%s6978_s11 + $0x168] sm:$0xf] }
 0x167   : > { %v1536_v38 = vadd.f32 %v1535_v18, %v1446_v17  ;;  %v5437_v18 = vld [vmem:[%s7014_s29 + $0x114] sm:$0xf] }
 0x168   : > { %v7336_v19 = vadd.f32 %v1711_v16, %v1623_v11  ;;  %9204 = vst [vmem:[#allocation95_spill] sm:$0xff] %v7352_v8  ;;  %v7354_v11 = vor.u32 %v5380_v39, %v4717_v41  ;;  %v4944_v30 = vor.u32 %v5437_v18, %v4941_v28  ;;  %2059 = vmatpush.bf16.msrb.mxu3 %v5008_v37  ;;  %v4725_v18 = vld [vmem:[%s6978_s11 + $0x170] sm:$0xf0]  ;;  %v4733_v37 = vld [vmem:[%s6978_s11 + $0x178] sm:$0xf0] }
 0x169   : > { %v5405_v28 = vld [vmem:[%s7014_s29 + $0x14] sm:$0xf] }
 0x16a   : > { %9201 = vst [vmem:[#allocation92_spill] sm:$0xff] %v7336_v19  ;;  %2242 = vrot.lane.b32.xlu1 %v7336_v19, %s6531_s2  ;;  %1970 = vmatpush.bf16.msrb.mxu2 %v4944_v30  ;;  %v4877_v30 = vld [vmem:[%s7014_s29 + $0x98] sm:$0xf0] }
 0x16b   : > { %9205 = vst [vmem:[#allocation96_spill] sm:$0xff] %v7354_v11 }
 0x16d   : > { %v1624_v56 = vpop.f32.mrf.mxu2  ;;  %v1449_v62 = vpop.f32.mrf.mxu0 }
 0x16e   : > { %v1625_v60 = vadd.f32 %v1624_v56, %v1536_v38  ;;  %v1713_v61 = vpop.f32.mrf.mxu3  ;;  %v1538_v9 = vpop.f32.mrf.mxu1 }
 0x16f   : > { %v1539_v17 = vadd.f32 %v1538_v9, %v1449_v62  ;;  %v5385_v62 = vld [vmem:[%s6978_s11 + $0x16c] sm:$0xf0]  ;;  %v5383_v9 = vld [vmem:[%s6978_s11 + $0x164] sm:$0xf] }
 0x170   : > { %v7356_v16 = vadd.f32 %v1713_v61, %v1625_v60  ;;  %1488 = vmatmul.bf16.gmra.mxu0 %v7348_v58  ;;  %v4723_v61 = vld [vmem:[%s6978_s11 + $0x160] sm:$0xf]  ;;  %v4880_v58 = vor.u32 %v5421_v29, %v4877_v30  ;;  %v7386_v63 = vor.u32 %v5383_v9, %v4725_v18  ;;  %v4747_v9 = vld [vmem:[%s6978_s11 + $0x188] sm:$0xf]  ;;  %v5390_v18 = vld [vmem:[%s6978_s11 + $0x194] sm:$0xf0] }
 0x171   : > { %1577 = vmatmul.bf16.gmra.mxu1 %v7350_v5  ;;  %v5384_v5 = vld [vmem:[%s6978_s11 + $0x16c] sm:$0xf] }
 0x172   : > { %9206 = vst [vmem:[#allocation97_spill] sm:$0xff] %v7356_v16  ;;  %1666 = vmatmul.bf16.gmra.mxu2 %v7352_v8  ;;  %2244 = vrot.lane.b32.xlu1 %v7356_v16, %s6531_s2  ;;  %v5388_v29 = vld [vmem:[%s6978_s11 + $0x18c] sm:$0xf] }
 0x173   : > { %1755 = vmatmul.bf16.gmra.mxu3 %v7354_v11  ;;  %9208 = vst [vmem:[#allocation99_spill] sm:$0xff] %v7386_v63  ;;  %1881 = vmatpush.bf16.msrb.mxu1 %v4880_v58 }
 0x175   : > { %v1627_v36 = vpop.f32.mrf.mxu2  ;;  %v1451_v41 = vpop.f32.mrf.mxu0 }
 0x176   : > { %v1628_v38 = vadd.f32 %v1627_v36, %v1539_v17  ;;  %v1716_v39 = vpop.f32.mrf.mxu3  ;;  %v1540_v56 = vpop.f32.mrf.mxu1  ;;  %v4813_v17 = vld [vmem:[%s7014_s29 + $0x18] sm:$0xf0]  ;;  %v5386_v36 = vld [vmem:[%s6978_s11 + $0x174] sm:$0xf0] }
 0x177   : > { %v4816_v11 = vor.u32 %v5405_v28, %v4813_v17  ;;  %v1541_v8 = vadd.f32 %v1540_v56, %v1451_v41  ;;  %v7388_v59 = vor.u32 %v5386_v36, %v4731_v31  ;;  %v7390_v28 = vor.u32 %v5384_v5, %v4733_v37  ;;  %v4749_v31 = vld [vmem:[%s6978_s11 + $0x198] sm:$0xf0] }
 0x178   : > { %v7368_v60 = vadd.f32 %v1716_v39, %v1628_v38  ;;  %v7384_v39 = vor.u32 %v5385_v62, %v4723_v61  ;;  %v5387_v61 = vld [vmem:[%s6978_s11 + $0x184] sm:$0xf]  ;;  %v4741_v62 = vld [vmem:[%s6978_s11 + $0x190] sm:$0xf0] }
 0x179   : > { %1792 = vmatpush.bf16.msrb.mxu0 %v4816_v11  ;;  %9209 = vst [vmem:[#allocation100_spill] sm:$0xff] %v7388_v59 }
 0x17a   : > { %2246 = vrot.lane.b32.xlu2 %v7368_v60, %s6531_s2  ;;  %9207 = vst [vmem:[#allocation98_spill] sm:$0xff] %v7384_v39 }
 0x17b   : > { %9210 = vst [vmem:[#allocation101_spill] sm:$0xff] %v7390_v28 }
 0x17d   : > { %v1629_v38 = vpop.f32.mrf.mxu2  ;;  %v1454_v4 = vpop.f32.mrf.mxu0 }
 0x17e   : > { %v1630_v16 = vadd.f32 %v1629_v38, %v1541_v8  ;;  %v1718_v6 = vpop.f32.mrf.mxu3  ;;  %v1543_v19 = vpop.f32.mrf.mxu1 }
 0x17f   : > { %v1544_v11 = vadd.f32 %v1543_v19, %v1454_v4  ;;  %v4739_v4 = vld [vmem:[%s6978_s11 + $0x180] sm:$0xf]  ;;  %v5389_v19 = vld [vmem:[%s6978_s11 + $0x18c] sm:$0xf0] }
 0x180   : > { %v7392_v41 = vadd.f32 %v1718_v6, %v1630_v16  ;;  %1493 = vmatmul.bf16.gmra.mxu0 %v7384_v39  ;;  %v7412_v30 = vor.u32 %v5389_v19, %v4739_v4  ;;  %v5435_v4 = vld [vmem:[%s7014_s29 + $0x104] sm:$0xf]  ;;  %v4933_v19 = vld [vmem:[%s7014_s29 + $0x108] sm:$0xf0] }
 0x181   : > { %1582 = vmatmul.bf16.gmra.mxu1 %v7386_v63 }
 0x182   : > { %1671 = vmatmul.bf16.gmra.mxu2 %v7388_v59  ;;  %2248 = vrot.lane.b32.xlu2 %v7392_v41, %s6531_s2  ;;  %9211 = vst [vmem:[#allocation102_spill] sm:$0xff] %v7412_v30 }
 0x183   : > { %1760 = vmatmul.bf16.gmra.mxu3 %v7390_v28  ;;  %v7418_v28 = vor.u32 %v5388_v29, %v4749_v31 }
 0x185   : > { %v1632_v6 = vpop.f32.mrf.mxu2  ;;  %v1456_v8 = vpop.f32.mrf.mxu0  ;;  %9214 = vst [vmem:[#allocation105_spill] sm:$0xff] %v7418_v28 }
 0x186   : > { %v1633_v58 = vadd.f32 %v1632_v6, %v1544_v11  ;;  %v1721_v5 = vpop.f32.mrf.mxu3  ;;  %v1545_v16 = vpop.f32.mrf.mxu1  ;;  %v7414_v6 = vor.u32 %v5387_v61, %v4741_v62  ;;  %v5451_v61 = vld [vmem:[%s7014_s29 + $0x184] sm:$0xf]  ;;  %v4936_v62 = vor.u32 %v5435_v4, %v4933_v19  ;;  %v4757_v19 = vld [vmem:[%s6978_s11 + $0x1b0] sm:$0xf0] }
 0x187   : > { %v1546_v17 = vadd.f32 %v1545_v16, %v1456_v8  ;;  %v5391_v4 = vld [vmem:[%s6978_s11 + $0x1a4] sm:$0xf] }
 0x188   : > { %v7400_v56 = vadd.f32 %v1721_v5, %v1633_v58  ;;  %9212 = vst [vmem:[#allocation103_spill] sm:$0xff] %v7414_v6  ;;  %v7416_v58 = vor.u32 %v5390_v18, %v4747_v9  ;;  %v4997_v9 = vld [vmem:[%s7014_s29 + $0x188] sm:$0xf0]  ;;  %1971 = vmatpush.bf16.msrb.mxu2 %v4936_v62  ;;  %v7450_v43 = vor.u32 %v5391_v4, %v4757_v19  ;;  %v5398_v4 = vld [vmem:[%s6978_s11 + $0x1d4] sm:$0xf0] }
 0x189   : > { %v4869_v62 = vld [vmem:[%s7014_s29 + $0x88] sm:$0xf0] }
 0x18a   : > { %2250 = vrot.lane.b32.xlu0 %v7400_v56, %s6531_s2  ;;  %9213 = vst [vmem:[#allocation104_spill] sm:$0xff] %v7416_v58 }
 0x18b   : > { %9216 = vst [vmem:[#allocation107_spill] sm:$0xff] %v7450_v43 }
 0x18d   : > { %v1634_v36 = vpop.f32.mrf.mxu2  ;;  %v1459_v11 = vpop.f32.mrf.mxu0 }
 0x18e   : > { %v1635_v37 = vadd.f32 %v1634_v36, %v1546_v17  ;;  %v1723_v38 = vpop.f32.mrf.mxu3  ;;  %v1548_v5 = vpop.f32.mrf.mxu1  ;;  %v5000_v17 = vor.u32 %v5451_v61, %v4997_v9  ;;  %v5403_v61 = vld [vmem:[%s7014_s29 + $0x4] sm:$0xf] }
 0x18f   : > { %v1549_v16 = vadd.f32 %v1548_v5, %v1459_v11  ;;  %v4755_v11 = vld [vmem:[%s6978_s11 + $0x1a0] sm:$0xf]  ;;  %v5393_v5 = vld [vmem:[%s6978_s11 + $0x1ac] sm:$0xf0]  ;;  %v5419_v9 = vld [vmem:[%s7014_s29 + $0x84] sm:$0xf] }
 0x190   : > { %v7420_v8 = vadd.f32 %v1723_v38, %v1635_v37  ;;  %1498 = vmatmul.bf16.gmra.mxu0 %v7412_v30  ;;  %2060 = vmatpush.bf16.msrb.mxu3 %v5000_v17  ;;  %v5392_v30 = vld [vmem:[%s6978_s11 + $0x1ac] sm:$0xf]  ;;  %v4765_v17 = vld [vmem:[%s6978_s11 + $0x1b8] sm:$0xf0]  ;;  %v4872_v59 = vor.u32 %v5419_v9, %v4869_v62 }
 0x191   : > { %1587 = vmatmul.bf16.gmra.mxu1 %v7414_v6  ;;  %v4781_v9 = vld [vmem:[%s6978_s11 + $0x1d8] sm:$0xf0] }
 0x192   : > { %1676 = vmatmul.bf16.gmra.mxu2 %v7416_v58  ;;  %2252 = vrot.lane.b32.xlu1 %v7420_v8, %s6531_s2 }
 0x193   : > { %1765 = vmatmul.bf16.gmra.mxu3 %v7418_v28  ;;  %v5394_v28 = vld [vmem:[%s6978_s11 + $0x1b4] sm:$0xf0]  ;;  %1882 = vmatpush.bf16.msrb.mxu1 %v4872_v59 }
 0x195   : > { %v1637_v18 = vpop.f32.mrf.mxu2  ;;  %v1461_v36 = vpop.f32.mrf.mxu0 }
 0x196   : > { %v1638_v29 = vadd.f32 %v1637_v18, %v1549_v16  ;;  %v1726_v31 = vpop.f32.mrf.mxu3  ;;  %v1550_v37 = vpop.f32.mrf.mxu1  ;;  %v4805_v16 = vld [vmem:[%s7014_s29 + $0x8] sm:$0xf0]  ;;  %v4763_v18 = vld [vmem:[%s6978_s11 + $0x1a8] sm:$0xf] }
 0x197   : > { %v4808_v58 = vor.u32 %v5403_v61, %v4805_v16  ;;  %v1551_v6 = vadd.f32 %v1550_v37, %v1461_v36  ;;  %v7452_v42 = vor.u32 %v5394_v28, %v4763_v18  ;;  %v7454_v61 = vor.u32 %v5392_v30, %v4765_v17  ;;  %v5395_v37 = vld [vmem:[%s6978_s11 + $0x1c4] sm:$0xf]  ;;  %v5396_v16 = vld [vmem:[%s6978_s11 + $0x1cc] sm:$0xf] }
 0x198   : > { %v7432_v38 = vadd.f32 %v1726_v31, %v1638_v29  ;;  %v7448_v31 = vor.u32 %v5393_v5, %v4755_v11  ;;  %v4773_v11 = vld [vmem:[%s6978_s11 + $0x1d0] sm:$0xf0]  ;;  %v4779_v5 = vld [vmem:[%s6978_s11 + $0x1c8] sm:$0xf] }
 0x199   : > { %1793 = vmatpush.bf16.msrb.mxu0 %v4808_v58  ;;  %9217 = vst [vmem:[#allocation108_spill] sm:$0xff] %v7452_v42 }
 0x19a   : > { %2254 = vrot.lane.b32.xlu2 %v7432_v38, %s6531_s2  ;;  %9215 = vst [vmem:[#allocation106_spill] sm:$0xff] %v7448_v31 }
 0x19b   : > { %9218 = vst [vmem:[#allocation109_spill] sm:$0xff] %v7454_v61 }
 0x19d   : > { %v1639_v29 = vpop.f32.mrf.mxu2  ;;  %v1464_v57 = vpop.f32.mrf.mxu0 }
 0x19e   : > { %v1640_v63 = vadd.f32 %v1639_v29, %v1551_v6  ;;  %v1728_v39 = vpop.f32.mrf.mxu3  ;;  %v1553_v40 = vpop.f32.mrf.mxu1 }
 0x19f   : > { %v1554_v58 = vadd.f32 %v1553_v40, %v1464_v57  ;;  %v4771_v40 = vld [vmem:[%s6978_s11 + $0x1c0] sm:$0xf]  ;;  %v5397_v57 = vld [vmem:[%s6978_s11 + $0x1cc] sm:$0xf0] }
 0x1a0   : > { %v7456_v36 = vadd.f32 %v1728_v39, %v1640_v63  ;;  %1503 = vmatmul.bf16.gmra.mxu0 %v7448_v31  ;;  %v7476_v62 = vor.u32 %v5397_v57, %v4771_v40  ;;  %v5243_v40 = vld [vmem:[%s7008_s22 + $0x170] sm:$0xf]  ;;  %v5514_v57 = vld [vmem:[%s7008_s22 + $0x174] sm:$0xf0] }
 0x1a1   : > { %1592 = vmatmul.bf16.gmra.mxu1 %v7450_v43 }
 0x1a2   : > { %1681 = vmatmul.bf16.gmra.mxu2 %v7452_v42  ;;  %2256 = vrot.lane.b32.xlu0 %v7456_v36, %s6531_s2  ;;  %9219 = vst [vmem:[#allocation110_spill] sm:$0xff] %v7476_v62 }
 0x1a3   : > { %1770 = vmatmul.bf16.gmra.mxu3 %v7454_v61  ;;  %v7482_v61 = vor.u32 %v5396_v16, %v4781_v9 }
 0x1a5   : > { %v1642_v59 = vpop.f32.mrf.mxu2  ;;  %v1466_v28 = vpop.f32.mrf.mxu0  ;;  %9222 = vst [vmem:[#allocation113_spill] sm:$0xff] %v7482_v61 }
 0x1a6   : > { %v1643_v63 = vadd.f32 %v1642_v59, %v1554_v58  ;;  %v1731_v39 = vpop.f32.mrf.mxu3  ;;  %v1555_v30 = vpop.f32.mrf.mxu1  ;;  %v7478_v59 = vor.u32 %v5395_v37, %v4773_v11  ;;  %v5307_v37 = vld [vmem:[%s7008_s22 + $0x1f0] sm:$0xf]  ;;  %v5244_v11 = vor.u32 %v5514_v57, %v5243_v40  ;;  %v5399_v40 = vld [vmem:[%s6978_s11 + $0x1e4] sm:$0xf]  ;;  %v4789_v57 = vld [vmem:[%s6978_s11 + $0x1f0] sm:$0xf0] }
 0x1a7   : > { %v1556_v19 = vadd.f32 %v1555_v30, %v1466_v28  ;;  %v7514_v23 = vor.u32 %v5399_v40, %v4789_v57  ;;  %v2146_v57 = vld [vmem:[%s6998_s23 + $0x20] sm:$0xff] }
 0x1a8   : > { %v7464_v6 = vadd.f32 %v1731_v39, %v1643_v63  ;;  %9220 = vst [vmem:[#allocation111_spill] sm:$0xff] %v7478_v59  ;;  %v7480_v63 = vor.u32 %v5398_v4, %v4779_v5  ;;  %v5530_v5 = vld [vmem:[%s7008_s22 + $0x1f4] sm:$0xf0]  ;;  %3088 = vmatpush.bf16.msra.mxu2 %v5244_v11 }
 0x1a9   : > { %v5498_v11 = vld [vmem:[%s7008_s22 + $0xf4] sm:$0xf0]  ;;  %9224 = vst [vmem:[#allocation115_spill] sm:$0xff] %v7514_v23 }
 0x1aa   : > { %2258 = vrot.lane.b32.xlu1 %v7464_v6, %s6531_s2  ;;  %9221 = vst [vmem:[#allocation112_spill] sm:$0xff] %v7480_v63 }
 0x1ad   : > { %v1644_v18 = vpop.f32.mrf.mxu2  ;;  %v1469_v58 = vpop.f32.mrf.mxu0 }
 0x1ae   : > { %v1645_v17 = vadd.f32 %v1644_v18, %v1556_v19  ;;  %v1733_v29 = vpop.f32.mrf.mxu3  ;;  %v1558_v39 = vpop.f32.mrf.mxu1  ;;  %v5308_v19 = vor.u32 %v5530_v5, %v5307_v37  ;;  %v5115_v37 = vld [vmem:[%s7008_s22 + $0x70] sm:$0xf] }
 0x1af   : > { %v1559_v30 = vadd.f32 %v1558_v39, %v1469_v58  ;;  %v4787_v58 = vld [vmem:[%s6978_s11 + $0x1e0] sm:$0xf]  ;;  %v5401_v39 = vld [vmem:[%s6978_s11 + $0x1ec] sm:$0xf0] }
 0x1b0   : > { %v7484_v28 = vadd.f32 %v1733_v29, %v1645_v17  ;;  %1508 = vmatmul.bf16.gmra.mxu0 %v7476_v62  ;;  %3177 = vmatpush.bf16.msra.mxu3 %v5308_v19  ;;  %v5179_v5 = vld [vmem:[%s7008_s22 + $0xf0] sm:$0xf]  ;;  %v5400_v62 = vld [vmem:[%s6978_s11 + $0x1ec] sm:$0xf]  ;;  %v4797_v19 = vld [vmem:[%s6978_s11 + $0x1f8] sm:$0xf0] }
 0x1b1   : > { %1597 = vmatmul.bf16.gmra.mxu1 %v7478_v59  ;;  %v5180_v42 = vor.u32 %v5498_v11, %v5179_v5  ;;  %v7518_v20 = vor.u32 %v5400_v62, %v4797_v19  ;;  %v2178_v5 = vld [vmem:[%s7005_s5 + $0x20] sm:$0xff]  ;;  %v5512_v11 = vld [vmem:[%s7008_s22 + $0x164] sm:$0xf0] }
 0x1b2   : > { %1686 = vmatmul.bf16.gmra.mxu2 %v7480_v63  ;;  %2260 = vrot.lane.b32.xlu2 %v7484_v28, %s6531_s2  ;;  %v5299_v19 = vld [vmem:[%s7008_s22 + $0x1e0] sm:$0xf] }
 0x1b3   : > { %1775 = vmatmul.bf16.gmra.mxu3 %v7482_v61  ;;  %v5402_v61 = vld [vmem:[%s6978_s11 + $0x1f4] sm:$0xf0]  ;;  %2999 = vmatpush.bf16.msra.mxu1 %v5180_v42  ;;  %9226 = vst [vmem:[#allocation117_spill] sm:$0xff] %v7518_v20 }
 0x1b5   : > { %v1647_v4 = vpop.f32.mrf.mxu2  ;;  %v1471_v18 = vpop.f32.mrf.mxu0 }
 0x1b6   : > { %v1648_v16 = vadd.f32 %v1647_v4, %v1559_v30  ;;  %v1736_v9 = vpop.f32.mrf.mxu3  ;;  %v1560_v17 = vpop.f32.mrf.mxu1  ;;  %v5482_v30 = vld [vmem:[%s7008_s22 + $0x74] sm:$0xf0]  ;;  %v4795_v4 = vld [vmem:[%s6978_s11 + $0x1e8] sm:$0xf]  ;;  %s640_s11 = sand.u32 1, %s9318_s19   ;;  %s8681_s19 = sadd.s32 %s5324_s27, %s4200_s4 }
 0x1b7   : > { %v5116_v63 = vor.u32 %v5482_v30, %v5115_v37  ;;  %v1561_v59 = vadd.f32 %v1560_v17, %v1471_v18  ;;  %v7516_v22 = vor.u32 %v5402_v61, %v4795_v4  ;;  %v5235_v4 = vld [vmem:[%s7008_s22 + $0x160] sm:$0xf]  ;;  %s4543_s26 = sshll.u32 %s640_s11, 7 }
 0x1b8   : > { %v7496_v29 = vadd.f32 %v1736_v9, %v1648_v16  ;;  %v7512_v9 = vor.u32 %v5401_v39, %v4787_v58  ;;  %s8327_s8 = scalar_lea.vmem [#allocation15], %s4543_s26 }
 0x1b9   : > { %2910 = vmatpush.bf16.msra.mxu0 %v5116_v63  ;;  %9225 = vst [vmem:[#allocation116_spill] sm:$0xff] %v7516_v22  ;;  %s4184_s11 = sshll.u32 %s8327_s8, 4  ;;  %s4185_s11 = int_to_ptr.vmem [resolvable:$true] %s4184_s11 }
 0x1ba   : > { %2262 = vrot.lane.b32.xlu0 %v7496_v29, %s6531_s2  ;;  %9223 = vst [vmem:[#allocation114_spill] sm:$0xff] %v7512_v9 }
 0x1bd   : > { %v1649_v16 = vpop.f32.mrf.mxu2  ;;  %v1474_v10 = vpop.f32.mrf.mxu0 }
 0x1be   : > { %v1650_v43 = vadd.f32 %v1649_v16, %v1561_v59  ;;  %v1738_v31 = vpop.f32.mrf.mxu3  ;;  %v1563_v21 = vpop.f32.mrf.mxu1 }
 0x1bf   : > { %v1564_v18 = vadd.f32 %v1563_v21, %v1474_v10 }
 0x1c0   : > { %v7520_v37 = vadd.f32 %v1738_v31, %v1650_v43  ;;  %1513 = vmatmul.bf16.gmra.mxu0 %v7512_v9 }
 0x1c1   : > { %1602 = vmatmul.bf16.gmra.mxu1 %v7514_v23 }
 0x1c2   : > { %1691 = vmatmul.bf16.gmra.mxu2 %v7516_v22  ;;  %2264 = vrot.lane.b32.xlu1 %v7520_v37, %s6531_s2 }
 0x1c3   : > { %1780 = vmatmul.bf16.gmra.mxu3 %v7518_v20 }
 0x1c5   : > { %v1652_v61 = vpop.f32.mrf.mxu2  ;;  %v1476_v62 = vpop.f32.mrf.mxu0 }
 0x1c6   : > { %v1653_v42 = vadd.f32 %v1652_v61, %v1564_v18  ;;  %v1741_v59 = vpop.f32.mrf.mxu3  ;;  %v1565_v43 = vpop.f32.mrf.mxu1  ;;  %v5236_v18 = vor.u32 %v5512_v11, %v5235_v4  ;;  %v5528_v61 = vld [vmem:[%s7008_s22 + $0x1e4] sm:$0xf0] }
 0x1c7   : > { %v1566_v21 = vadd.f32 %v1565_v43, %v1476_v62  ;;  %v5300_v43 = vor.u32 %v5528_v61, %v5299_v19  ;;  %v2147_v4 = vld [vmem:[%s6998_s23 + $0x28] sm:$0xff] }
 0x1c8   : > { %v7528_v31 = vadd.f32 %v1741_v59, %v1653_v42  ;;  %v2210_v42 = vmul.f32 %v2146_v57, %v7368_v60  ;;  %3089 = vmatpush.bf16.msra.mxu2 %v5236_v18  ;;  %v5107_v60 = vld [vmem:[%s7008_s22 + $0x60] sm:$0xf]  ;;  %v5480_v57 = vld [vmem:[%s7008_s22 + $0x64] sm:$0xf0] }
 0x1c9   : > { %3178 = vmatpush.bf16.msra.mxu3 %v5300_v43  ;;  %v2179_v11 = vld [vmem:[%s7005_s5 + $0x28] sm:$0xff]  ;;  %v5108_v19 = vor.u32 %v5480_v57, %v5107_v60 }
 0x1ca   : > { %2266 = vrot.lane.b32.xlu2 %v7528_v31, %s6531_s2 }
 0x1cb   : > { %2911 = vmatpush.bf16.msra.mxu0 %v5108_v19 }
 0x1cd   : > { %v1654_v10 = vpop.f32.mrf.mxu2  ;;  %v1479_v58 = vpop.f32.mrf.mxu0 }
 0x1ce   : > { %v1655_v63 = vadd.f32 %v1654_v10, %v1566_v21  ;;  %v1743_v17 = vpop.f32.mrf.mxu3  ;;  %v1568_v39 = vpop.f32.mrf.mxu1 }
 0x1cf   : > { %v1569_v30 = vadd.f32 %v1568_v39, %v1479_v58 }
 0x1d0   : > { %v7532_v40 = vadd.f32 %v1743_v17, %v1655_v63  ;;  %1794 = vmatmul.bf16.vlgmr.msrb.gmra.mxu0 %v7094_v47 }
 0x1d1   : > { %1883 = vmatmul.bf16.vlgmr.msrb.gmra.mxu1 %v7098_v51 }
 0x1d2   : > { %1972 = vmatmul.bf16.vlgmr.msrb.gmra.mxu2 %v7100_v52  ;;  %2268 = vrot.lane.b32.xlu0 %v7532_v40, %s6531_s2 }
 0x1d3   : > { %2061 = vmatmul.bf16.vlgmr.msrb.gmra.mxu3 %v7102_v53 }
 0x1d4   : > { %v2247_v16 = vpop.permute.xlu2 %2246 }
 0x1d5   : > { %v2306_v59 = vmul.f32 %v2247_v16, %v2178_v5  ;;  %v1657_v62 = vpop.f32.mrf.mxu2  ;;  %v1481_v63 = vpop.f32.mrf.mxu0  ;;  %v5171_v5 = vld [vmem:[%s7008_s22 + $0xe0] sm:$0xf]  ;;  %v5496_v16 = vld [vmem:[%s7008_s22 + $0xe4] sm:$0xf0] }
 0x1d6   : > { %v1658_v21 = vadd.f32 %v1657_v62, %v1569_v30  ;;  %v1746_v10 = vpop.f32.mrf.mxu3  ;;  %v1570_v58 = vpop.f32.mrf.mxu1  ;;  %v5172_v61 = vor.u32 %v5496_v16, %v5171_v5 }
 0x1d7   : > { %v7547_v17 = vadd.f32 %v2306_v59, %v2210_v42  ;;  %v1571_v30 = vadd.f32 %v1570_v58, %v1481_v63  ;;  %v2211_v42 = vmul.f32 %v2147_v4, %v7392_v41 }
 0x1d8   : > { %v7549_v39 = vadd.f32 %v1746_v10, %v1658_v21  ;;  %3000 = vmatpush.bf16.msra.mxu1 %v5172_v61 }
 0x1da   : > { %2270 = vrot.lane.b32.xlu1 %v7549_v39, %s6531_s2 }
 0x1dc   : > { %v2249_v62 = vpop.permute.xlu2 %2248 }
 0x1dd   : > { %v1659_v18 = vpop.f32.mrf.mxu2  ;;  %v2307_v59 = vmul.f32 %v2249_v62, %v2179_v11  ;;  %v1484_v10 = vpop.f32.mrf.mxu0 }
 0x1de   : > { %v1660_v43 = vadd.f32 %v1659_v18, %v1571_v30  ;;  %v1748_v21 = vpop.f32.mrf.mxu3  ;;  %v1573_v53 = vpop.f32.mrf.mxu1 }
 0x1df   : > { %v7560_v52 = vadd.f32 %v2307_v59, %v2211_v42  ;;  %v1574_v60 = vadd.f32 %v1573_v53, %v1484_v10  ;;  %v7572_v11 = vpop.permute.xlu0 %2238  ;;  %v2150_v42 = vld [vmem:[%s6998_s23 + $0x40] sm:$0xff]  ;;  %v5227_v10 = vld [vmem:[%s7008_s22 + $0x150] sm:$0xf] }
 0x1e0   : > { %v7562_v51 = vadd.f32 %v1748_v21, %v1660_v43  ;;  %1799 = vmatmul.bf16.gmra.mxu0 %v7124_v12  ;;  %v2182_v43 = vld [vmem:[%s7005_s5 + $0x40] sm:$0xff]  ;;  %v7583_v21 = vpop.permute.xlu1 %2242 }
 0x1e1   : > { %1888 = vmatmul.bf16.gmra.mxu1 %v7126_v13 }
 0x1e2   : > { %1977 = vmatmul.bf16.gmra.mxu2 %v7128_v14  ;;  %2272 = vrot.lane.b32.xlu2 %v7562_v51, %s6531_s2 }
 0x1e3   : > { %2066 = vmatmul.bf16.gmra.mxu3 %v7130_v15 }
 0x1e5   : > { %v1662_v41 = vpop.f32.mrf.mxu2  ;;  %v1486_v57 = vpop.f32.mrf.mxu0 }
 0x1e6   : > { %v1663_v63 = vadd.f32 %v1662_v41, %v1574_v60  ;;  %v1751_v58 = vpop.f32.mrf.mxu3  ;;  %v1575_v5 = vpop.f32.mrf.mxu1  ;;  %v5510_v60 = vld [vmem:[%s7008_s22 + $0x154] sm:$0xf0]  ;;  %v5291_v41 = vld [vmem:[%s7008_s22 + $0x1d0] sm:$0xf] }
 0x1e7   : > { %v1576_v53 = vadd.f32 %v1575_v5, %v1486_v57  ;;  %v5228_v57 = vor.u32 %v5510_v60, %v5227_v10  ;;  %v5526_v5 = vld [vmem:[%s7008_s22 + $0x1d4] sm:$0xf0]  ;;  %v2148_v10 = vld [vmem:[%s6998_s23 + $0x30] sm:$0xff] }
 0x1e8   : > { %v7570_v4 = vadd.f32 %v1751_v58, %v1663_v63  ;;  %v7591_v63 = vpop.permute.xlu0 %2240  ;;  %v2180_v60 = vld [vmem:[%s7005_s5 + $0x30] sm:$0xff] }
 0x1e9   : > { %3090 = vmatpush.bf16.msra.mxu2 %v5228_v57  ;;  %v2212_v57 = vmul.f32 %v2148_v10, %v7400_v56  ;;  %v2181_v56 = vld [vmem:[%s7005_s5 + $0x38] sm:$0xff] }
 0x1ea   : > { %2274 = vrot.lane.b32.xlu0 %v7570_v4, %s6531_s2 }
 0x1ed   : > { %v1664_v19 = vpop.f32.mrf.mxu2  ;;  %v1489_v61 = vpop.f32.mrf.mxu0 }
 0x1ee   : > { %v1665_v16 = vadd.f32 %v1664_v19, %v1576_v53  ;;  %v1753_v30 = vpop.f32.mrf.mxu3  ;;  %v1578_v62 = vpop.f32.mrf.mxu1  ;;  %v2214_v53 = vmul.f32 %v2150_v42, %v7432_v38  ;;  %v5099_v38 = vld [vmem:[%s7008_s22 + $0x50] sm:$0xf]  ;;  %v5478_v42 = vld [vmem:[%s7008_s22 + $0x54] sm:$0xf0] }
 0x1ef   : > { %v1579_v59 = vadd.f32 %v1578_v62, %v1489_v61 }
 0x1f0   : > { %v7576_v18 = vadd.f32 %v1753_v30, %v1665_v16  ;;  %1804 = vmatmul.bf16.gmra.mxu0 %v7144_v24  ;;  %v5292_v30 = vor.u32 %v5526_v5, %v5291_v41  ;;  %v5100_v41 = vor.u32 %v5478_v42, %v5099_v38 }
 0x1f1   : > { %1893 = vmatmul.bf16.gmra.mxu1 %v7146_v25 }
 0x1f2   : > { %1982 = vmatmul.bf16.gmra.mxu2 %v7148_v26  ;;  %2276 = vrot.lane.b32.xlu1 %v7576_v18, %s6531_s2 }
 0x1f3   : > { %2071 = vmatmul.bf16.gmra.mxu3 %v7150_v27  ;;  %2912 = vmatpush.bf16.msra.mxu0 %v5100_v41 }
 0x1f4   : > { %v2255_v58 = vpop.permute.xlu2 %2254  ;;  %3179 = vmatpush.bf16.msra.mxu3 %v5292_v30 }
 0x1f5   : > { %v2310_v19 = vmul.f32 %v2255_v58, %v2182_v43  ;;  %v1667_v16 = vpop.f32.mrf.mxu2  ;;  %v1491_v27 = vpop.f32.mrf.mxu0  ;;  %v5163_v43 = vld [vmem:[%s7008_s22 + $0xd0] sm:$0xf]  ;;  %v5494_v58 = vld [vmem:[%s7008_s22 + $0xd4] sm:$0xf0] }
 0x1f6   : > { %v1668_v61 = vadd.f32 %v1667_v16, %v1579_v59  ;;  %v1756_v62 = vpop.f32.mrf.mxu3  ;;  %v1580_v25 = vpop.f32.mrf.mxu1  ;;  %v5164_v16 = vor.u32 %v5494_v58, %v5163_v43 }
 0x1f7   : > { %v7595_v26 = vadd.f32 %v2310_v19, %v2214_v53  ;;  %v1581_v59 = vadd.f32 %v1580_v25, %v1491_v27  ;;  %v7608_v53 = vpop.permute.xlu1 %2244  ;;  %v2149_v27 = vld [vmem:[%s6998_s23 + $0x38] sm:$0xff] }
 0x1f8   : > { %v7597_v24 = vadd.f32 %v1756_v62, %v1668_v61  ;;  %3001 = vmatpush.bf16.msra.mxu1 %v5164_v16  ;;  %v2213_v43 = vmul.f32 %v2149_v27, %v7420_v8 }
 0x1fa   : > { %2278 = vrot.lane.b32.xlu2 %v7597_v24, %s6531_s2 }
 0x1fc   : > { %v2251_v5 = vpop.permute.xlu0 %2250 }
 0x1fd   : > { %v2308_v19 = vmul.f32 %v2251_v5, %v2180_v60  ;;  %v1669_v30 = vpop.f32.mrf.mxu2  ;;  %v1494_v15 = vpop.f32.mrf.mxu0 }
 0x1fe   : > { %v1670_v61 = vadd.f32 %v1669_v30, %v1581_v59  ;;  %v1758_v62 = vpop.f32.mrf.mxu3  ;;  %v1583_v38 = vpop.f32.mrf.mxu1  ;;  %v2185_v30 = vld [vmem:[%s7005_s5 + $0x58] sm:$0xff] }
 0x1ff   : > { %v7610_v14 = vadd.f32 %v2308_v19, %v2212_v57  ;;  %v1584_v25 = vadd.f32 %v1583_v38, %v1494_v15  ;;  %v2153_v19 = vld [vmem:[%s6998_s23 + $0x58] sm:$0xff] }
 0x200   : > { %v7612_v42 = vadd.f32 %v1758_v62, %v1670_v61  ;;  %1809 = vmatmul.bf16.gmra.mxu0 %v7172_v49  ;;  %v2217_v8 = vmul.f32 %v2153_v19, %v7484_v28  ;;  %v2183_v28 = vld [vmem:[%s7005_s5 + $0x48] sm:$0xff]  ;;  %v5283_v19 = vld [vmem:[%s7008_s22 + $0x1c0] sm:$0xf] }
 0x201   : > { %1898 = vmatmul.bf16.gmra.mxu1 %v7174_v50 }
 0x202   : > { %1987 = vmatmul.bf16.gmra.mxu2 %v7176_v54  ;;  %2280 = vrot.lane.b32.xlu0 %v7612_v42, %s6531_s2 }
 0x203   : > { %2076 = vmatmul.bf16.gmra.mxu3 %v7178_v55 }
 0x204   : > { %v2253_v10 = vpop.permute.xlu1 %2252 }
 0x205   : > { %v1672_v60 = vpop.f32.mrf.mxu2  ;;  %v2309_v41 = vmul.f32 %v2253_v10, %v2181_v56  ;;  %v1496_v59 = vpop.f32.mrf.mxu0 }
 0x206   : > { %v1673_v58 = vadd.f32 %v1672_v60, %v1584_v25  ;;  %v1761_v15 = vpop.f32.mrf.mxu3  ;;  %v1585_v5 = vpop.f32.mrf.mxu1 }
 0x207   : > { %v7623_v16 = vadd.f32 %v2309_v41, %v2213_v43  ;;  %v1586_v61 = vadd.f32 %v1585_v5, %v1496_v59  ;;  %v5219_v59 = vld [vmem:[%s7008_s22 + $0x140] sm:$0xf]  ;;  %v5508_v5 = vld [vmem:[%s7008_s22 + $0x144] sm:$0xf0] }
 0x208   : > { %v7625_v57 = vadd.f32 %v1761_v15, %v1673_v58  ;;  %v2151_v58 = vld [vmem:[%s6998_s23 + $0x48] sm:$0xff] }
 0x20a   : > { %2282 = vrot.lane.b32.xlu1 %v7625_v57, %s6531_s2 }
 0x20c   : > { %v2261_v62 = vpop.permute.xlu2 %2260 }
 0x20d   : > { %v1674_v38 = vpop.f32.mrf.mxu2  ;;  %v2313_v25 = vmul.f32 %v2261_v62, %v2185_v30  ;;  %v1499_v10 = vpop.f32.mrf.mxu0  ;;  %v5220_v30 = vor.u32 %v5508_v5, %v5219_v59  ;;  %v2152_v5 = vld [vmem:[%s6998_s23 + $0x50] sm:$0xff] }
 0x20e   : > { %v1675_v27 = vadd.f32 %v1674_v38, %v1586_v61  ;;  %v1763_v56 = vpop.f32.mrf.mxu3  ;;  %v1588_v60 = vpop.f32.mrf.mxu1  ;;  %v5524_v61 = vld [vmem:[%s7008_s22 + $0x1c4] sm:$0xf0] }
 0x20f   : > { %v7632_v43 = vadd.f32 %v2313_v25, %v2217_v8  ;;  %v1589_v15 = vadd.f32 %v1588_v60, %v1499_v10  ;;  %v5284_v8 = vor.u32 %v5524_v61, %v5283_v19  ;;  %v2215_v25 = vmul.f32 %v2151_v58, %v7456_v36  ;;  %3091 = vmatpush.bf16.msra.mxu2 %v5220_v30  ;;  %v5091_v19 = vld [vmem:[%s7008_s22 + $0x40] sm:$0xf]  ;;  %v5476_v61 = vld [vmem:[%s7008_s22 + $0x44] sm:$0xf0] }
 0x210   : > { %v7634_v41 = vadd.f32 %v1763_v56, %v1675_v27  ;;  %1814 = vmatmul.bf16.gmra.mxu0 %v7192_v0  ;;  %v5155_v36 = vld [vmem:[%s7008_s22 + $0xc0] sm:$0xf]  ;;  %v5092_v58 = vor.u32 %v5476_v61, %v5091_v19 }
 0x211   : > { %1903 = vmatmul.bf16.gmra.mxu1 %v7194_v1  ;;  %3180 = vmatpush.bf16.msra.mxu3 %v5284_v8  ;;  %v2184_v1 = vld [vmem:[%s7005_s5 + $0x50] sm:$0xff] }
 0x212   : > { %1992 = vmatmul.bf16.gmra.mxu2 %v7196_v2  ;;  %2284 = vrot.lane.b32.xlu2 %v7634_v41, %s6531_s2 }
 0x213   : > { %2081 = vmatmul.bf16.gmra.mxu3 %v7198_v3  ;;  %2913 = vmatpush.bf16.msra.mxu0 %v5092_v58 }
 0x214   : > { %v2257_v62 = vpop.permute.xlu0 %2256 }
 0x215   : > { %v1677_v38 = vpop.f32.mrf.mxu2  ;;  %v2311_v27 = vmul.f32 %v2257_v62, %v2183_v28  ;;  %v1501_v60 = vpop.f32.mrf.mxu0  ;;  %v5492_v28 = vld [vmem:[%s7008_s22 + $0xc4] sm:$0xf0] }
 0x216   : > { %v1678_v56 = vadd.f32 %v1677_v38, %v1589_v15  ;;  %v1766_v10 = vpop.f32.mrf.mxu3  ;;  %v1590_v3 = vpop.f32.mrf.mxu1  ;;  %v5156_v30 = vor.u32 %v5492_v28, %v5155_v36  ;;  %v2216_v38 = vmul.f32 %v2152_v5, %v7464_v6 }
 0x217   : > { %v7649_v2 = vadd.f32 %v2311_v27, %v2215_v25  ;;  %v1591_v15 = vadd.f32 %v1590_v3, %v1501_v60  ;;  %v2156_v3 = vld [vmem:[%s6998_s23 + $0x70] sm:$0xff] }
 0x218   : > { %v7651_v59 = vadd.f32 %v1766_v10, %v1678_v56  ;;  %3002 = vmatpush.bf16.msra.mxu1 %v5156_v30  ;;  %v2220_v5 = vmul.f32 %v2156_v3, %v7528_v31  ;;  %v2154_v30 = vld [vmem:[%s6998_s23 + $0x60] sm:$0xff] }
 0x219   : > { %v2218_v31 = vmul.f32 %v2154_v30, %v7496_v29  ;;  %v2187_v29 = vld [vmem:[%s7005_s5 + $0x68] sm:$0xff]  ;;  %v5522_v30 = vld [vmem:[%s7008_s22 + $0x1b4] sm:$0xf0] }
 0x21a   : > { %2286 = vrot.lane.b32.xlu0 %v7651_v59, %s6531_s2 }
 0x21c   : > { %v2259_v62 = vpop.permute.xlu1 %2258 }
 0x21d   : > { %v2312_v8 = vmul.f32 %v2259_v62, %v2184_v1  ;;  %v1679_v25 = vpop.f32.mrf.mxu2  ;;  %v1504_v10 = vpop.f32.mrf.mxu0  ;;  %v2188_v1 = vld [vmem:[%s7005_s5 + $0x70] sm:$0xff] }
 0x21e   : > { %v1680_v27 = vadd.f32 %v1679_v25, %v1591_v15  ;;  %v1768_v56 = vpop.f32.mrf.mxu3  ;;  %v1593_v55 = vpop.f32.mrf.mxu1 }
 0x21f   : > { %v7662_v0 = vadd.f32 %v2312_v8, %v2216_v38  ;;  %v1594_v60 = vadd.f32 %v1593_v55, %v1504_v10  ;;  %v2186_v38 = vld [vmem:[%s7005_s5 + $0x60] sm:$0xff] }
 0x220   : > { %v7664_v54 = vadd.f32 %v1768_v56, %v1680_v27  ;;  %1819 = vmatmul.bf16.gmra.mxu0 %v7220_v32  ;;  %v2192_v32 = vld [vmem:[%s7005_s5 + $0x90] sm:$0xff] }
 0x221   : > { %1908 = vmatmul.bf16.gmra.mxu1 %v7222_v33  ;;  %v2160_v33 = vld [vmem:[%s6998_s23 + $0x90] sm:$0xff] }
 0x222   : > { %1997 = vmatmul.bf16.gmra.mxu2 %v7224_v34  ;;  %2288 = vrot.lane.b32.xlu1 %v7664_v54, %s6531_s2  ;;  %v2144_v34 = vld [vmem:[%s6998_s23 + $0x10] sm:$0xff] }
 0x223   : > { %2086 = vmatmul.bf16.gmra.mxu3 %v7226_v35 }
 0x224   : > { %v2267_v6 = vpop.permute.xlu2 %2266 }
 0x225   : > { %v2316_v19 = vmul.f32 %v2267_v6, %v2188_v1  ;;  %v1682_v61 = vpop.f32.mrf.mxu2  ;;  %v1506_v55 = vpop.f32.mrf.mxu0 }
 0x226   : > { %v1683_v36 = vadd.f32 %v1682_v61, %v1594_v60  ;;  %v1771_v58 = vpop.f32.mrf.mxu3  ;;  %v1595_v15 = vpop.f32.mrf.mxu1 }
 0x227   : > { %v7675_v28 = vadd.f32 %v2316_v19, %v2220_v5  ;;  %v1596_v8 = vadd.f32 %v1595_v15, %v1506_v55  ;;  %v2155_v19 = vld [vmem:[%s6998_s23 + $0x68] sm:$0xff]  ;;  %v5275_v55 = vld [vmem:[%s7008_s22 + $0x1b0] sm:$0xf] }
 0x228   : > { %v7677_v62 = vadd.f32 %v1771_v58, %v1683_v36  ;;  %v5211_v36 = vld [vmem:[%s7008_s22 + $0x130] sm:$0xf]  ;;  %v5506_v58 = vld [vmem:[%s7008_s22 + $0x134] sm:$0xf0] }
 0x229   : > { %v5212_v15 = vor.u32 %v5506_v58, %v5211_v36  ;;  %v5083_v58 = vld [vmem:[%s7008_s22 + $0x30] sm:$0xf] }
 0x22a   : > { %2290 = vrot.lane.b32.xlu2 %v7677_v62, %s6531_s2 }
 0x22b   : > { %3092 = vmatpush.bf16.msra.mxu2 %v5212_v15 }
 0x22c   : > { %v2263_v25 = vpop.permute.xlu0 %2262 }
 0x22d   : > { %v2314_v27 = vmul.f32 %v2263_v25, %v2186_v38  ;;  %v1684_v56 = vpop.f32.mrf.mxu2  ;;  %v1509_v60 = vpop.f32.mrf.mxu0  ;;  %v5276_v25 = vor.u32 %v5522_v30, %v5275_v55  ;;  %v5147_v55 = vld [vmem:[%s7008_s22 + $0xb0] sm:$0xf]  ;;  %v2175_v30 = vld [vmem:[%s7005_s5 + $0x8] sm:$0xff] }
 0x22e   : > { %v1685_v10 = vadd.f32 %v1684_v56, %v1596_v8  ;;  %v1773_v3 = vpop.f32.mrf.mxu3  ;;  %v1598_v6 = vpop.f32.mrf.mxu1  ;;  %v2303_v15 = vmul.f32 %v7591_v63, %v2175_v30  ;;  %v9228_v30 = vld [vmem:[#allocation80_spill] sm:$0xff] }
 0x22f   : > { %v7684_v1 = vadd.f32 %v2314_v27, %v2218_v31  ;;  %v1599_v61 = vadd.f32 %v1598_v6, %v1509_v60  ;;  %v2219_v31 = vmul.f32 %v2155_v19, %v7520_v37  ;;  %3181 = vmatpush.bf16.msra.mxu3 %v5276_v25  ;;  %v5490_v37 = vld [vmem:[%s7008_s22 + $0xb4] sm:$0xf0] }
 0x230   : > { %v7686_v5 = vadd.f32 %v1773_v3, %v1685_v10  ;;  %1824 = vmatmul.bf16.gmra.mxu0 %v7240_v44  ;;  %v5148_v19 = vor.u32 %v5490_v37, %v5147_v55 }
 0x231   : > { %1913 = vmatmul.bf16.gmra.mxu1 %v7242_v45 }
 0x232   : > { %2002 = vmatmul.bf16.gmra.mxu2 %v7244_v46  ;;  %2292 = vrot.lane.b32.xlu0 %v7686_v5, %s6531_s2 }
 0x233   : > { %2091 = vmatmul.bf16.gmra.mxu3 %v7246_v48  ;;  %v5474_v48 = vld [vmem:[%s7008_s22 + $0x34] sm:$0xf0]  ;;  %3003 = vmatpush.bf16.msra.mxu1 %v5148_v19 }
 0x234   : > { %v2265_v38 = vpop.permute.xlu1 %2264  ;;  %v5084_v46 = vor.u32 %v5474_v48, %v5083_v58  ;;  %v2157_v19 = vld [vmem:[%s6998_s23 + $0x78] sm:$0xff] }
 0x235   : > { %v1687_v8 = vpop.f32.mrf.mxu2  ;;  %v2315_v27 = vmul.f32 %v2265_v38, %v2187_v29  ;;  %v1511_v3 = vpop.f32.mrf.mxu0  ;;  %v2159_v29 = vld [vmem:[%s6998_s23 + $0x88] sm:$0xff] }
 0x236   : > { %v1688_v56 = vadd.f32 %v1687_v8, %v1599_v61  ;;  %v1776_v10 = vpop.f32.mrf.mxu3  ;;  %v1600_v60 = vpop.f32.mrf.mxu1  ;;  %v2143_v61 = vld [vmem:[%s6998_s23 + $0x8] sm:$0xff]  ;;  %2914 = vmatpush.bf16.msra.mxu0 %v5084_v46  ;;  %v2223_v48 = vmul.f32 %v2159_v29, %v7562_v51  ;;  %v2189_v29 = vld [vmem:[%s7005_s5 + $0x78] sm:$0xff]  ;;  %v2158_v51 = vld [vmem:[%s6998_s23 + $0x80] sm:$0xff] }
 0x237   : > { %v7701_v6 = vadd.f32 %v2315_v27, %v2219_v31  ;;  %v2191_v38 = vld [vmem:[%s7005_s5 + $0x88] sm:$0xff]  ;;  %v1601_v8 = vadd.f32 %v1600_v60, %v1511_v3  ;;  %v2207_v27 = vmul.f32 %v2143_v61, %v7328_v7  ;;  %v9227_v3 = vld [vmem:[#allocation79_spill] sm:$0xff]  ;;  %v9230_v61 = vld [vmem:[#allocation82_spill] sm:$0xff] }
 0x238   : > { %v7703_v36 = vadd.f32 %v1776_v10, %v1688_v56  ;;  %v9229_v7 = vld [vmem:[#allocation81_spill] sm:$0xff] }
 0x239   : > { %v7718_v45 = vadd.f32 %v2303_v15, %v2207_v27 }
 0x23a   : > { %2294 = vrot.lane.b32.xlu1 %v7703_v36, %s6531_s2 }
 0x23c   : > { %v2273_v25 = vpop.permute.xlu2 %2272 }
 0x23d   : > { %v1689_v31 = vpop.f32.mrf.mxu2  ;;  %v2319_v56 = vmul.f32 %v2273_v25, %v2191_v38  ;;  %v1514_v55 = vpop.f32.mrf.mxu0 }
 0x23e   : > { %v1690_v10 = vadd.f32 %v1689_v31, %v1601_v8  ;;  %v1778_v58 = vpop.f32.mrf.mxu3  ;;  %v1603_v37 = vpop.f32.mrf.mxu1  ;;  %v2221_v8 = vmul.f32 %v2157_v19, %v7532_v40 }
 0x23f   : > { %v7720_v46 = vadd.f32 %v2319_v56, %v2223_v48  ;;  %v1604_v60 = vadd.f32 %v1603_v37, %v1514_v55  ;;  %v2142_v37 = vld [vmem:[%s6998_s23] sm:$0xff] }
 0x240   : > { %v7722_v63 = vadd.f32 %v1778_v58, %v1690_v10  ;;  %1829 = vmatmul.bf16.gmra.mxu0 %v9227_v3  ;;  %v2174_v10 = vld [vmem:[%s7005_s5] sm:$0xff] }
 0x241   : > { %1918 = vmatmul.bf16.gmra.mxu1 %v9228_v30 }
 0x242   : > { %2007 = vmatmul.bf16.gmra.mxu2 %v9229_v7  ;;  %2296 = vrot.lane.b32.xlu2 %v7722_v63, %s6531_s2  ;;  %v2302_v7 = vmul.f32 %v7572_v11, %v2174_v10  ;;  %v9234_v10 = vld [vmem:[#allocation85_spill] sm:$0xff] }
 0x243   : > { %2096 = vmatmul.bf16.gmra.mxu3 %v9230_v61  ;;  %v2190_v61 = vld [vmem:[%s7005_s5 + $0x80] sm:$0xff] }
 0x244   : > { %v2269_v38 = vpop.permute.xlu0 %2268 }
 0x245   : > { %v1692_v15 = vpop.f32.mrf.mxu2  ;;  %v2317_v25 = vmul.f32 %v2269_v38, %v2189_v29  ;;  %v1516_v48 = vpop.f32.mrf.mxu0  ;;  %v2222_v38 = vmul.f32 %v2158_v51, %v7549_v39  ;;  %v2162_v51 = vld [vmem:[%s6998_s23 + $0xa0] sm:$0xff] }
 0x246   : > { %v1693_v31 = vadd.f32 %v1692_v15, %v1604_v60  ;;  %v1781_v27 = vpop.f32.mrf.mxu3  ;;  %v1605_v56 = vpop.f32.mrf.mxu1  ;;  %v9231_v60 = vld [vmem:[#allocation87_spill] sm:$0xff] }
 0x247   : > { %v7736_v58 = vadd.f32 %v2317_v25, %v2221_v8  ;;  %v1606_v40 = vadd.f32 %v1605_v56, %v1516_v48  ;;  %v2206_v29 = vmul.f32 %v2142_v37, %v9231_v60  ;;  %v9232_v56 = vld [vmem:[#allocation83_spill] sm:$0xff]  ;;  %v2194_v37 = vld [vmem:[%s7005_s5 + $0xa0] sm:$0xff]  ;;  %v5504_v60 = vld [vmem:[%s7008_s22 + $0x124] sm:$0xf0] }
 0x248   : > { %v7738_v55 = vadd.f32 %v1781_v27, %v1693_v31 }
 0x249   : > { %v7748_v30 = vadd.f32 %v2302_v7, %v2206_v29  ;;  %v9235_v7 = vld [vmem:[#allocation86_spill] sm:$0xff]  ;;  %v5267_v29 = vld [vmem:[%s7008_s22 + $0x1a0] sm:$0xf] }
 0x24a   : > { %2298 = vrot.lane.b32.xlu0 %v7738_v55, %s6531_s2 }
 0x24c   : > { %v2271_v19 = vpop.permute.xlu1 %2270 }
 0x24d   : > { %v2318_v15 = vmul.f32 %v2271_v19, %v2190_v61  ;;  %v1694_v8 = vpop.f32.mrf.mxu2  ;;  %v1795_v27 = vpop.f32.mrf.mxu0  ;;  %v9233_v61 = vld [vmem:[#allocation84_spill] sm:$0xff] }
 0x24e   : > { %v1695_v25 = vadd.f32 %v1694_v8, %v1606_v40  ;;  %v1783_v31 = vpop.f32.mrf.mxu3  ;;  %v1884_v11 = vpop.f32.mrf.mxu1  ;;  %v5203_v19 = vld [vmem:[%s7008_s22 + $0x120] sm:$0xf] }
 0x24f   : > { %v7750_v3 = vadd.f32 %v2318_v15, %v2222_v38  ;;  %v2226_v38 = vmul.f32 %v2162_v51, %v7597_v24  ;;  %v1885_v35 = vadd.f32 %v1884_v11, %v1795_v27  ;;  %v5075_v24 = vld [vmem:[%s7008_s22 + $0x20] sm:$0xf]  ;;  %v5472_v51 = vld [vmem:[%s7008_s22 + $0x24] sm:$0xf0] }
 0x250   : > { %v7752_v48 = vadd.f32 %v1783_v31, %v1695_v25  ;;  %1834 = vmatmul.bf16.gmra.mxu0 %v9232_v56  ;;  %v5204_v25 = vor.u32 %v5504_v60, %v5203_v19  ;;  %v5520_v31 = vld [vmem:[%s7008_s22 + $0x1a4] sm:$0xf0] }
 0x251   : > { %1923 = vmatmul.bf16.gmra.mxu1 %v9233_v61  ;;  %v2176_v61 = vld [vmem:[%s7005_s5 + $0x10] sm:$0xff]  ;;  %v5488_v19 = vld [vmem:[%s7008_s22 + $0xa4] sm:$0xf0] }
 0x252   : > { %2012 = vmatmul.bf16.gmra.mxu2 %v9234_v10  ;;  %2300 = vrot.lane.b32.xlu1 %v7752_v48, %s6531_s2  ;;  %v5268_v10 = vor.u32 %v5520_v31, %v5267_v29  ;;  %v2224_v31 = vmul.f32 %v2160_v33, %v7570_v4  ;;  %v9239_v4 = vld [vmem:[#allocation89_spill] sm:$0xff] }
 0x253   : > { %2101 = vmatmul.bf16.gmra.mxu3 %v9235_v7  ;;  %3093 = vmatpush.bf16.msra.mxu2 %v5204_v25 }
 0x254   : > { %v2279_v40 = vpop.permute.xlu2 %2278  ;;  %3182 = vmatpush.bf16.msra.mxu3 %v5268_v10 }
 0x255   : > { %v2322_v15 = vmul.f32 %v2279_v40, %v2194_v37  ;;  %v1973_v8 = vpop.f32.mrf.mxu2  ;;  %v1797_v7 = vpop.f32.mrf.mxu0  ;;  %v5139_v37 = vld [vmem:[%s7008_s22 + $0xa0] sm:$0xf]  ;;  %v5076_v40 = vor.u32 %v5472_v51, %v5075_v24 }
 0x256   : > { %v2062_v39 = vpop.f32.mrf.mxu3  ;;  %v1886_v44 = vpop.f32.mrf.mxu1  ;;  %v5140_v29 = vor.u32 %v5488_v19, %v5139_v37  ;;  %v1974_v27 = vadd.f32 %v1973_v8, %v1885_v35  ;;  %v9240_v19 = vld [vmem:[#allocation90_spill] sm:$0xff] }
 0x257   : > { %v7770_v56 = vadd.f32 %v2322_v15, %v2226_v38  ;;  %v2304_v38 = vmul.f32 %v7583_v21, %v2176_v61  ;;  %2915 = vmatpush.bf16.msra.mxu0 %v5076_v40  ;;  %v1887_v11 = vadd.f32 %v1886_v44, %v1797_v7  ;;  %v9237_v15 = vld [vmem:[#allocation92_spill] sm:$0xff]  ;;  %v2177_v40 = vld [vmem:[%s7005_s5 + $0x18] sm:$0xff] }
 0x258   : > { %3004 = vmatpush.bf16.msra.mxu1 %v5140_v29  ;;  %v2208_v25 = vmul.f32 %v2144_v34, %v9237_v15  ;;  %v2063_v7 = vadd.f32 %v2062_v39, %v1974_v27  ;;  %v9238_v34 = vld [vmem:[#allocation88_spill] sm:$0xff]  ;;  %v2145_v29 = vld [vmem:[%s6998_s23 + $0x18] sm:$0xff]  ;;  %v2305_v15 = vmul.f32 %v7608_v53, %v2177_v40  ;;  %v9242_v27 = vld [vmem:[#allocation97_spill] sm:$0xff]  ;;  %v9243_v40 = vpack.i.bf16 %v7750_v3, %v7748_v30 }
 0x25a   : > { %v7788_v37 = vadd.f32 %v2304_v38, %v2208_v25  ;;  %v9241_v38 = vld [vmem:[#allocation91_spill] sm:$0xff]  ;;  %v2209_v25 = vmul.f32 %v2145_v29, %v9242_v27 }
 0x25b   : > { %v2197_v29 = vld [vmem:[%s7005_s5 + $0xb8] sm:$0xff] }
 0x25c   : > { %v2275_v10 = vpop.permute.xlu0 %2274 }
 0x25d   : > { %v2320_v24 = vmul.f32 %v2275_v10, %v2192_v32  ;;  %v1975_v51 = vpop.f32.mrf.mxu2  ;;  %v1800_v61 = vpop.f32.mrf.mxu0  ;;  %v2193_v10 = vld [vmem:[%s7005_s5 + $0x98] sm:$0xff] }
 0x25e   : > { %v1976_v60 = vadd.f32 %v1975_v51, %v1887_v11  ;;  %v2064_v21 = vpop.f32.mrf.mxu3  ;;  %v1889_v44 = vpop.f32.mrf.mxu1  ;;  %v2161_v11 = vld [vmem:[%s6998_s23 + $0x98] sm:$0xff] }
 0x25f   : > { %v7790_v35 = vadd.f32 %v2320_v24, %v2224_v31  ;;  %v2225_v31 = vmul.f32 %v2161_v11, %v7576_v18  ;;  %v1890_v32 = vadd.f32 %v1889_v44, %v1800_v61 }
 0x260   : > { %v2065_v8 = vadd.f32 %v2064_v21, %v1976_v60  ;;  %1839 = vmatmul.bf16.gmra.mxu0 %v9238_v34 }
 0x261   : > { %1928 = vmatmul.bf16.gmra.mxu1 %v9239_v4 }
 0x262   : > { %v5537_v33 = vpack.c.bf16 %v2065_v8, %v2063_v7  ;;  %2017 = vmatmul.bf16.gmra.mxu2 %v9240_v19  ;;  %v7808_v8 = vadd.f32 %v2305_v15, %v2209_v25 }
 0x263   : > { %2106 = vmatmul.bf16.gmra.mxu3 %v9241_v38  ;;  %v2165_v38 = vld [vmem:[%s6998_s23 + $0xb8] sm:$0xff] }
 0x264   : > { %5538 = vst [vmem:[%s7803_s30] sm:$0xff] %v5537_v33   ;;  %v2277_v39 = vpop.permute.xlu1 %2276  ;;  %v2229_v15 = vmul.f32 %v2165_v38, %v7634_v41  ;;  %v9246_v38 = vld [vmem:[#allocation94_spill] sm:$0xff] }
 0x265   : > { %v1978_v60 = vpop.f32.mrf.mxu2  ;;  %v2321_v24 = vmul.f32 %v2277_v39, %v2193_v10  ;;  %v1802_v21 = vpop.f32.mrf.mxu0  ;;  %v5067_v33 = vld [vmem:[%s7008_s22 + $0x10] sm:$0xf] }
 0x266   : > { %v2067_v51 = vpop.f32.mrf.mxu3  ;;  %v1891_v7 = vpop.f32.mrf.mxu1  ;;  %v1979_v27 = vadd.f32 %v1978_v60, %v1890_v32  ;;  %v9244_v32 = vpack.i.bf16 %v7720_v46, %v7718_v45  ;;  %v9245_v60 = vld [vmem:[#allocation93_spill] sm:$0xff]  ;;  %v5502_v45 = vld [vmem:[%s7008_s22 + $0x114] sm:$0xf0] }
 0x267   : > { %v7810_v53 = vadd.f32 %v2321_v24, %v2225_v31  ;;  %v1892_v18 = vadd.f32 %v1891_v7, %v1802_v21  ;;  %v9247_v21 = vld [vmem:[#allocation95_spill] sm:$0xff] }
 0x268   : > { %5870 = vxpose.xlu2.b32.start [1/16] %v9243_v40, 128  ;;  %v2068_v25 = vadd.f32 %v2067_v51, %v1979_v27  ;;  %v2163_v51 = vld [vmem:[%s6998_s23 + $0xa8] sm:$0xff]  ;;  %v9248_v40 = vld [vmem:[#allocation96_spill] sm:$0xff]  ;;  %v5195_v27 = vld [vmem:[%s7008_s22 + $0x110] sm:$0xf] }
 0x26c   : > { %v2285_v11 = vpop.permute.xlu2 %2284 }
 0x26d   : > { %v1980_v10 = vpop.f32.mrf.mxu2  ;;  %v2325_v39 = vmul.f32 %v2285_v11, %v2197_v29  ;;  %v1805_v3 = vpop.f32.mrf.mxu0  ;;  %v2195_v29 = vld [vmem:[%s7005_s5 + $0xa8] sm:$0xff]  ;;  %v5196_v11 = vor.u32 %v5502_v45, %v5195_v27  ;;  %v5131_v27 = vld [vmem:[%s7008_s22 + $0x90] sm:$0xf]  ;;  %v9249_v45 = vpack.i.bf16 %v7790_v35, %v7788_v37 }
 0x26e   : > { %v1981_v61 = vadd.f32 %v1980_v10, %v1892_v18  ;;  %v2069_v44 = vpop.f32.mrf.mxu3  ;;  %v1894_v30 = vpop.f32.mrf.mxu1  ;;  %v5259_v10 = vld [vmem:[%s7008_s22 + $0x190] sm:$0xf] }
 0x26f   : > { %v7820_v31 = vadd.f32 %v2325_v39, %v2229_v15  ;;  %v5518_v15 = vld [vmem:[%s7008_s22 + $0x194] sm:$0xf0]  ;;  %v2227_v39 = vmul.f32 %v2163_v51, %v7612_v42  ;;  %3094 = vmatpush.bf16.msra.mxu2 %v5196_v11 }
 0x270   : > { %v2070_v24 = vadd.f32 %v2069_v44, %v1981_v61  ;;  %5872 = vxpose.xlu2.b32.cont [2/16] %v9244_v32, 128  ;;  %1844 = vmatmul.bf16.gmra.mxu0 %v9245_v60  ;;  %v5486_v51 = vld [vmem:[%s7008_s22 + $0x94] sm:$0xf0] }
 0x271   : > { %1933 = vmatmul.bf16.gmra.mxu1 %v9246_v38 }
 0x272   : > { %v5542_v41 = vpack.c.bf16 %v2070_v24, %v2068_v25  ;;  %2022 = vmatmul.bf16.gmra.mxu2 %v9247_v21  ;;  %v5260_v24 = vor.u32 %v5518_v15, %v5259_v10  ;;  %v5132_v15 = vor.u32 %v5486_v51, %v5131_v27  ;;  %v9252_v27 = vld [vmem:[#allocation99_spill] sm:$0xff]  ;;  %v2200_v51 = vld [vmem:[%s7005_s5 + $0xd0] sm:$0xff] }
 0x273   : > { %2111 = vmatmul.bf16.gmra.mxu3 %v9248_v40  ;;  %v5470_v40 = vld [vmem:[%s7008_s22 + $0x14] sm:$0xf0] }
 0x274   : > { %5614 = vst [vmem:[%s7803_s30 + $0x8] sm:$0xff] %v5542_v41   ;;  %v2281_v46 = vpop.permute.xlu0 %2280  ;;  %v1895_v41 = vadd.f32 %v1894_v30, %v1805_v3  ;;  %3183 = vmatpush.bf16.msra.mxu3 %v5260_v24  ;;  %v5068_v42 = vor.u32 %v5470_v40, %v5067_v33  ;;  %3005 = vmatpush.bf16.msra.mxu1 %v5132_v15 }
 0x275   : > { %v1983_v18 = vpop.f32.mrf.mxu2  ;;  %v2323_v61 = vmul.f32 %v2281_v46, %v2195_v29  ;;  %v1807_v25 = vpop.f32.mrf.mxu0  ;;  %v2164_v29 = vld [vmem:[%s6998_s23 + $0xb0] sm:$0xff] }
 0x276   : > { %v2072_v44 = vpop.f32.mrf.mxu3  ;;  %v1896_v32 = vpop.f32.mrf.mxu1  ;;  %v2196_v46 = vld [vmem:[%s7005_s5 + $0xb0] sm:$0xff]  ;;  %2916 = vmatpush.bf16.msra.mxu0 %v5068_v42  ;;  %v1984_v3 = vadd.f32 %v1983_v18, %v1895_v41  ;;  %v9250_v18 = vpack.i.bf16 %v7810_v53, %v7808_v8  ;;  %v9253_v42 = vld [vmem:[#allocation100_spill] sm:$0xff] }
 0x277   : > { %v7839_v7 = vadd.f32 %v2323_v61, %v2227_v39  ;;  %v1897_v30 = vadd.f32 %v1896_v32, %v1807_v25  ;;  %v2228_v39 = vmul.f32 %v2164_v29, %v7625_v57  ;;  %v9251_v25 = vld [vmem:[#allocation98_spill] sm:$0xff]  ;;  %v5468_v57 = vld [vmem:[%s7008_s22 + $0x4] sm:$0xf0] }
 0x278   : > { %5874 = vxpose.xlu2.b32.cont [3/16] %v9249_v45, 128  ;;  %v2168_v32 = vld [vmem:[%s6998_s23 + $0xd0] sm:$0xff] }
 0x279   : > { %v5879_v10 = vpack.i.bf16 %v7839_v7, %v7560_v52  ;;  %v2073_v52 = vadd.f32 %v2072_v44, %v1984_v3  ;;  %v9254_v44 = vld [vmem:[#allocation101_spill] sm:$0xff]  ;;  %v2232_v8 = vmul.f32 %v2168_v32, %v7677_v62 }
 0x27c   : > { %v2283_v11 = vpop.permute.xlu1 %2282 }
 0x27d   : > { %v2324_v61 = vmul.f32 %v2283_v11, %v2196_v46  ;;  %v1985_v37 = vpop.f32.mrf.mxu2  ;;  %v1810_v40 = vpop.f32.mrf.mxu0 }
 0x27e   : > { %v1986_v35 = vadd.f32 %v1985_v37, %v1897_v30  ;;  %v2074_v33 = vpop.f32.mrf.mxu3  ;;  %v1899_v45 = vpop.f32.mrf.mxu1 }
 0x27f   : > { %v7853_v24 = vadd.f32 %v2324_v61, %v2228_v39  ;;  %v1900_v39 = vadd.f32 %v1899_v45, %v1810_v40  ;;  %v9255_v61 = vpack.i.bf16 %v7770_v56, %v7547_v17 }
 0x280   : > { %v2075_v7 = vadd.f32 %v2074_v33, %v1986_v35  ;;  %5876 = vxpose.xlu2.b32.cont [4/16] %v9250_v18, 128  ;;  %1849 = vmatmul.bf16.gmra.mxu0 %v9251_v25  ;;  %v2166_v35 = vld [vmem:[%s6998_s23 + $0xc0] sm:$0xff] }
 0x281   : > { %1938 = vmatmul.bf16.gmra.mxu1 %v9252_v27  ;;  %v2198_v33 = vld [vmem:[%s7005_s5 + $0xc0] sm:$0xff]  ;;  %v2230_v18 = vmul.f32 %v2166_v35, %v7651_v59  ;;  %v2199_v35 = vld [vmem:[%s7005_s5 + $0xc8] sm:$0xff] }
 0x282   : > { %v5547_v41 = vpack.c.bf16 %v2075_v7, %v2073_v52  ;;  %2027 = vmatmul.bf16.gmra.mxu2 %v9253_v42  ;;  %v5059_v59 = vld [vmem:[%s7008_s22] sm:$0xf] }
 0x283   : > { %2116 = vmatmul.bf16.gmra.mxu3 %v9254_v44 }
 0x284   : > { %5615 = vst [vmem:[%s7803_s30 + $0x10] sm:$0xff] %v5547_v41   ;;  %v2291_v29 = vpop.permute.xlu2 %2290 }
 0x285   : > { %v2328_v53 = vmul.f32 %v2291_v29, %v2200_v51  ;;  %v1988_v46 = vpop.f32.mrf.mxu2  ;;  %v1812_v3 = vpop.f32.mrf.mxu0 }
 0x286   : > { %v2077_v15 = vpop.f32.mrf.mxu3  ;;  %v1901_v11 = vpop.f32.mrf.mxu1  ;;  %v1989_v52 = vadd.f32 %v1988_v46, %v1900_v39  ;;  %v2167_v39 = vld [vmem:[%s6998_s23 + $0xc8] sm:$0xff] }
 0x287   : > { %v7868_v30 = vadd.f32 %v2328_v53, %v2232_v8  ;;  %v1902_v7 = vadd.f32 %v1901_v11, %v1812_v3  ;;  %v9256_v53 = vld [vmem:[#allocation102_spill] sm:$0xff]  ;;  %v9257_v3 = vld [vmem:[#allocation103_spill] sm:$0xff]  ;;  %v9258_v11 = vld [vmem:[#allocation104_spill] sm:$0xff] }
 0x288   : > { %5878 = vxpose.xlu2.b32.cont [5/16] %v9255_v61, 128  ;;  %v2078_v29 = vadd.f32 %v2077_v15, %v1989_v52  ;;  %v9259_v61 = vld [vmem:[#allocation105_spill] sm:$0xff]  ;;  %v5187_v15 = vld [vmem:[%s7008_s22 + $0x100] sm:$0xf] }
 0x28c   : > { %v2287_v62 = vpop.permute.xlu0 %2286 }
 0x28d   : > { %v2326_v32 = vmul.f32 %v2287_v62, %v2198_v33  ;;  %v1990_v41 = vpop.f32.mrf.mxu2  ;;  %v1815_v17 = vpop.f32.mrf.mxu0  ;;  %v5500_v33 = vld [vmem:[%s7008_s22 + $0x104] sm:$0xf0]  ;;  %v5251_v62 = vld [vmem:[%s7008_s22 + $0x180] sm:$0xf] }
 0x28e   : > { %v1991_v51 = vadd.f32 %v1990_v41, %v1902_v7  ;;  %v2079_v40 = vpop.f32.mrf.mxu3  ;;  %v1904_v45 = vpop.f32.mrf.mxu1  ;;  %v5188_v7 = vor.u32 %v5500_v33, %v5187_v15  ;;  %v5123_v15 = vld [vmem:[%s7008_s22 + $0x80] sm:$0xf]  ;;  %v9260_v33 = vpack.i.bf16 %v7853_v24, %v7610_v14 }
 0x28f   : > { %v7878_v56 = vadd.f32 %v2326_v32, %v2230_v18  ;;  %v5516_v18 = vld [vmem:[%s7008_s22 + $0x184] sm:$0xf0]  ;;  %v2231_v32 = vmul.f32 %v2167_v39, %v7664_v54  ;;  %v5060_v54 = vor.u32 %v5468_v57, %v5059_v59 }
 0x290   : > { %v2080_v8 = vadd.f32 %v2079_v40, %v1991_v51  ;;  %5880 = vxpose.xlu2.b32.cont [6/16] %v5879_v10, 128  ;;  %1854 = vmatmul.bf16.gmra.mxu0 %v9256_v53  ;;  %v5484_v39 = vld [vmem:[%s7008_s22 + $0x84] sm:$0xf0] }
 0x291   : > { %1943 = vmatmul.bf16.gmra.mxu1 %v9257_v3  ;;  %3095 = vmatpush.bf16.msra.mxu2 %v5188_v7 }
 0x292   : > { %v5552_v46 = vpack.c.bf16 %v2080_v8, %v2078_v29  ;;  %2032 = vmatmul.bf16.gmra.mxu2 %v9258_v11  ;;  %v5252_v29 = vor.u32 %v5516_v18, %v5251_v62  ;;  %v2171_v62 = vld [vmem:[%s6998_s23 + $0xe8] sm:$0xff]  ;;  %2917 = vmatpush.bf16.msra.mxu0 %v5060_v54 }
 0x293   : > { %2121 = vmatmul.bf16.gmra.mxu3 %v9259_v61  ;;  %v2203_v18 = vld [vmem:[%s7005_s5 + $0xe8] sm:$0xff] }
 0x294   : > { %5616 = vst [vmem:[%s7803_s30 + $0x18] sm:$0xff] %v5552_v46   ;;  %v2289_v10 = vpop.permute.xlu1 %2288  ;;  %v1905_v46 = vadd.f32 %v1904_v45, %v1815_v17  ;;  %3184 = vmatpush.bf16.msra.mxu3 %v5252_v29  ;;  %v9265_v54 = vld [vmem:[#allocation109_spill] sm:$0xff] }
 0x295   : > { %v1993_v52 = vpop.f32.mrf.mxu2  ;;  %v2327_v41 = vmul.f32 %v2289_v10, %v2199_v35  ;;  %v1817_v40 = vpop.f32.mrf.mxu0  ;;  %v5124_v10 = vor.u32 %v5484_v39, %v5123_v15  ;;  %v2201_v39 = vld [vmem:[%s7005_s5 + $0xd8] sm:$0xff] }
 0x296   : > { %v2082_v51 = vpop.f32.mrf.mxu3  ;;  %v1906_v8 = vpop.f32.mrf.mxu1  ;;  %v1994_v17 = vadd.f32 %v1993_v52, %v1905_v46  ;;  %v9261_v52 = vpack.i.bf16 %v7820_v31, %v7623_v16  ;;  %v9263_v46 = vld [vmem:[#allocation107_spill] sm:$0xff] }
 0x297   : > { %v7894_v37 = vadd.f32 %v2327_v41, %v2231_v32  ;;  %v1907_v45 = vadd.f32 %v1906_v8, %v1817_v40  ;;  %3006 = vmatpush.bf16.msra.mxu1 %v5124_v10  ;;  %v2235_v41 = vmul.f32 %v2171_v62, %v7722_v63  ;;  %v9262_v40 = vld [vmem:[#allocation106_spill] sm:$0xff]  ;;  %v9264_v63 = vld [vmem:[#allocation108_spill] sm:$0xff] }
 0x298   : > { %5882 = vxpose.xlu2.b32.cont [7/16] %v9260_v33, 128 }
 0x299   : > { %v5887_v35 = vpack.i.bf16 %v7894_v37, %v7649_v2  ;;  %v2083_v2 = vadd.f32 %v2082_v51, %v1994_v17  ;;  %v2169_v51 = vld [vmem:[%s6998_s23 + $0xd8] sm:$0xff] }
 0x29a   : > { %v2233_v31 = vmul.f32 %v2169_v51, %v7686_v5 }
 0x29c   : > { %v2297_v7 = vpop.permute.xlu2 %2296 }
 0x29d   : > { %v1995_v32 = vpop.f32.mrf.mxu2  ;;  %v2331_v29 = vmul.f32 %v2297_v7, %v2203_v18  ;;  %v1820_v57 = vpop.f32.mrf.mxu0 }
 0x29e   : > { %v1996_v14 = vadd.f32 %v1995_v32, %v1907_v45  ;;  %v2084_v24 = vpop.f32.mrf.mxu3  ;;  %v1909_v59 = vpop.f32.mrf.mxu1 }
 0x29f   : > { %v7908_v37 = vadd.f32 %v2331_v29, %v2235_v41  ;;  %v1910_v7 = vadd.f32 %v1909_v59, %v1820_v57  ;;  %v9266_v41 = vpack.i.bf16 %v7878_v56, %v7595_v26  ;;  %v2170_v29 = vld [vmem:[%s6998_s23 + $0xe0] sm:$0xff] }
 0x2a0   : > { %v2085_v15 = vadd.f32 %v2084_v24, %v1996_v14  ;;  %5884 = vxpose.xlu2.b32.cont [8/16] %v9261_v52, 128  ;;  %1859 = vmatmul.bf16.gmra.mxu0 %v9262_v40  ;;  %v2202_v14 = vld [vmem:[%s7005_s5 + $0xe0] sm:$0xff]  ;;  %v2234_v5 = vmul.f32 %v2170_v29, %v7703_v36 }
 0x2a1   : > { %1948 = vmatmul.bf16.gmra.mxu1 %v9263_v46  ;;  %v5895_v33 = vpack.i.bf16 %v7908_v37, %v7701_v6  ;;  %v5527_v6 = vld [vmem:[%s7008_s22 + $0x1e4] sm:$0xf]  ;;  %v5301_v37 = vld [vmem:[%s7008_s22 + $0x1e8] sm:$0xf0] }
 0x2a2   : > { %v5557_v8 = vpack.c.bf16 %v2085_v15, %v2083_v2  ;;  %2037 = vmatmul.bf16.gmra.mxu2 %v9264_v63 }
 0x2a3   : > { %2126 = vmatmul.bf16.gmra.mxu3 %v9265_v54 }
 0x2a4   : > { %5617 = vst [vmem:[%s7803_s30 + $0x20] sm:$0xff] %v5557_v8   ;;  %v2293_v10 = vpop.permute.xlu0 %2292 }
 0x2a5   : > { %v1998_v16 = vpop.f32.mrf.mxu2  ;;  %v2329_v62 = vmul.f32 %v2293_v10, %v2201_v39  ;;  %v1822_v17 = vpop.f32.mrf.mxu0 }
 0x2a6   : > { %v2087_v18 = vpop.f32.mrf.mxu3  ;;  %v1911_v45 = vpop.f32.mrf.mxu1  ;;  %v1999_v2 = vadd.f32 %v1998_v16, %v1910_v7  ;;  %v9267_v16 = vld [vmem:[#allocation110_spill] sm:$0xff] }
 0x2a7   : > { %v7923_v32 = vadd.f32 %v2329_v62, %v2233_v31  ;;  %v1912_v15 = vadd.f32 %v1911_v45, %v1822_v17  ;;  %v9268_v62 = vld [vmem:[#allocation111_spill] sm:$0xff]  ;;  %v9269_v17 = vld [vmem:[#allocation112_spill] sm:$0xff]  ;;  %v9270_v45 = vld [vmem:[#allocation113_spill] sm:$0xff] }
 0x2a8   : > { %5886 = vxpose.xlu2.b32.cont [9/16] %v9266_v41, 128  ;;  %v2088_v10 = vadd.f32 %v2087_v18, %v1999_v2  ;;  %v5513_v7 = vld [vmem:[%s7008_s22 + $0x174] sm:$0xf]  ;;  %v5245_v18 = vld [vmem:[%s7008_s22 + $0x178] sm:$0xf0] }
 0x2a9   : > { %v5891_v24 = vpack.i.bf16 %v7923_v32, %v7632_v43  ;;  %v5529_v41 = vld [vmem:[%s7008_s22 + $0x1f4] sm:$0xf] }
 0x2ac   : > { %v2295_v52 = vpop.permute.xlu1 %2294 }
 0x2ad   : > { %v2330_v8 = vmul.f32 %v2295_v52, %v2202_v14  ;;  %v2000_v51 = vpop.f32.mrf.mxu2  ;;  %v1825_v39 = vpop.f32.mrf.mxu0 }
 0x2ae   : > { %v2001_v57 = vadd.f32 %v2000_v51, %v1912_v15  ;;  %v2089_v59 = vpop.f32.mrf.mxu3  ;;  %v1914_v56 = vpop.f32.mrf.mxu1  ;;  %v5497_v51 = vld [vmem:[%s7008_s22 + $0xf4] sm:$0xf] }
 0x2af   : > { %v7933_v26 = vadd.f32 %v2330_v8, %v2234_v5  ;;  %v1915_v52 = vadd.f32 %v1914_v56, %v1825_v39  ;;  %v5481_v5 = vld [vmem:[%s7008_s22 + $0x74] sm:$0xf]  ;;  %v5117_v8 = vld [vmem:[%s7008_s22 + $0x78] sm:$0xf0] }
 0x2b0   : > { %v2090_v43 = vadd.f32 %v2089_v59, %v2001_v57  ;;  %5888 = vxpose.xlu2.b32.cont [10/16] %v5887_v35, 128  ;;  %1864 = vmatmul.bf16.gmra.mxu0 %v9267_v16  ;;  %v5248_v35 = vor.u32 %v5513_v7, %v5245_v18  ;;  %v9271_v57 = vpack.i.bf16 %v7868_v30, %v7662_v0 }
 0x2b1   : > { %v5893_v36 = vpack.i.bf16 %v7933_v26, %v7684_v1  ;;  %1953 = vmatmul.bf16.gmra.mxu1 %v9268_v62  ;;  %v5309_v1 = vld [vmem:[%s7008_s22 + $0x1f8] sm:$0xf0]  ;;  %v5120_v59 = vor.u32 %v5481_v5, %v5117_v8 }
 0x2b2   : > { %v5562_v31 = vpack.c.bf16 %v2090_v43, %v2088_v10  ;;  %2042 = vmatmul.bf16.gmra.mxu2 %v9269_v17  ;;  %v5312_v2 = vor.u32 %v5529_v41, %v5309_v1  ;;  %v5181_v26 = vld [vmem:[%s7008_s22 + $0xf8] sm:$0xf0]  ;;  %v2172_v10 = vld [vmem:[%s6998_s23 + $0xf0] sm:$0xff] }
 0x2b3   : > { %2131 = vmatmul.bf16.gmra.mxu3 %v9270_v45  ;;  %3444 = vmatpush.bf16.msrb.mxu2 %v5248_v35  ;;  %v2204_v43 = vld [vmem:[%s7005_s5 + $0xf0] sm:$0xff]  ;;  %v2236_v39 = vmul.f32 %v2172_v10, %v7738_v55  ;;  %v2173_v55 = vld [vmem:[%s6998_s23 + $0xf8] sm:$0xff]  ;;  %s5532_s23 = sshll.u32 %s9339_s10, 7 }
 0x2b4   : > { %5618 = vst [vmem:[%s7803_s30 + $0x28] sm:$0xff] %v5562_v31   ;;  %3533 = vmatpush.bf16.msrb.mxu3 %v5312_v2  ;;  %v5184_v31 = vor.u32 %v5497_v51, %v5181_v26  ;;  %3266 = vmatpush.bf16.msrb.mxu0 %v5120_v59  ;;  %s4179_s9 = sadd.s32 %s5532_s23, %s5322_s17  ;;  %s4140_s17 = scalar_lea.sflag [#allocation16], %s6985_s21 }
 0x2b5   : > { %v2003_v32 = vpop.f32.mrf.mxu2  ;;  %v1827_v14 = vpop.f32.mrf.mxu0  ;;  %s4181_s16 = sadd.s32 %s5324_s27, %s4179_s9 }
 0x2b6   : > { %v2092_v29 = vpop.f32.mrf.mxu3  ;;  %v1916_v15 = vpop.f32.mrf.mxu1  ;;  %v2004_v7 = vadd.f32 %v2003_v32, %v1915_v52  ;;  %3355 = vmatpush.bf16.msrb.mxu1 %v5184_v31 }
 0x2b7   : > { %v1917_v18 = vadd.f32 %v1916_v15, %v1827_v14  ;;  %v2205_v15 = vld [vmem:[%s7005_s5 + $0xf8] sm:$0xff]  ;;  %s5325_s5 = sshll.u32 %s4181_s16, 2  ;;  %s6259_s16 = scalar_lea.hbm %s9342_s0, 2048 }
 0x2b8   : > { %5890 = vxpose.xlu2.b32.cont [11/16] %v9271_v57, 128  ;;  %v2093_v8 = vadd.f32 %v2092_v29, %v2004_v7  ;;  %v2237_v29 = vmul.f32 %v2173_v55, %v7752_v48  ;;  %s4183_s20 = scalar_lea.hbm %s9341_s15, %s5325_s5 }
 0x2b9   : > { %s4186_s26 = sshll.u32 %s4183_s20, 4  ;;  %s4187_s26 = int_to_ptr.hbm [resolvable:$true] %s4186_s26 }
 0x2ba   : > { %s6253_s23 = sshra.s32 %s4187_s26, 4  ;;  %s6254_s23 = int_to_ptr.hbm [resolvable:$true] %s6253_s23 }
 0x2bb   : > { %s6255_s9 = scalar_lea.hbm %s6254_s23, 128  ;;  %p6260_p3 = scmp.lt.s32.totalorder %s6254_s23, %s9342_s0 }
 0x2bc   : > { %v2299_v41 = vpop.permute.xlu0 %2298  ;;  %p6256_p12 = scmp.ne.s32.totalorder %s6254_s23, %s6255_s9  ;;  %p6261_p4 = scmp.lt.s32.totalorder %s6259_s16, %s6255_s9 }
 0x2bd   : > { %v2332_v56 = vmul.f32 %v2299_v41, %v2204_v43  ;;  %v2005_v35 = vpop.f32.mrf.mxu2  ;;  %v1830_v30 = vpop.f32.mrf.mxu0 }
 0x2be   : > { %v2006_v1 = vadd.f32 %v2005_v35, %v1917_v18  ;;  %v2094_v0 = vpop.f32.mrf.mxu3  ;;  %v1919_v5 = vpop.f32.mrf.mxu1  ;;  %p6257_p0 = pnand %p6256_p12, %p6920_p8  ;;  %p6262_p7 = por %p6261_p4, %p6260_p3 }
 0x2bf   : > { %v2364_v2 = vadd.f32 %v2332_v56, %v2236_v39  ;;  %v1920_v43 = vadd.f32 %v1919_v5, %v1830_v30  ;;  %v9273_v30 = vld [vmem:[#allocation57_spill] sm:$0xff]  ;;  %v5511_v5 = vld [vmem:[%s7008_s22 + $0x164] sm:$0xf] }
 0x2c0   : > { %v2095_v57 = vadd.f32 %v2094_v0, %v2006_v1  ;;  %5892 = vxpose.xlu2.b32.cont [12/16] %v5891_v24, 128  ;;  %1869 = vmatmul.bf16.gmra.mxu0 %v7512_v9  ;;  %p6258_p6 = pneg %p6257_p0 }
 0x2c1   : > { %v5897_v32 = vpack.i.bf16 %v2364_v2, %v7675_v28  ;;  %1958 = vmatmul.bf16.gmra.mxu1 %v7514_v23  ;;  %v9274_v2 = vld [vmem:[#allocation58_spill] sm:$0xff] }
 0x2c2   : > { %v5567_v14 = vpack.c.bf16 %v2095_v57, %v2093_v8  ;;  %2047 = vmatmul.bf16.gmra.mxu2 %v7516_v22  ;;  %v5237_v8 = vld [vmem:[%s7008_s22 + $0x168] sm:$0xf0]  ;;  %p6263_p2 = pnand %p6262_p7, %p6258_p6 }
 0x2c3   : > { %2136 = vmatmul.bf16.gmra.mxu3 %v7518_v20 }
 0x2c4   : > { %5619 = vst [vmem:[%s7803_s30 + $0x30] sm:$0xff] %v5567_v14   ;;  %v2301_v52 = vpop.permute.xlu1 %2300  ;;  %v5240_v14 = vor.u32 %v5511_v5, %v5237_v8 }
 0x2c5   : > { %v2008_v51 = vpop.f32.mrf.mxu2  ;;  %v2333_v59 = vmul.f32 %v2301_v52, %v2205_v15  ;;  %v1832_v26 = vpop.f32.mrf.mxu0  ;;  %v5304_v15 = vor.u32 %v5527_v6, %v5301_v37 }
 0x2c6   : > { %v2097_v24 = vpop.f32.mrf.mxu3  ;;  %v1921_v10 = vpop.f32.mrf.mxu1  ;;  %v2009_v7 = vadd.f32 %v2008_v51, %v1920_v43  ;;  %3445 = vmatpush.bf16.msrb.mxu2 %v5240_v14 }
 0x2c7   : > { %v2365_v28 = vadd.f32 %v2333_v59, %v2237_v29  ;;  %v1922_v18 = vadd.f32 %v1921_v10, %v1832_v26  ;;  %3534 = vmatpush.bf16.msrb.mxu3 %v5304_v15  ;;  %v5479_v29 = vld [vmem:[%s7008_s22 + $0x64] sm:$0xf]  ;;  %v5109_v59 = vld [vmem:[%s7008_s22 + $0x68] sm:$0xf0] }
 0x2c8   : > { %5894 = vxpose.xlu2.b32.cont [13/16] %v5893_v36, 128  ;;  %v2098_v1 = vadd.f32 %v2097_v24, %v2009_v7  ;;  %v9272_v36 = vld [vmem:[#allocation56_spill] sm:$0xff]  ;;  %v5112_v26 = vor.u32 %v5479_v29, %v5109_v59  ;;  %v5173_v10 = vld [vmem:[%s7008_s22 + $0xe8] sm:$0xf0] }
 0x2c9   : > { %v5899_v31 = vpack.i.bf16 %v2365_v28, %v7736_v58  ;;  %v5495_v24 = vld [vmem:[%s7008_s22 + $0xe4] sm:$0xf] }
 0x2ca   : > { %v5176_v43 = vor.u32 %v5495_v24, %v5173_v10  ;;  %3267 = vmatpush.bf16.msrb.mxu0 %v5112_v26  ;;  %v9277_v24 = vld [vmem:[#allocation61_spill] sm:$0xff]  ;;  %v9278_v10 = vld [vmem:[#allocation62_spill] sm:$0xff] }
 0x2cc   : > { %3356 = vmatpush.bf16.msrb.mxu1 %v5176_v43  ;;  %v9279_v43 = vld [vmem:[#allocation63_spill] sm:$0xff] }
 0x2cd   : > { %v2010_v41 = vpop.f32.mrf.mxu2  ;;  %v1835_v35 = vpop.f32.mrf.mxu0 }
 0x2ce   : > { %v2011_v39 = vadd.f32 %v2010_v41, %v1922_v18  ;;  %v2099_v56 = vpop.f32.mrf.mxu3  ;;  %v1924_v48 = vpop.f32.mrf.mxu1 }
 0x2cf   : > { %v1925_v51 = vadd.f32 %v1924_v48, %v1835_v35 }
 0x2d0   : > { %v2100_v0 = vadd.f32 %v2099_v56, %v2011_v39  ;;  %5896 = vxpose.xlu2.b32.cont [14/16] %v5895_v33, 128  ;;  %2918 = vmatmul.bf16.vlgmr.msra.gmra.mxu0 %v7094_v47 }
 0x2d1   : > { %3007 = vmatmul.bf16.vlgmr.msra.gmra.mxu1 %v9272_v36 }
 0x2d2   : > { %v5572_v58 = vpack.c.bf16 %v2100_v0, %v2098_v1  ;;  %3096 = vmatmul.bf16.vlgmr.msra.gmra.mxu2 %v9273_v30 }
 0x2d3   : > { %3185 = vmatmul.bf16.vlgmr.msra.gmra.mxu3 %v9274_v2 }
 0x2d4   : > { %5620 = vst [vmem:[%s7803_s30 + $0x38] sm:$0xff] %v5572_v58   ;;  %v9276_v58 = vld [vmem:[#allocation60_spill] sm:$0xff] }
 0x2d5   : > { %v2013_v57 = vpop.f32.mrf.mxu2  ;;  %v1837_v55 = vpop.f32.mrf.mxu0 }
 0x2d6   : > { %v2102_v33 = vpop.f32.mrf.mxu3  ;;  %v1926_v52 = vpop.f32.mrf.mxu1  ;;  %v2014_v28 = vadd.f32 %v2013_v57, %v1925_v51 }
 0x2d7   : > { %v1927_v7 = vadd.f32 %v1926_v52, %v1837_v55 }
 0x2d8   : > { %5898 = vxpose.xlu2.b32.cont [15/16] %v5897_v32, 128  ;;  %v2103_v0 = vadd.f32 %v2102_v33, %v2014_v28  ;;  %v9275_v32 = vld [vmem:[#allocation59_spill] sm:$0xff]  ;;  %v9280_v28 = vld [vmem:[#allocation64_spill] sm:$0xff] }
 0x2dd   : > { %v2015_v18 = vpop.f32.mrf.mxu2  ;;  %v1840_v56 = vpop.f32.mrf.mxu0 }
 0x2de   : > { %v2016_v41 = vadd.f32 %v2015_v18, %v1927_v7  ;;  %v2104_v39 = vpop.f32.mrf.mxu3  ;;  %v1929_v1 = vpop.f32.mrf.mxu1  ;;  %v5509_v7 = vld [vmem:[%s7008_s22 + $0x154] sm:$0xf]  ;;  %v5229_v18 = vld [vmem:[%s7008_s22 + $0x158] sm:$0xf0] }
 0x2df   : > { %v1930_v6 = vadd.f32 %v1929_v1, %v1840_v56  ;;  %v5525_v56 = vld [vmem:[%s7008_s22 + $0x1d4] sm:$0xf]  ;;  %v5293_v1 = vld [vmem:[%s7008_s22 + $0x1d8] sm:$0xf0] }
 0x2e0   : > { %v2105_v35 = vadd.f32 %v2104_v39, %v2016_v41  ;;  %5900 = vxpose.xlu2.b32.end [16/16] %v5899_v31, 128  ;;  %2923 = vmatmul.bf16.gmra.mxu0 %v7124_v12  ;;  %v5232_v39 = vor.u32 %v5509_v7, %v5229_v18 }
 0x2e1   : > { %3012 = vmatmul.bf16.gmra.mxu1 %v7126_v13 }
 0x2e2   : > { %v5577_v48 = vpack.c.bf16 %v2105_v35, %v2103_v0  ;;  %3101 = vmatmul.bf16.gmra.mxu2 %v9275_v32 }
 0x2e3   : > { %3190 = vmatmul.bf16.gmra.mxu3 %v9276_v58  ;;  %3446 = vmatpush.bf16.msrb.mxu2 %v5232_v39 }
 0x2e4   : > { %5621 = vst [vmem:[%s7803_s30 + $0x40] sm:$0xff] %v5577_v48   ;;  %v5296_v48 = vor.u32 %v5525_v56, %v5293_v1  ;;  %v9282_v1 = vld [vmem:[#allocation66_spill] sm:$0xff] }
 0x2e5   : > { %v2018_v5 = vpop.f32.mrf.mxu2  ;;  %v1842_v57 = vpop.f32.mrf.mxu0 }
 0x2e6   : > { %v2107_v8 = vpop.f32.mrf.mxu3  ;;  %v1931_v14 = vpop.f32.mrf.mxu1  ;;  %v2019_v37 = vadd.f32 %v2018_v5, %v1930_v6  ;;  %3535 = vmatpush.bf16.msrb.mxu3 %v5296_v48  ;;  %v5493_v6 = vld [vmem:[%s7008_s22 + $0xd4] sm:$0xf] }
 0x2e7   : > { %v1932_v31 = vadd.f32 %v1931_v14, %v1842_v57  ;;  %v5477_v57 = vld [vmem:[%s7008_s22 + $0x54] sm:$0xf]  ;;  %v5101_v14 = vld [vmem:[%s7008_s22 + $0x58] sm:$0xf0] }
 0x2e8   : > { %v2108_v29 = vadd.f32 %v2107_v8, %v2019_v37  ;;  %v5104_v37 = vor.u32 %v5477_v57, %v5101_v14 }
 0x2ea   : > { %3268 = vmatpush.bf16.msrb.mxu0 %v5104_v37 }
 0x2ed   : > { %v2020_v33 = vpop.f32.mrf.mxu2  ;;  %v1845_v52 = vpop.f32.mrf.mxu0 }
 0x2ee   : > { %v2021_v55 = vadd.f32 %v2020_v33, %v1932_v31  ;;  %v2109_v15 = vpop.f32.mrf.mxu3  ;;  %v1934_v51 = vpop.f32.mrf.mxu1  ;;  %v5165_v31 = vld [vmem:[%s7008_s22 + $0xd8] sm:$0xf0] }
 0x2ef   : > { %v1935_v8 = vadd.f32 %v1934_v51, %v1845_v52  ;;  %v5168_v33 = vor.u32 %v5493_v6, %v5165_v31  ;;  %v9281_v51 = vld [vmem:[#allocation65_spill] sm:$0xff] }
 0x2f0   : > { %v2110_v59 = vadd.f32 %v2109_v15, %v2021_v55  ;;  %2928 = vmatmul.bf16.gmra.mxu0 %v9277_v24 }
 0x2f1   : > { %3017 = vmatmul.bf16.gmra.mxu1 %v9278_v10 }
 0x2f2   : > { %v5582_v26 = vpack.c.bf16 %v2110_v59, %v2108_v29  ;;  %3106 = vmatmul.bf16.gmra.mxu2 %v9279_v43  ;;  %3357 = vmatpush.bf16.msrb.mxu1 %v5168_v33 }
 0x2f3   : > { %3195 = vmatmul.bf16.gmra.mxu3 %v9280_v28 }
 0x2f4   : > { %5622 = vst [vmem:[%s7803_s30 + $0x48] sm:$0xff] %v5582_v26  }
 0x2f5   : > { %v2023_v41 = vpop.f32.mrf.mxu2  ;;  %v1847_v35 = vpop.f32.mrf.mxu0 }
 0x2f6   : > { %v2112_v0 = vpop.f32.mrf.mxu3  ;;  %v1936_v5 = vpop.f32.mrf.mxu1  ;;  %v2024_v55 = vadd.f32 %v2023_v41, %v1935_v8 }
 0x2f7   : > { %v1937_v15 = vadd.f32 %v1936_v5, %v1847_v35 }
 0x2f8   : > { %v2113_v56 = vadd.f32 %v2112_v0, %v2024_v55 }
 0x2fd   : > { %v2025_v29 = vpop.f32.mrf.mxu2  ;;  %v1850_v7 = vpop.f32.mrf.mxu0 }
 0x2fe   : > { %v2026_v59 = vadd.f32 %v2025_v29, %v1937_v15  ;;  %v2114_v26 = vpop.f32.mrf.mxu3  ;;  %v1939_v18 = vpop.f32.mrf.mxu1  ;;  %v9283_v29 = vld [vmem:[#allocation67_spill] sm:$0xff] }
 0x2ff   : > { %v1940_v8 = vadd.f32 %v1939_v18, %v1850_v7  ;;  %v9286_v7 = vld [vmem:[#allocation70_spill] sm:$0xff]  ;;  %v5507_v18 = vld [vmem:[%s7008_s22 + $0x144] sm:$0xf] }
 0x300   : > { %v2115_v39 = vadd.f32 %v2114_v26, %v2026_v59  ;;  %2933 = vmatmul.bf16.gmra.mxu0 %v7172_v49  ;;  %v9284_v26 = vld [vmem:[#allocation68_spill] sm:$0xff] }
 0x301   : > { %3022 = vmatmul.bf16.gmra.mxu1 %v7174_v50 }
 0x302   : > { %v5587_v52 = vpack.c.bf16 %v2115_v39, %v2113_v56  ;;  %3111 = vmatmul.bf16.gmra.mxu2 %v9281_v51  ;;  %v9285_v56 = vld [vmem:[#allocation69_spill] sm:$0xff] }
 0x303   : > { %3200 = vmatmul.bf16.gmra.mxu3 %v9282_v1  ;;  %v5221_v39 = vld [vmem:[%s7008_s22 + $0x148] sm:$0xf0] }
 0x304   : > { %5623 = vst [vmem:[%s7803_s30 + $0x50] sm:$0xff] %v5587_v52  }
 0x305   : > { %v2028_v41 = vpop.f32.mrf.mxu2  ;;  %v1852_v48 = vpop.f32.mrf.mxu0 }
 0x306   : > { %v2117_v35 = vpop.f32.mrf.mxu3  ;;  %v1941_v5 = vpop.f32.mrf.mxu1  ;;  %v2029_v57 = vadd.f32 %v2028_v41, %v1940_v8  ;;  %v5224_v41 = vor.u32 %v5507_v18, %v5221_v39 }
 0x307   : > { %v1942_v0 = vadd.f32 %v1941_v5, %v1852_v48  ;;  %v5285_v48 = vld [vmem:[%s7008_s22 + $0x1c8] sm:$0xf0] }
 0x308   : > { %v2118_v55 = vadd.f32 %v2117_v35, %v2029_v57  ;;  %v5523_v35 = vld [vmem:[%s7008_s22 + $0x1c4] sm:$0xf]  ;;  %3447 = vmatpush.bf16.msrb.mxu2 %v5224_v41 }
 0x309   : > { %v5288_v57 = vor.u32 %v5523_v35, %v5285_v48 }
 0x30b   : > { %3536 = vmatpush.bf16.msrb.mxu3 %v5288_v57  ;;  %v9288_v57 = vld [vmem:[#allocation72_spill] sm:$0xff] }
 0x30d   : > { %v2030_v14 = vpop.f32.mrf.mxu2  ;;  %v1855_v31 = vpop.f32.mrf.mxu0 }
 0x30e   : > { %v2031_v6 = vadd.f32 %v2030_v14, %v1942_v0  ;;  %v2119_v37 = vpop.f32.mrf.mxu3  ;;  %v1944_v33 = vpop.f32.mrf.mxu1 }
 0x30f   : > { %v1945_v14 = vadd.f32 %v1944_v33, %v1855_v31  ;;  %v9287_v31 = vld [vmem:[#allocation71_spill] sm:$0xff] }
 0x310   : > { %v2120_v15 = vadd.f32 %v2119_v37, %v2031_v6  ;;  %2938 = vmatmul.bf16.gmra.mxu0 %v9283_v29  ;;  %v5475_v6 = vld [vmem:[%s7008_s22 + $0x44] sm:$0xf]  ;;  %v5093_v37 = vld [vmem:[%s7008_s22 + $0x48] sm:$0xf0] }
 0x311   : > { %3027 = vmatmul.bf16.gmra.mxu1 %v9284_v26 }
 0x312   : > { %v5592_v59 = vpack.c.bf16 %v2120_v15, %v2118_v55  ;;  %3116 = vmatmul.bf16.gmra.mxu2 %v9285_v56  ;;  %v5491_v55 = vld [vmem:[%s7008_s22 + $0xc4] sm:$0xf]  ;;  %v5096_v15 = vor.u32 %v5475_v6, %v5093_v37  ;;  %v9289_v6 = vld [vmem:[#allocation73_spill] sm:$0xff]  ;;  %v9290_v37 = vld [vmem:[#allocation74_spill] sm:$0xff] }
 0x313   : > { %3205 = vmatmul.bf16.gmra.mxu3 %v9286_v7 }
 0x314   : > { %5624 = vst [vmem:[%s7803_s30 + $0x58] sm:$0xff] %v5592_v59   ;;  %v5157_v59 = vld [vmem:[%s7008_s22 + $0xc8] sm:$0xf0]  ;;  %3269 = vmatpush.bf16.msrb.mxu0 %v5096_v15 }
 0x315   : > { %v2033_v52 = vpop.f32.mrf.mxu2  ;;  %v1857_v8 = vpop.f32.mrf.mxu0  ;;  %v5160_v7 = vor.u32 %v5491_v55, %v5157_v59 }
 0x316   : > { %v2122_v5 = vpop.f32.mrf.mxu3  ;;  %v1946_v0 = vpop.f32.mrf.mxu1  ;;  %v2034_v56 = vadd.f32 %v2033_v52, %v1945_v14 }
 0x317   : > { %v1947_v26 = vadd.f32 %v1946_v0, %v1857_v8  ;;  %3358 = vmatpush.bf16.msrb.mxu1 %v5160_v7 }
 0x318   : > { %v2123_v48 = vadd.f32 %v2122_v5, %v2034_v56 }
 0x31d   : > { %v2035_v18 = vpop.f32.mrf.mxu2  ;;  %v1860_v1 = vpop.f32.mrf.mxu0 }
 0x31e   : > { %v2036_v39 = vadd.f32 %v2035_v18, %v1947_v26  ;;  %v2124_v29 = vpop.f32.mrf.mxu3  ;;  %v1949_v35 = vpop.f32.mrf.mxu1 }
 0x31f   : > { %v1950_v26 = vadd.f32 %v1949_v35, %v1860_v1  ;;  %v9294_v1 = vld [vmem:[#allocation78_spill] sm:$0xff] }
 0x320   : > { %v2125_v41 = vadd.f32 %v2124_v29, %v2036_v39  ;;  %2943 = vmatmul.bf16.gmra.mxu0 %v9287_v31  ;;  %v5505_v35 = vld [vmem:[%s7008_s22 + $0x134] sm:$0xf] }
 0x321   : > { %3032 = vmatmul.bf16.gmra.mxu1 %v9288_v57 }
 0x322   : > { %v5597_v33 = vpack.c.bf16 %v2125_v41, %v2123_v48  ;;  %3121 = vmatmul.bf16.gmra.mxu2 %v9289_v6  ;;  %v9291_v48 = vld [vmem:[#allocation75_spill] sm:$0xff] }
 0x323   : > { %3210 = vmatmul.bf16.gmra.mxu3 %v9290_v37  ;;  %v9293_v37 = vld [vmem:[#allocation77_spill] sm:$0xff] }
 0x324   : > { %5625 = vst [vmem:[%s7803_s30 + $0x60] sm:$0xff] %v5597_v33   ;;  %v9292_v33 = vld [vmem:[#allocation76_spill] sm:$0xff] }
 0x325   : > { %v2038_v52 = vpop.f32.mrf.mxu2  ;;  %v1862_v7 = vpop.f32.mrf.mxu0 }
 0x326   : > { %v2127_v8 = vpop.f32.mrf.mxu3  ;;  %v1951_v0 = vpop.f32.mrf.mxu1  ;;  %v2039_v14 = vadd.f32 %v2038_v52, %v1950_v26  ;;  %v5213_v52 = vld [vmem:[%s7008_s22 + $0x138] sm:$0xf0] }
 0x327   : > { %v1952_v29 = vadd.f32 %v1951_v0, %v1862_v7  ;;  %v5216_v0 = vor.u32 %v5505_v35, %v5213_v52  ;;  %v5277_v26 = vld [vmem:[%s7008_s22 + $0x1b8] sm:$0xf0] }
 0x328   : > { %v2128_v18 = vadd.f32 %v2127_v8, %v2039_v14  ;;  %v5521_v8 = vld [vmem:[%s7008_s22 + $0x1b4] sm:$0xf] }
 0x329   : > { %3448 = vmatpush.bf16.msrb.mxu2 %v5216_v0 }
 0x32d   : > { %v2040_v56 = vpop.f32.mrf.mxu2  ;;  %v1865_v15 = vpop.f32.mrf.mxu0 }
 0x32e   : > { %v2041_v5 = vadd.f32 %v2040_v56, %v1952_v29  ;;  %v2129_v55 = vpop.f32.mrf.mxu3  ;;  %v1954_v59 = vpop.f32.mrf.mxu1  ;;  %v5280_v56 = vor.u32 %v5521_v8, %v5277_v26 }
 0x330   : > { %v2130_v39 = vadd.f32 %v2129_v55, %v2041_v5  ;;  %2948 = vmatmul.bf16.gmra.mxu0 %v9291_v48  ;;  %v1955_v55 = vadd.f32 %v1954_v59, %v1865_v15  ;;  %3537 = vmatpush.bf16.msrb.mxu3 %v5280_v56  ;;  %v9295_v15 = vld [vmem:[#allocation79_spill] sm:$0xff]  ;;  %v9296_v56 = vld [vmem:[#allocation80_spill] sm:$0xff] }
 0x331   : > { %3037 = vmatmul.bf16.gmra.mxu1 %v9292_v33 }
 0x332   : > { %v5602_v41 = vpack.c.bf16 %v2130_v39, %v2128_v18  ;;  %3126 = vmatmul.bf16.gmra.mxu2 %v9293_v37  ;;  %v5473_v18 = vld [vmem:[%s7008_s22 + $0x34] sm:$0xf]  ;;  %v5085_v39 = vld [vmem:[%s7008_s22 + $0x38] sm:$0xf0] }
 0x333   : > { %3215 = vmatmul.bf16.gmra.mxu3 %v9294_v1  ;;  %v5489_v1 = vld [vmem:[%s7008_s22 + $0xb4] sm:$0xf]  ;;  %v5088_v37 = vor.u32 %v5473_v18, %v5085_v39  ;;  %v9297_v18 = vld [vmem:[#allocation81_spill] sm:$0xff] }
 0x334   : > { %5626 = vst [vmem:[%s7803_s30 + $0x68] sm:$0xff] %v5602_v41   ;;  %v5149_v41 = vld [vmem:[%s7008_s22 + $0xb8] sm:$0xf0] }
 0x335   : > { %v2043_v7 = vpop.f32.mrf.mxu2  ;;  %v1867_v29 = vpop.f32.mrf.mxu0  ;;  %v5152_v6 = vor.u32 %v5489_v1, %v5149_v41  ;;  %3270 = vmatpush.bf16.msrb.mxu0 %v5088_v37 }
 0x336   : > { %v2132_v14 = vpop.f32.mrf.mxu3  ;;  %v1956_v5 = vpop.f32.mrf.mxu1  ;;  %v2044_v33 = vadd.f32 %v2043_v7, %v1955_v55  ;;  %v9298_v7 = vld [vmem:[#allocation82_spill] sm:$0xff] }
 0x337   : > { %v1957_v48 = vadd.f32 %v1956_v5, %v1867_v29  ;;  %3359 = vmatpush.bf16.msrb.mxu1 %v5152_v6 }
 0x338   : > { %v2133_v26 = vadd.f32 %v2132_v14, %v2044_v33 }
 0x33d   : > { %v2045_v57 = vpop.f32.mrf.mxu2  ;;  %v1870_v31 = vpop.f32.mrf.mxu0 }
 0x33e   : > { %v2046_v35 = vadd.f32 %v2045_v57, %v1957_v48  ;;  %v2134_v52 = vpop.f32.mrf.mxu3  ;;  %v1959_v8 = vpop.f32.mrf.mxu1 }
 0x33f   : > { %v1960_v48 = vadd.f32 %v1959_v8, %v1870_v31  ;;  %v9301_v31 = vld [vmem:[#allocation85_spill] sm:$0xff]  ;;  %v9302_v8 = vld [vmem:[#allocation86_spill] sm:$0xff] }
 0x340   : > { %v2135_v0 = vadd.f32 %v2134_v52, %v2046_v35  ;;  %2953 = vmatmul.bf16.gmra.mxu0 %v9295_v15 }
 0x341   : > { %3042 = vmatmul.bf16.gmra.mxu1 %v9296_v56 }
 0x342   : > { %v5607_v59 = vpack.c.bf16 %v2135_v0, %v2133_v26  ;;  %3131 = vmatmul.bf16.gmra.mxu2 %v9297_v18  ;;  %v9299_v26 = vld [vmem:[#allocation83_spill] sm:$0xff] }
 0x343   : > { %3220 = vmatmul.bf16.gmra.mxu3 %v9298_v7  ;;  %v9300_v7 = vld [vmem:[#allocation84_spill] sm:$0xff] }
 0x344   : > { %5627 = vst [vmem:[%s7803_s30 + $0x70] sm:$0xff] %v5607_v59  }
 0x345   : > { %v2048_v1 = vpop.f32.mrf.mxu2  ;;  %v1872_v37 = vpop.f32.mrf.mxu0 }
 0x346   : > { %v2137_v29 = vpop.f32.mrf.mxu3  ;;  %v1961_v57 = vpop.f32.mrf.mxu1  ;;  %v2049_v6 = vadd.f32 %v2048_v1, %v1960_v48  ;;  %v5503_v1 = vld [vmem:[%s7008_s22 + $0x124] sm:$0xf] }
 0x347   : > { %v1962_v33 = vadd.f32 %v1961_v57, %v1872_v37  ;;  %v5205_v37 = vld [vmem:[%s7008_s22 + $0x128] sm:$0xf0]  ;;  %v5519_v57 = vld [vmem:[%s7008_s22 + $0x1a4] sm:$0xf] }
 0x348   : > { %v2138_v35 = vadd.f32 %v2137_v29, %v2049_v6  ;;  %v5208_v48 = vor.u32 %v5503_v1, %v5205_v37  ;;  %v5269_v29 = vld [vmem:[%s7008_s22 + $0x1a8] sm:$0xf0] }
 0x349   : > { %v5141_v1 = vld [vmem:[%s7008_s22 + $0xa8] sm:$0xf0] }
 0x34a   : > { %3449 = vmatpush.bf16.msrb.mxu2 %v5208_v48 }
 0x34d   : > { %v2050_v14 = vpop.f32.mrf.mxu2  ;;  %v2919_v39 = vpop.f32.mrf.mxu0 }
 0x34e   : > { %v2051_v5 = vadd.f32 %v2050_v14, %v1962_v33  ;;  %v2139_v55 = vpop.f32.mrf.mxu3  ;;  %v3008_v41 = vpop.f32.mrf.mxu1  ;;  %v5272_v33 = vor.u32 %v5519_v57, %v5269_v29 }
 0x34f   : > { %v3009_v59 = vadd.f32 %v3008_v41, %v2919_v39 }
 0x350   : > { %v2140_v52 = vadd.f32 %v2139_v55, %v2051_v5  ;;  %2958 = vmatmul.bf16.gmra.mxu0 %v9299_v26  ;;  %3538 = vmatpush.bf16.msrb.mxu3 %v5272_v33 }
 0x351   : > { %3047 = vmatmul.bf16.gmra.mxu1 %v9300_v7 }
 0x352   : > { %v5612_v0 = vpack.c.bf16 %v2140_v52, %v2138_v35  ;;  %3136 = vmatmul.bf16.gmra.mxu2 %v9301_v31  ;;  %v5471_v35 = vld [vmem:[%s7008_s22 + $0x24] sm:$0xf]  ;;  %v5077_v52 = vld [vmem:[%s7008_s22 + $0x28] sm:$0xf0] }
 0x353   : > { %3225 = vmatmul.bf16.gmra.mxu3 %v9302_v8  ;;  %v5487_v8 = vld [vmem:[%s7008_s22 + $0xa4] sm:$0xf] }
 0x354   : > { %5628 = vst [vmem:[%s7803_s30 + $0x78] sm:$0xff] %v5612_v0   ;;  %v5080_v0 = vor.u32 %v5471_v35, %v5077_v52  ;;  %v5144_v31 = vor.u32 %v5487_v8, %v5141_v1 }
 0x355   : > { %v3097_v6 = vpop.f32.mrf.mxu2  ;;  %v2921_v55 = vpop.f32.mrf.mxu0 }
 0x356   : > { %v3098_v14 = vadd.f32 %v3097_v6, %v3009_v59  ;;  %v3186_v5 = vpop.f32.mrf.mxu3  ;;  %v3010_v39 = vpop.f32.mrf.mxu1  ;;  %3271 = vmatpush.bf16.msrb.mxu0 %v5080_v0  ;;  %3360 = vmatpush.bf16.msrb.mxu1 %v5144_v31 }
 0x357   : > { %v3011_v37 = vadd.f32 %v3010_v39, %v2921_v55 }
 0x358   : > { %v8050_v41 = vadd.f32 %v3186_v5, %v3098_v14  ;;  %v9303_v14 = vld [vmem:[#allocation91_spill] sm:$0xff] }
 0x35a   : > { %3718 = vrot.lane.b32.xlu0 %v8050_v41, %s6531_s2 }
 0x35d   : > { %v3099_v7 = vpop.f32.mrf.mxu2  ;;  %v2924_v29 = vpop.f32.mrf.mxu0 }
 0x35e   : > { %v3100_v59 = vadd.f32 %v3099_v7, %v3011_v37  ;;  %v3188_v57 = vpop.f32.mrf.mxu3  ;;  %v3013_v48 = vpop.f32.mrf.mxu1 }
 0x35f   : > { %v3014_v33 = vadd.f32 %v3013_v48, %v2924_v29  ;;  %v9304_v48 = vld [vmem:[#allocation96_spill] sm:$0xff] }
 0x360   : > { %v8058_v6 = vadd.f32 %v3188_v57, %v3100_v59  ;;  %2963 = vmatmul.bf16.gmra.mxu0 %v9238_v34 }
 0x361   : > { %3052 = vmatmul.bf16.gmra.mxu1 %v9239_v4 }
 0x362   : > { %3141 = vmatmul.bf16.gmra.mxu2 %v9240_v19  ;;  %3720 = vrot.lane.b32.xlu1 %v8058_v6, %s6531_s2 }
 0x363   : > { %3230 = vmatmul.bf16.gmra.mxu3 %v9303_v14 }
 0x365   : > { %v3102_v8 = vpop.f32.mrf.mxu2  ;;  %v2926_v55 = vpop.f32.mrf.mxu0 }
 0x366   : > { %v3103_v7 = vadd.f32 %v3102_v8, %v3014_v33  ;;  %v3191_v5 = vpop.f32.mrf.mxu3  ;;  %v3015_v31 = vpop.f32.mrf.mxu1  ;;  %v5501_v33 = vld [vmem:[%s7008_s22 + $0x114] sm:$0xf]  ;;  %v5197_v8 = vld [vmem:[%s7008_s22 + $0x118] sm:$0xf0] }
 0x367   : > { %v3016_v35 = vadd.f32 %v3015_v31, %v2926_v55  ;;  %v5261_v55 = vld [vmem:[%s7008_s22 + $0x198] sm:$0xf0] }
 0x368   : > { %v8066_v39 = vadd.f32 %v3191_v5, %v3103_v7  ;;  %v5517_v7 = vld [vmem:[%s7008_s22 + $0x194] sm:$0xf]  ;;  %v5200_v5 = vor.u32 %v5501_v33, %v5197_v8  ;;  %v5133_v33 = vld [vmem:[%s7008_s22 + $0x98] sm:$0xf0] }
 0x36a   : > { %3722 = vrot.lane.b32.xlu0 %v8066_v39, %s6531_s2  ;;  %3450 = vmatpush.bf16.msrb.mxu2 %v5200_v5 }
 0x36d   : > { %v3104_v52 = vpop.f32.mrf.mxu2  ;;  %v2929_v37 = vpop.f32.mrf.mxu0 }
 0x36e   : > { %v3105_v0 = vadd.f32 %v3104_v52, %v3016_v35  ;;  %v3193_v1 = vpop.f32.mrf.mxu3  ;;  %v3018_v59 = vpop.f32.mrf.mxu1  ;;  %v5264_v35 = vor.u32 %v5517_v7, %v5261_v55 }
 0x36f   : > { %v3019_v29 = vadd.f32 %v3018_v59, %v2929_v37 }
 0x370   : > { %v8070_v57 = vadd.f32 %v3193_v1, %v3105_v0  ;;  %2968 = vmatmul.bf16.gmra.mxu0 %v9245_v60  ;;  %3539 = vmatpush.bf16.msrb.mxu3 %v5264_v35 }
 0x371   : > { %3057 = vmatmul.bf16.gmra.mxu1 %v9246_v38  ;;  %v5485_v38 = vld [vmem:[%s7008_s22 + $0x94] sm:$0xf] }
 0x372   : > { %3146 = vmatmul.bf16.gmra.mxu2 %v9247_v21  ;;  %3724 = vrot.lane.b32.xlu1 %v8070_v57, %s6531_s2  ;;  %v5069_v21 = vld [vmem:[%s7008_s22 + $0x18] sm:$0xf0]  ;;  %v5136_v14 = vor.u32 %v5485_v38, %v5133_v33 }
 0x373   : > { %3235 = vmatmul.bf16.gmra.mxu3 %v9304_v48  ;;  %v5469_v48 = vld [vmem:[%s7008_s22 + $0x14] sm:$0xf] }
 0x374   : > { %v5072_v60 = vor.u32 %v5469_v48, %v5069_v21  ;;  %3361 = vmatpush.bf16.msrb.mxu1 %v5136_v14 }
 0x375   : > { %v3107_v31 = vpop.f32.mrf.mxu2  ;;  %v2931_v1 = vpop.f32.mrf.mxu0 }
 0x376   : > { %v3108_v52 = vadd.f32 %v3107_v31, %v3019_v29  ;;  %v3196_v0 = vpop.f32.mrf.mxu3  ;;  %v3020_v37 = vpop.f32.mrf.mxu1  ;;  %3272 = vmatpush.bf16.msrb.mxu0 %v5072_v60 }
 0x377   : > { %v3021_v8 = vadd.f32 %v3020_v37, %v2931_v1 }
 0x378   : > { %v8082_v59 = vadd.f32 %v3196_v0, %v3108_v52 }
 0x37a   : > { %3726 = vrot.lane.b32.xlu0 %v8082_v59, %s6531_s2 }
 0x37d   : > { %v3109_v19 = vpop.f32.mrf.mxu2  ;;  %v2934_v55 = vpop.f32.mrf.mxu0 }
 0x37e   : > { %v3110_v29 = vadd.f32 %v3109_v19, %v3021_v8  ;;  %v3198_v7 = vpop.f32.mrf.mxu3  ;;  %v3023_v5 = vpop.f32.mrf.mxu1 }
 0x37f   : > { %v3024_v35 = vadd.f32 %v3023_v5, %v2934_v55  ;;  %v5499_v55 = vld [vmem:[%s7008_s22 + $0x104] sm:$0xf]  ;;  %v5189_v5 = vld [vmem:[%s7008_s22 + $0x108] sm:$0xf0] }
 0x380   : > { %v8090_v31 = vadd.f32 %v3198_v7, %v3110_v29  ;;  %2973 = vmatmul.bf16.gmra.mxu0 %v9251_v25 }
 0x381   : > { %3062 = vmatmul.bf16.gmra.mxu1 %v9252_v27 }
 0x382   : > { %3151 = vmatmul.bf16.gmra.mxu2 %v9253_v42  ;;  %3728 = vrot.lane.b32.xlu1 %v8090_v31, %s6531_s2 }
 0x383   : > { %3240 = vmatmul.bf16.gmra.mxu3 %v9254_v44 }
 0x385   : > { %v3112_v60 = vpop.f32.mrf.mxu2  ;;  %v2936_v21 = vpop.f32.mrf.mxu0 }
 0x386   : > { %v3113_v19 = vadd.f32 %v3112_v60, %v3024_v35  ;;  %v3201_v38 = vpop.f32.mrf.mxu3  ;;  %v3025_v14 = vpop.f32.mrf.mxu1  ;;  %v5515_v35 = vld [vmem:[%s7008_s22 + $0x184] sm:$0xf]  ;;  %v5192_v60 = vor.u32 %v5499_v55, %v5189_v5  ;;  %v5125_v55 = vld [vmem:[%s7008_s22 + $0x88] sm:$0xf0] }
 0x387   : > { %v3026_v52 = vadd.f32 %v3025_v14, %v2936_v21 }
 0x388   : > { %v8098_v48 = vadd.f32 %v3201_v38, %v3113_v19  ;;  %v5253_v19 = vld [vmem:[%s7008_s22 + $0x188] sm:$0xf0]  ;;  %3451 = vmatpush.bf16.msrb.mxu2 %v5192_v60 }
 0x389   : > { %v5256_v21 = vor.u32 %v5515_v35, %v5253_v19 }
 0x38a   : > { %3730 = vrot.lane.b32.xlu0 %v8098_v48, %s6531_s2 }
 0x38b   : > { %3540 = vmatpush.bf16.msrb.mxu3 %v5256_v21 }
 0x38d   : > { %v3114_v0 = vpop.f32.mrf.mxu2  ;;  %v2939_v33 = vpop.f32.mrf.mxu0 }
 0x38e   : > { %v3115_v1 = vadd.f32 %v3114_v0, %v3026_v52  ;;  %v3203_v37 = vpop.f32.mrf.mxu3  ;;  %v3028_v8 = vpop.f32.mrf.mxu1 }
 0x38f   : > { %v3029_v7 = vadd.f32 %v3028_v8, %v2939_v33  ;;  %v5467_v33 = vld [vmem:[%s7008_s22 + $0x4] sm:$0xf]  ;;  %v5061_v8 = vld [vmem:[%s7008_s22 + $0x8] sm:$0xf0] }
 0x390   : > { %v8102_v29 = vadd.f32 %v3203_v37, %v3115_v1  ;;  %2978 = vmatmul.bf16.gmra.mxu0 %v9256_v53 }
 0x391   : > { %3067 = vmatmul.bf16.gmra.mxu1 %v9257_v3 }
 0x392   : > { %3156 = vmatmul.bf16.gmra.mxu2 %v9258_v11  ;;  %3732 = vrot.lane.b32.xlu1 %v8102_v29, %s6531_s2  ;;  %v5064_v11 = vor.u32 %v5467_v33, %v5061_v8 }
 0x393   : > { %3245 = vmatmul.bf16.gmra.mxu3 %v9259_v61  ;;  %v5483_v61 = vld [vmem:[%s7008_s22 + $0x84] sm:$0xf] }
 0x394   : > { %v5128_v3 = vor.u32 %v5483_v61, %v5125_v55  ;;  %3273 = vmatpush.bf16.msrb.mxu0 %v5064_v11 }
 0x395   : > { %v3117_v38 = vpop.f32.mrf.mxu2  ;;  %v2941_v0 = vpop.f32.mrf.mxu0 }
 0x396   : > { %v3118_v14 = vadd.f32 %v3117_v38, %v3029_v7  ;;  %v3206_v52 = vpop.f32.mrf.mxu3  ;;  %v3030_v1 = vpop.f32.mrf.mxu1  ;;  %3362 = vmatpush.bf16.msrb.mxu1 %v5128_v3 }
 0x397   : > { %v3031_v5 = vadd.f32 %v3030_v1, %v2941_v0 }
 0x398   : > { %v8114_v37 = vadd.f32 %v3206_v52, %v3118_v14 }
 0x39a   : > { %3734 = vrot.lane.b32.xlu0 %v8114_v37, %s6531_s2 }
 0x39d   : > { %v3119_v53 = vpop.f32.mrf.mxu2  ;;  %v2944_v19 = vpop.f32.mrf.mxu0 }
 0x39e   : > { %v3120_v7 = vadd.f32 %v3119_v53, %v3031_v5  ;;  %v3208_v35 = vpop.f32.mrf.mxu3  ;;  %v3033_v60 = vpop.f32.mrf.mxu1 }
 0x39f   : > { %v3034_v21 = vadd.f32 %v3033_v60, %v2944_v19 }
 0x3a0   : > { %v8122_v38 = vadd.f32 %v3208_v35, %v3120_v7  ;;  %2983 = vmatmul.bf16.gmra.mxu0 %v9262_v40 }
 0x3a1   : > { %3072 = vmatmul.bf16.gmra.mxu1 %v9263_v46 }
 0x3a2   : > { %3161 = vmatmul.bf16.gmra.mxu2 %v9264_v63  ;;  %3736 = vrot.lane.b32.xlu1 %v8122_v38, %s6531_s2 }
 0x3a3   : > { %3250 = vmatmul.bf16.gmra.mxu3 %v9265_v54 }
 0x3a5   : > { %v3122_v11 = vpop.f32.mrf.mxu2  ;;  %v2946_v14 = vpop.f32.mrf.mxu0 }
 0x3a6   : > { %v3123_v53 = vadd.f32 %v3122_v11, %v3034_v21  ;;  %v3211_v61 = vpop.f32.mrf.mxu3  ;;  %v3035_v3 = vpop.f32.mrf.mxu1 }
 0x3a7   : > { %v3036_v0 = vadd.f32 %v3035_v3, %v2946_v14 }
 0x3a8   : > { %v8130_v52 = vadd.f32 %v3211_v61, %v3123_v53 }
 0x3aa   : > { %3738 = vrot.lane.b32.xlu0 %v8130_v52, %s6531_s2 }
 0x3ad   : > { %v3124_v1 = vpop.f32.mrf.mxu2  ;;  %v2949_v55 = vpop.f32.mrf.mxu0 }
 0x3ae   : > { %v3125_v33 = vadd.f32 %v3124_v1, %v3036_v0  ;;  %v3213_v8 = vpop.f32.mrf.mxu3  ;;  %v3038_v5 = vpop.f32.mrf.mxu1 }
 0x3af   : > { %v3039_v35 = vadd.f32 %v3038_v5, %v2949_v55 }
 0x3b0   : > { %v8134_v7 = vadd.f32 %v3213_v8, %v3125_v33  ;;  %2988 = vmatmul.bf16.gmra.mxu0 %v9267_v16 }
 0x3b1   : > { %3077 = vmatmul.bf16.gmra.mxu1 %v9268_v62 }
 0x3b2   : > { %3166 = vmatmul.bf16.gmra.mxu2 %v9269_v17  ;;  %3740 = vrot.lane.b32.xlu1 %v8134_v7, %s6531_s2 }
 0x3b3   : > { %3255 = vmatmul.bf16.gmra.mxu3 %v9270_v45 }
 0x3b5   : > { %v3127_v19 = vpop.f32.mrf.mxu2  ;;  %v2951_v11 = vpop.f32.mrf.mxu0 }
 0x3b6   : > { %v3128_v60 = vadd.f32 %v3127_v19, %v3039_v35  ;;  %v3216_v21 = vpop.f32.mrf.mxu3  ;;  %v3040_v53 = vpop.f32.mrf.mxu1 }
 0x3b7   : > { %v3041_v14 = vadd.f32 %v3040_v53, %v2951_v11 }
 0x3b8   : > { %v8142_v61 = vadd.f32 %v3216_v21, %v3128_v60 }
 0x3ba   : > { %3742 = vrot.lane.b32.xlu0 %v8142_v61, %s6531_s2 }
 0x3bd   : > { %v3129_v3 = vpop.f32.mrf.mxu2  ;;  %v2954_v33 = vpop.f32.mrf.mxu0 }
 0x3be   : > { %v3130_v0 = vadd.f32 %v3129_v3, %v3041_v14  ;;  %v3218_v1 = vpop.f32.mrf.mxu3  ;;  %v3043_v8 = vpop.f32.mrf.mxu1  ;;  %v3622_v14 = vld [vmem:[%s6989_s18] sm:$0xff] }
 0x3bf   : > { %v3044_v5 = vadd.f32 %v3043_v8, %v2954_v33  ;;  %v3654_v3 = vld [vmem:[%s6995_s24] sm:$0xff]  ;;  %v3686_v33 = vmul.f32 %v3622_v14, %v8050_v41 }
 0x3c0   : > { %v8146_v55 = vadd.f32 %v3218_v1, %v3130_v0  ;;  %2993 = vmatmul.bf16.gmra.mxu0 %v7512_v9 }
 0x3c1   : > { %3082 = vmatmul.bf16.gmra.mxu1 %v7514_v23 }
 0x3c2   : > { %3171 = vmatmul.bf16.gmra.mxu2 %v7516_v22  ;;  %3744 = vrot.lane.b32.xlu1 %v8146_v55, %s6531_s2 }
 0x3c3   : > { %3260 = vmatmul.bf16.gmra.mxu3 %v7518_v20 }
 0x3c5   : > { %v3132_v35 = vpop.f32.mrf.mxu2  ;;  %v2956_v21 = vpop.f32.mrf.mxu0 }
 0x3c6   : > { %v3133_v19 = vadd.f32 %v3132_v35, %v3044_v5  ;;  %v3221_v60 = vpop.f32.mrf.mxu3  ;;  %v3045_v11 = vpop.f32.mrf.mxu1 }
 0x3c7   : > { %v3046_v0 = vadd.f32 %v3045_v11, %v2956_v21  ;;  %v3623_v21 = vld [vmem:[%s6989_s18 + $0x8] sm:$0xff] }
 0x3c8   : > { %v8154_v53 = vadd.f32 %v3221_v60, %v3133_v19 }
 0x3ca   : > { %3746 = vrot.lane.b32.xlu0 %v8154_v53, %s6531_s2 }
 0x3cc   : > { %v3719_v1 = vpop.permute.xlu0 %3718 }
 0x3cd   : > { %v3782_v8 = vmul.f32 %v3719_v1, %v3654_v3  ;;  %v3134_v20 = vpop.f32.mrf.mxu2  ;;  %v2959_v35 = vpop.f32.mrf.mxu0  ;;  %v3656_v1 = vld [vmem:[%s6995_s24 + $0x10] sm:$0xff] }
 0x3ce   : > { %v3135_v22 = vadd.f32 %v3134_v20, %v3046_v0  ;;  %v3223_v5 = vpop.f32.mrf.mxu3  ;;  %v3048_v19 = vpop.f32.mrf.mxu1  ;;  %v3655_v20 = vld [vmem:[%s6995_s24 + $0x8] sm:$0xff] }
 0x3cf   : > { %v3814_v23 = vadd.f32 %v3782_v8, %v3686_v33  ;;  %v3049_v45 = vadd.f32 %v3048_v19, %v2959_v35 }
 0x3d0   : > { %v8162_v60 = vadd.f32 %v3223_v5, %v3135_v22  ;;  %3274 = vmatmul.bf16.vlgmr.msrb.gmra.mxu0 %v7094_v47 }
 0x3d1   : > { %v3846_v9 = vpack.c.bf16 %v3814_v23, %v3814_v23  ;;  %3363 = vmatmul.bf16.vlgmr.msrb.gmra.mxu1 %v9272_v36  ;;  %v3687_v23 = vmul.f32 %v3623_v21, %v8058_v6 }
 0x3d2   : > { %3452 = vmatmul.bf16.vlgmr.msrb.gmra.mxu2 %v9273_v30  ;;  %3748 = vrot.lane.b32.xlu1 %v8162_v60, %s6531_s2 }
 0x3d3   : > { %3878 = vst [vmem:[%s8168_s1] sm:$0xf] %v3846_v9  ;;  %3541 = vmatmul.bf16.vlgmr.msrb.gmra.mxu3 %v9274_v2  ;;  %v3624_v9 = vld [vmem:[%s6989_s18 + $0x10] sm:$0xff] }
 0x3d4   : > { %v3721_v47 = vpop.permute.xlu1 %3720  ;;  %v3688_v6 = vmul.f32 %v3624_v9, %v8066_v39  ;;  %v3625_v39 = vld [vmem:[%s6989_s18 + $0x18] sm:$0xff] }
 0x3d5   : > { %v3137_v22 = vpop.f32.mrf.mxu2  ;;  %v3783_v36 = vmul.f32 %v3721_v47, %v3655_v20  ;;  %v2961_v11 = vpop.f32.mrf.mxu0 }
 0x3d6   : > { %v3138_v30 = vadd.f32 %v3137_v22, %v3049_v45  ;;  %v3226_v41 = vpop.f32.mrf.mxu3  ;;  %v3050_v14 = vpop.f32.mrf.mxu1 }
 0x3d7   : > { %v3815_v3 = vadd.f32 %v3783_v36, %v3687_v23  ;;  %v3051_v33 = vadd.f32 %v3050_v14, %v2961_v11 }
 0x3d8   : > { %v8176_v0 = vadd.f32 %v3226_v41, %v3138_v30  ;;  %v3657_v30 = vld [vmem:[%s6995_s24 + $0x18] sm:$0xff] }
 0x3d9   : > { %v3847_v2 = vpack.c.bf16 %v3815_v3, %v3815_v3 }
 0x3da   : > { %3750 = vrot.lane.b32.xlu0 %v8176_v0, %s6531_s2 }
 0x3db   : > { %3879 = vst [vmem:[%s8168_s1 + $0x8] sm:$0xf] %v3847_v2 }
 0x3dc   : > { %v3723_v8 = vpop.permute.xlu0 %3722 }
 0x3dd   : > { %v3784_v45 = vmul.f32 %v3723_v8, %v3656_v1  ;;  %v3139_v5 = vpop.f32.mrf.mxu2  ;;  %v2964_v21 = vpop.f32.mrf.mxu0  ;;  %v3658_v8 = vld [vmem:[%s6995_s24 + $0x20] sm:$0xff] }
 0x3de   : > { %v3140_v35 = vadd.f32 %v3139_v5, %v3051_v33  ;;  %v3228_v19 = vpop.f32.mrf.mxu3  ;;  %v3053_v47 = vpop.f32.mrf.mxu1  ;;  %v3626_v33 = vld [vmem:[%s6989_s18 + $0x20] sm:$0xff] }
 0x3df   : > { %v3816_v20 = vadd.f32 %v3784_v45, %v3688_v6  ;;  %v3054_v36 = vadd.f32 %v3053_v47, %v2964_v21 }
 0x3e0   : > { %v8184_v22 = vadd.f32 %v3228_v19, %v3140_v35  ;;  %3279 = vmatmul.bf16.gmra.mxu0 %v7124_v12  ;;  %v3689_v12 = vmul.f32 %v3625_v39, %v8070_v57  ;;  %v3690_v57 = vmul.f32 %v3626_v33, %v8082_v59  ;;  %v3627_v59 = vld [vmem:[%s6989_s18 + $0x28] sm:$0xff]  ;;  %v3660_v33 = vld [vmem:[%s6995_s24 + $0x30] sm:$0xff] }
 0x3e1   : > { %v3848_v23 = vpack.c.bf16 %v3816_v20, %v3816_v20  ;;  %3368 = vmatmul.bf16.gmra.mxu1 %v7126_v13 }
 0x3e2   : > { %3457 = vmatmul.bf16.gmra.mxu2 %v9275_v32  ;;  %3752 = vrot.lane.b32.xlu1 %v8184_v22, %s6531_s2 }
 0x3e3   : > { %3880 = vst [vmem:[%s8168_s1 + $0x10] sm:$0xf] %v3848_v23  ;;  %3546 = vmatmul.bf16.gmra.mxu3 %v9276_v58 }
 0x3e4   : > { %v3725_v41 = vpop.permute.xlu1 %3724 }
 0x3e5   : > { %v3142_v11 = vpop.f32.mrf.mxu2  ;;  %v3785_v14 = vmul.f32 %v3725_v41, %v3657_v30  ;;  %v2966_v9 = vpop.f32.mrf.mxu0  ;;  %v3659_v41 = vld [vmem:[%s6995_s24 + $0x28] sm:$0xff] }
 0x3e6   : > { %v3143_v3 = vadd.f32 %v3142_v11, %v3054_v36  ;;  %v3231_v13 = vpop.f32.mrf.mxu3  ;;  %v3055_v32 = vpop.f32.mrf.mxu1 }
 0x3e7   : > { %v3817_v2 = vadd.f32 %v3785_v14, %v3689_v12  ;;  %v3056_v6 = vadd.f32 %v3055_v32, %v2966_v9 }
 0x3e8   : > { %v8196_v1 = vadd.f32 %v3231_v13, %v3143_v3 }
 0x3e9   : > { %v3849_v58 = vpack.c.bf16 %v3817_v2, %v3817_v2  ;;  %v3628_v2 = vld [vmem:[%s6989_s18 + $0x30] sm:$0xff] }
 0x3ea   : > { %3754 = vrot.lane.b32.xlu0 %v8196_v1, %s6531_s2 }
 0x3eb   : > { %3881 = vst [vmem:[%s8168_s1 + $0x18] sm:$0xf] %v3849_v58 }
 0x3ec   : > { %v3727_v45 = vpop.permute.xlu0 %3726 }
 0x3ed   : > { %v3786_v5 = vmul.f32 %v3727_v45, %v3658_v8  ;;  %v3144_v35 = vpop.f32.mrf.mxu2  ;;  %v2969_v20 = vpop.f32.mrf.mxu0 }
 0x3ee   : > { %v3145_v19 = vadd.f32 %v3144_v35, %v3056_v6  ;;  %v3233_v21 = vpop.f32.mrf.mxu3  ;;  %v3058_v23 = vpop.f32.mrf.mxu1 }
 0x3ef   : > { %v3818_v47 = vadd.f32 %v3786_v5, %v3690_v57  ;;  %v3059_v30 = vadd.f32 %v3058_v23, %v2969_v20 }
 0x3f0   : > { %v8204_v36 = vadd.f32 %v3233_v21, %v3145_v19  ;;  %3284 = vmatmul.bf16.gmra.mxu0 %v9277_v24  ;;  %v3691_v24 = vmul.f32 %v3627_v59, %v8090_v31  ;;  %v3692_v31 = vmul.f32 %v3628_v2, %v8098_v48  ;;  %v3629_v48 = vld [vmem:[%s6989_s18 + $0x38] sm:$0xff] }
 0x3f1   : > { %v3850_v39 = vpack.c.bf16 %v3818_v47, %v3818_v47  ;;  %3373 = vmatmul.bf16.gmra.mxu1 %v9278_v10 }
 0x3f2   : > { %3462 = vmatmul.bf16.gmra.mxu2 %v9279_v43  ;;  %3756 = vrot.lane.b32.xlu1 %v8204_v36, %s6531_s2 }
 0x3f3   : > { %3882 = vst [vmem:[%s8168_s1 + $0x20] sm:$0xf] %v3850_v39  ;;  %3551 = vmatmul.bf16.gmra.mxu3 %v9280_v28  ;;  %v9305_v39 = vld [vmem:[#allocation66_spill] sm:$0xff] }
 0x3f4   : > { %v3729_v11 = vpop.permute.xlu1 %3728 }
 0x3f5   : > { %v3147_v12 = vpop.f32.mrf.mxu2  ;;  %v3787_v14 = vmul.f32 %v3729_v11, %v3659_v41  ;;  %v2971_v13 = vpop.f32.mrf.mxu0 }
 0x3f6   : > { %v3148_v3 = vadd.f32 %v3147_v12, %v3059_v30  ;;  %v3236_v10 = vpop.f32.mrf.mxu3  ;;  %v3060_v43 = vpop.f32.mrf.mxu1  ;;  %v3661_v30 = vld [vmem:[%s6995_s24 + $0x38] sm:$0xff] }
 0x3f7   : > { %v3819_v9 = vadd.f32 %v3787_v14, %v3691_v24  ;;  %v3061_v58 = vadd.f32 %v3060_v43, %v2971_v13  ;;  %v3662_v43 = vld [vmem:[%s6995_s24 + $0x40] sm:$0xff] }
 0x3f8   : > { %v8216_v32 = vadd.f32 %v3236_v10, %v3148_v3  ;;  %v3630_v10 = vld [vmem:[%s6989_s18 + $0x40] sm:$0xff] }
 0x3f9   : > { %v3851_v28 = vpack.c.bf16 %v3819_v9, %v3819_v9 }
 0x3fa   : > { %3758 = vrot.lane.b32.xlu0 %v8216_v32, %s6531_s2 }
 0x3fb   : > { %3883 = vst [vmem:[%s8168_s1 + $0x28] sm:$0xf] %v3851_v28 }
 0x3fc   : > { %v3731_v8 = vpop.permute.xlu0 %3730 }
 0x3fd   : > { %v3788_v6 = vmul.f32 %v3731_v8, %v3660_v33  ;;  %v3149_v45 = vpop.f32.mrf.mxu2  ;;  %v2974_v35 = vpop.f32.mrf.mxu0 }
 0x3fe   : > { %v3150_v57 = vadd.f32 %v3149_v45, %v3061_v58  ;;  %v3238_v5 = vpop.f32.mrf.mxu3  ;;  %v3063_v21 = vpop.f32.mrf.mxu1 }
 0x3ff   : > { %v3820_v19 = vadd.f32 %v3788_v6, %v3692_v31  ;;  %v3064_v23 = vadd.f32 %v3063_v21, %v2974_v35  ;;  %v9306_v35 = vld [vmem:[#allocation67_spill] sm:$0xff]  ;;  %v9307_v21 = vld [vmem:[#allocation68_spill] sm:$0xff] }
 0x400   : > { %v8224_v20 = vadd.f32 %v3238_v5, %v3150_v57  ;;  %3289 = vmatmul.bf16.gmra.mxu0 %v7172_v49  ;;  %v3693_v49 = vmul.f32 %v3629_v48, %v8102_v29  ;;  %v3694_v29 = vmul.f32 %v3630_v10, %v8114_v37  ;;  %v9309_v37 = vld [vmem:[#allocation70_spill] sm:$0xff]  ;;  %v3663_v48 = vld [vmem:[%s6995_s24 + $0x48] sm:$0xff] }
 0x401   : > { %v3852_v47 = vpack.c.bf16 %v3820_v19, %v3820_v19  ;;  %3378 = vmatmul.bf16.gmra.mxu1 %v7174_v50 }
 0x402   : > { %3467 = vmatmul.bf16.gmra.mxu2 %v9281_v51  ;;  %3760 = vrot.lane.b32.xlu1 %v8224_v20, %s6531_s2 }
 0x403   : > { %3884 = vst [vmem:[%s8168_s1 + $0x30] sm:$0xf] %v3852_v47  ;;  %3556 = vmatmul.bf16.gmra.mxu3 %v9305_v39  ;;  %v9308_v47 = vld [vmem:[#allocation69_spill] sm:$0xff] }
 0x404   : > { %v3733_v59 = vpop.permute.xlu1 %3732 }
 0x405   : > { %v3152_v41 = vpop.f32.mrf.mxu2  ;;  %v3789_v11 = vmul.f32 %v3733_v59, %v3661_v30  ;;  %v2976_v24 = vpop.f32.mrf.mxu0 }
 0x406   : > { %v3153_v12 = vadd.f32 %v3152_v41, %v3064_v23  ;;  %v3241_v50 = vpop.f32.mrf.mxu3  ;;  %v3065_v51 = vpop.f32.mrf.mxu1  ;;  %v3631_v23 = vld [vmem:[%s6989_s18 + $0x48] sm:$0xff] }
 0x407   : > { %v3821_v14 = vadd.f32 %v3789_v11, %v3693_v49  ;;  %v3066_v9 = vadd.f32 %v3065_v51, %v2976_v24  ;;  %v3695_v59 = vmul.f32 %v3631_v23, %v8122_v38 }
 0x408   : > { %v8236_v3 = vadd.f32 %v3241_v50, %v3153_v12 }
 0x409   : > { %v3853_v13 = vpack.c.bf16 %v3821_v14, %v3821_v14  ;;  %v3632_v14 = vld [vmem:[%s6989_s18 + $0x50] sm:$0xff] }
 0x40a   : > { %3762 = vrot.lane.b32.xlu0 %v8236_v3, %s6531_s2  ;;  %v3696_v38 = vmul.f32 %v3632_v14, %v8130_v52  ;;  %v9313_v52 = vld [vmem:[#allocation74_spill] sm:$0xff] }
 0x40b   : > { %3885 = vst [vmem:[%s8168_s1 + $0x38] sm:$0xf] %v3853_v13  ;;  %v3664_v13 = vld [vmem:[%s6995_s24 + $0x50] sm:$0xff] }
 0x40c   : > { %v3735_v2 = vpop.permute.xlu0 %3734 }
 0x40d   : > { %v3790_v28 = vmul.f32 %v3735_v2, %v3662_v43  ;;  %v3154_v33 = vpop.f32.mrf.mxu2  ;;  %v2979_v31 = vpop.f32.mrf.mxu0 }
 0x40e   : > { %v3155_v58 = vadd.f32 %v3154_v33, %v3066_v9  ;;  %v3243_v8 = vpop.f32.mrf.mxu3  ;;  %v3068_v45 = vpop.f32.mrf.mxu1 }
 0x40f   : > { %v3822_v6 = vadd.f32 %v3790_v28, %v3694_v29  ;;  %v3069_v19 = vadd.f32 %v3068_v45, %v2979_v31 }
 0x410   : > { %v8244_v57 = vadd.f32 %v3243_v8, %v3155_v58  ;;  %3294 = vmatmul.bf16.gmra.mxu0 %v9306_v35 }
 0x411   : > { %v3854_v5 = vpack.c.bf16 %v3822_v6, %v3822_v6  ;;  %3383 = vmatmul.bf16.gmra.mxu1 %v9307_v21  ;;  %v9312_v21 = vld [vmem:[#allocation73_spill] sm:$0xff] }
 0x412   : > { %3472 = vmatmul.bf16.gmra.mxu2 %v9308_v47  ;;  %3764 = vrot.lane.b32.xlu1 %v8244_v57, %s6531_s2  ;;  %v3633_v47 = vld [vmem:[%s6989_s18 + $0x58] sm:$0xff] }
 0x413   : > { %3886 = vst [vmem:[%s8168_s1 + $0x40] sm:$0xf] %v3854_v5  ;;  %3561 = vmatmul.bf16.gmra.mxu3 %v9309_v37  ;;  %v9310_v5 = vld [vmem:[#allocation71_spill] sm:$0xff] }
 0x414   : > { %v3737_v39 = vpop.permute.xlu1 %3736  ;;  %v3665_v37 = vld [vmem:[%s6995_s24 + $0x58] sm:$0xff] }
 0x415   : > { %v3157_v30 = vpop.f32.mrf.mxu2  ;;  %v3791_v41 = vmul.f32 %v3737_v39, %v3663_v48  ;;  %v2981_v12 = vpop.f32.mrf.mxu0  ;;  %v3697_v39 = vmul.f32 %v3633_v47, %v8134_v7 }
 0x416   : > { %v3158_v49 = vadd.f32 %v3157_v30, %v3069_v19  ;;  %v3246_v11 = vpop.f32.mrf.mxu3  ;;  %v3070_v50 = vpop.f32.mrf.mxu1  ;;  %v9311_v19 = vld [vmem:[#allocation72_spill] sm:$0xff] }
 0x417   : > { %v3823_v24 = vadd.f32 %v3791_v41, %v3695_v59  ;;  %v3071_v43 = vadd.f32 %v3070_v50, %v2981_v12 }
 0x418   : > { %v8256_v51 = vadd.f32 %v3246_v11, %v3158_v49 }
 0x419   : > { %v3855_v10 = vpack.c.bf16 %v3823_v24, %v3823_v24  ;;  %v3634_v24 = vld [vmem:[%s6989_s18 + $0x60] sm:$0xff] }
 0x41a   : > { %3766 = vrot.lane.b32.xlu0 %v8256_v51, %s6531_s2  ;;  %v3698_v7 = vmul.f32 %v3634_v24, %v8142_v61  ;;  %v9317_v61 = vld [vmem:[#allocation78_spill] sm:$0xff] }
 0x41b   : > { %3887 = vst [vmem:[%s8168_s1 + $0x48] sm:$0xf] %v3855_v10  ;;  %v3666_v10 = vld [vmem:[%s6995_s24 + $0x60] sm:$0xff] }
 0x41c   : > { %v3739_v9 = vpop.permute.xlu0 %3738 }
 0x41d   : > { %v3792_v2 = vmul.f32 %v3739_v9, %v3664_v13  ;;  %v3159_v29 = vpop.f32.mrf.mxu2  ;;  %v2984_v58 = vpop.f32.mrf.mxu0 }
 0x41e   : > { %v3160_v28 = vadd.f32 %v3159_v29, %v3071_v43  ;;  %v3248_v33 = vpop.f32.mrf.mxu3  ;;  %v3073_v31 = vpop.f32.mrf.mxu1 }
 0x41f   : > { %v3824_v8 = vadd.f32 %v3792_v2, %v3696_v38  ;;  %v3074_v35 = vadd.f32 %v3073_v31, %v2984_v58 }
 0x420   : > { %v8264_v6 = vadd.f32 %v3248_v33, %v3160_v28  ;;  %3299 = vmatmul.bf16.gmra.mxu0 %v9310_v5 }
 0x421   : > { %v3856_v45 = vpack.c.bf16 %v3824_v8, %v3824_v8  ;;  %3388 = vmatmul.bf16.gmra.mxu1 %v9311_v19  ;;  %v9316_v19 = vld [vmem:[#allocation77_spill] sm:$0xff] }
 0x422   : > { %3477 = vmatmul.bf16.gmra.mxu2 %v9312_v21  ;;  %3768 = vrot.lane.b32.xlu1 %v8264_v6, %s6531_s2  ;;  %v3635_v21 = vld [vmem:[%s6989_s18 + $0x68] sm:$0xff] }
 0x423   : > { %3888 = vst [vmem:[%s8168_s1 + $0x50] sm:$0xf] %v3856_v45  ;;  %3566 = vmatmul.bf16.gmra.mxu3 %v9313_v52  ;;  %v9314_v45 = vld [vmem:[#allocation75_spill] sm:$0xff]  ;;  %v3667_v52 = vld [vmem:[%s6995_s24 + $0x68] sm:$0xff] }
 0x424   : > { %v3741_v23 = vpop.permute.xlu1 %3740 }
 0x425   : > { %v3162_v48 = vpop.f32.mrf.mxu2  ;;  %v3793_v30 = vmul.f32 %v3741_v23, %v3665_v37  ;;  %v2986_v49 = vpop.f32.mrf.mxu0  ;;  %v3699_v23 = vmul.f32 %v3635_v21, %v8146_v55 }
 0x426   : > { %v3163_v59 = vadd.f32 %v3162_v48, %v3074_v35  ;;  %v3251_v41 = vpop.f32.mrf.mxu3  ;;  %v3075_v11 = vpop.f32.mrf.mxu1  ;;  %v9315_v35 = vld [vmem:[#allocation76_spill] sm:$0xff] }
 0x427   : > { %v3825_v12 = vadd.f32 %v3793_v30, %v3697_v39  ;;  %v3076_v13 = vadd.f32 %v3075_v11, %v2986_v49 }
 0x428   : > { %v8276_v50 = vadd.f32 %v3251_v41, %v3163_v59 }
 0x429   : > { %v3857_v14 = vpack.c.bf16 %v3825_v12, %v3825_v12  ;;  %v3636_v12 = vld [vmem:[%s6989_s18 + $0x70] sm:$0xff] }
 0x42a   : > { %3770 = vrot.lane.b32.xlu0 %v8276_v50, %s6531_s2  ;;  %v3700_v55 = vmul.f32 %v3636_v12, %v8154_v53  ;;  %v9319_v53 = vld [vmem:[#allocation82_spill] sm:$0xff] }
 0x42b   : > { %3889 = vst [vmem:[%s8168_s1 + $0x58] sm:$0xf] %v3857_v14  ;;  %v3668_v14 = vld [vmem:[%s6995_s24 + $0x70] sm:$0xff] }
 0x42c   : > { %v3743_v43 = vpop.permute.xlu0 %3742 }
 0x42d   : > { %v3794_v9 = vmul.f32 %v3743_v43, %v3666_v10  ;;  %v3164_v38 = vpop.f32.mrf.mxu2  ;;  %v2989_v28 = vpop.f32.mrf.mxu0 }
 0x42e   : > { %v3165_v2 = vadd.f32 %v3164_v38, %v3076_v13  ;;  %v3253_v29 = vpop.f32.mrf.mxu3  ;;  %v3078_v58 = vpop.f32.mrf.mxu1 }
 0x42f   : > { %v3826_v33 = vadd.f32 %v3794_v9, %v3698_v7  ;;  %v3079_v5 = vadd.f32 %v3078_v58, %v2989_v28 }
 0x430   : > { %v8284_v8 = vadd.f32 %v3253_v29, %v3165_v2  ;;  %3304 = vmatmul.bf16.gmra.mxu0 %v9314_v45  ;;  %v3637_v45 = vld [vmem:[%s6989_s18 + $0x78] sm:$0xff] }
 0x431   : > { %v3858_v31 = vpack.c.bf16 %v3826_v33, %v3826_v33  ;;  %3393 = vmatmul.bf16.gmra.mxu1 %v9315_v35 }
 0x432   : > { %3482 = vmatmul.bf16.gmra.mxu2 %v9316_v19  ;;  %3772 = vrot.lane.b32.xlu1 %v8284_v8, %s6531_s2 }
 0x433   : > { %3890 = vst [vmem:[%s8168_s1 + $0x60] sm:$0xf] %v3858_v31  ;;  %3571 = vmatmul.bf16.gmra.mxu3 %v9317_v61 }
 0x434   : > { %v3745_v47 = vpop.permute.xlu1 %3744 }
 0x435   : > { %v3167_v37 = vpop.f32.mrf.mxu2  ;;  %v3795_v48 = vmul.f32 %v3745_v47, %v3667_v52  ;;  %v2991_v59 = vpop.f32.mrf.mxu0 }
 0x436   : > { %v3168_v39 = vadd.f32 %v3167_v37, %v3079_v5  ;;  %v3256_v30 = vpop.f32.mrf.mxu3  ;;  %v3080_v41 = vpop.f32.mrf.mxu1  ;;  %v3669_v5 = vld [vmem:[%s6995_s24 + $0x78] sm:$0xff] }
 0x437   : > { %v3827_v49 = vadd.f32 %v3795_v48, %v3699_v23  ;;  %v3081_v10 = vadd.f32 %v3080_v41, %v2991_v59  ;;  %v5901_v47 = vpop.trf.xlu2  ;;  %v3638_v48 = vld [vmem:[%s6989_s18 + $0x80] sm:$0xff] }
 0x438   : > { %v8296_v11 = vadd.f32 %v3256_v30, %v3168_v39  ;;  %v3670_v30 = vld [vmem:[%s6995_s24 + $0x80] sm:$0xff]  ;;  %v5905_v41 = vunpack.i.h.bf16 %v5901_v47  ;;  %v3702_v12 = vmul.f32 %v3638_v48, %v8176_v0 }
 0x439   : > { %v3859_v24 = vpack.c.bf16 %v3827_v49, %v3827_v49  ;;  %v5902_v49 = vunpack.i.l.bf16 %v5901_v47 }
 0x43a   : > { %3774 = vrot.lane.b32.xlu0 %v8296_v11, %s6531_s2 }
 0x43b   : > { %3891 = vst [vmem:[%s8168_s1 + $0x68] sm:$0xf] %v3859_v24 }
 0x43c   : > { %v3747_v13 = vpop.permute.xlu0 %3746 }
 0x43d   : > { %v3796_v43 = vmul.f32 %v3747_v13, %v3668_v14  ;;  %v3169_v7 = vpop.f32.mrf.mxu2  ;;  %v2994_v2 = vpop.f32.mrf.mxu0 }
 0x43e   : > { %v3170_v9 = vadd.f32 %v3169_v7, %v3081_v10  ;;  %v3258_v38 = vpop.f32.mrf.mxu3  ;;  %v3083_v28 = vpop.f32.mrf.mxu1 }
 0x43f   : > { %v3828_v29 = vadd.f32 %v3796_v43, %v3700_v55  ;;  %v3084_v31 = vadd.f32 %v3083_v28, %v2994_v2  ;;  %v2430_v43 = vpack.c.bf16 %v5905_v41, %v5902_v49  ;;  %v9320_v28 = vld [vmem:[#allocation84_spill] sm:$0xff] }
 0x440   : > { %v8304_v33 = vadd.f32 %v3258_v38, %v3170_v9  ;;  %3309 = vmatmul.bf16.gmra.mxu0 %v9295_v15  ;;  %v3701_v15 = vmul.f32 %v3637_v45, %v8162_v60  ;;  %v5906_v38 = vpop.trf.xlu2  ;;  %v3671_v45 = vld [vmem:[%s6995_s24 + $0x88] sm:$0xff] }
 0x441   : > { %v3860_v58 = vpack.c.bf16 %v3828_v29, %v3828_v29  ;;  %3398 = vmatmul.bf16.gmra.mxu1 %v9296_v56  ;;  %2446 = vst [vmem:[%s8327_s8] sm:$0xff] %v2430_v43 }
 0x442   : > { %3487 = vmatmul.bf16.gmra.mxu2 %v9297_v18  ;;  %3776 = vrot.lane.b32.xlu1 %v8304_v33, %s6531_s2 }
 0x443   : > { %3892 = vst [vmem:[%s8168_s1 + $0x70] sm:$0xf] %v3860_v58  ;;  %3576 = vmatmul.bf16.gmra.mxu3 %v9319_v53  ;;  %v9321_v58 = vld [vmem:[#allocation85_spill] sm:$0xff] }
 0x444   : > { %v3749_v35 = vpop.permute.xlu1 %3748  ;;  %v3639_v53 = vld [vmem:[%s6989_s18 + $0x88] sm:$0xff] }
 0x445   : > { %v3172_v19 = vpop.f32.mrf.mxu2  ;;  %v3797_v61 = vmul.f32 %v3749_v35, %v3669_v5  ;;  %v2996_v52 = vpop.f32.mrf.mxu0  ;;  %v5910_v5 = vunpack.i.h.bf16 %v5906_v38  ;;  %v5907_v35 = vunpack.i.l.bf16 %v5906_v38 }
 0x446   : > { %v3173_v21 = vadd.f32 %v3172_v19, %v3084_v31  ;;  %v3261_v56 = vpop.f32.mrf.mxu3  ;;  %v3085_v18 = vpop.f32.mrf.mxu1  ;;  %v9322_v31 = vld [vmem:[#allocation86_spill] sm:$0xff] }
 0x447   : > { %v3829_v37 = vadd.f32 %v3797_v61, %v3701_v15  ;;  %v3086_v59 = vadd.f32 %v3085_v18, %v2996_v52  ;;  %v2431_v15 = vpack.c.bf16 %v5910_v5, %v5907_v35  ;;  %v3703_v61 = vmul.f32 %v3639_v53, %v8184_v22  ;;  %v3641_v53 = vld [vmem:[%s6989_s18 + $0x98] sm:$0xff] }
 0x448   : > { %v8317_v23 = vadd.f32 %v3261_v56, %v3173_v21 }
 0x449   : > { %v3861_v39 = vpack.c.bf16 %v3829_v37, %v3829_v37  ;;  %2447 = vst [vmem:[%s8327_s8 + $0x8] sm:$0xff] %v2431_v15  ;;  %v5911_v37 = vpop.trf.xlu2 }
 0x44a   : > { %3778 = vrot.lane.b32.xlu0 %v8317_v23, %s6531_s2  ;;  %v5915_v49 = vunpack.i.h.bf16 %v5911_v37 }
 0x44b   : > { %3893 = vst [vmem:[%s8168_s1 + $0x78] sm:$0xf] %v3861_v39 }
 0x44c   : > { %v3751_v60 = vpop.permute.xlu0 %3750 }
 0x44d   : > { %v3798_v24 = vmul.f32 %v3751_v60, %v3670_v30  ;;  %v3174_v14 = vpop.f32.mrf.mxu2  ;;  %v3275_v55 = vpop.f32.mrf.mxu0  ;;  %v3640_v30 = vld [vmem:[%s6989_s18 + $0x90] sm:$0xff] }
 0x44e   : > { %v3175_v10 = vadd.f32 %v3174_v14, %v3086_v59  ;;  %v3263_v13 = vpop.f32.mrf.mxu3  ;;  %v3364_v9 = vpop.f32.mrf.mxu1  ;;  %v3672_v60 = vld [vmem:[%s6995_s24 + $0x90] sm:$0xff] }
 0x44f   : > { %v3830_v7 = vadd.f32 %v3798_v24, %v3702_v12  ;;  %v3365_v0 = vadd.f32 %v3364_v9, %v3275_v55  ;;  %v5912_v12 = vunpack.i.l.bf16 %v5911_v37  ;;  %v3704_v24 = vmul.f32 %v3640_v30, %v8196_v1  ;;  %v9323_v1 = vld [vmem:[#allocation90_spill] sm:$0xff] }
 0x450   : > { %v8325_v2 = vadd.f32 %v3263_v13, %v3175_v10  ;;  %3314 = vmatmul.bf16.gmra.mxu0 %v9299_v26 }
 0x451   : > { %v3862_v29 = vpack.c.bf16 %v3830_v7, %v3830_v7  ;;  %3403 = vmatmul.bf16.gmra.mxu1 %v9320_v28  ;;  %v2432_v7 = vpack.c.bf16 %v5915_v49, %v5912_v12 }
 0x452   : > { %3492 = vmatmul.bf16.gmra.mxu2 %v9321_v58  ;;  %3780 = vrot.lane.b32.xlu1 %v8325_v2, %s6531_s2 }
 0x453   : > { %3894 = vst [vmem:[%s8168_s1 + $0x80] sm:$0xf] %v3862_v29  ;;  %3581 = vmatmul.bf16.gmra.mxu3 %v9322_v31  ;;  %v5916_v29 = vpop.trf.xlu2  ;;  %v9324_v31 = vld [vmem:[#allocation91_spill] sm:$0xff] }
 0x454   : > { %v3753_v19 = vpop.permute.xlu1 %3752  ;;  %2448 = vst [vmem:[%s8327_s8 + $0x10] sm:$0xff] %v2432_v7  ;;  %v5920_v5 = vunpack.i.h.bf16 %v5916_v29  ;;  %v5917_v35 = vunpack.i.l.bf16 %v5916_v29 }
 0x455   : > { %v3453_v26 = vpop.f32.mrf.mxu2  ;;  %v3799_v21 = vmul.f32 %v3753_v19, %v3671_v45  ;;  %v3277_v18 = vpop.f32.mrf.mxu0  ;;  %v3673_v45 = vld [vmem:[%s6995_s24 + $0x98] sm:$0xff] }
 0x456   : > { %v3454_v56 = vadd.f32 %v3453_v26, %v3365_v0  ;;  %v3542_v52 = vpop.f32.mrf.mxu3  ;;  %v3366_v47 = vpop.f32.mrf.mxu1  ;;  %v2433_v26 = vpack.c.bf16 %v5920_v5, %v5917_v35 }
 0x457   : > { %v3831_v48 = vadd.f32 %v3799_v21, %v3703_v61  ;;  %v3367_v41 = vadd.f32 %v3366_v47, %v3277_v18 }
 0x458   : > { %v8341_v39 = vadd.f32 %v3542_v52, %v3454_v56  ;;  %2449 = vst [vmem:[%s8327_s8 + $0x18] sm:$0xff] %v2433_v26 }
 0x459   : > { %v3863_v59 = vpack.c.bf16 %v3831_v48, %v3831_v48  ;;  %v3642_v48 = vld [vmem:[%s6989_s18 + $0xa0] sm:$0xff] }
 0x45a   : > { %3942 = vrot.lane.b32.xlu0 %v8341_v39, %s6531_s2  ;;  %v3706_v49 = vmul.f32 %v3642_v48, %v8216_v32  ;;  %v9326_v32 = vld [vmem:[#allocation94_spill] sm:$0xff] }
 0x45b   : > { %3895 = vst [vmem:[%s8168_s1 + $0x88] sm:$0xf] %v3863_v59  ;;  %v5921_v18 = vpop.trf.xlu2  ;;  %v3674_v59 = vld [vmem:[%s6995_s24 + $0xa0] sm:$0xff] }
 0x45c   : > { %v3755_v22 = vpop.permute.xlu0 %3754 }
 0x45d   : > { %v3800_v14 = vmul.f32 %v3755_v22, %v3672_v60  ;;  %v3455_v10 = vpop.f32.mrf.mxu2  ;;  %v3280_v43 = vpop.f32.mrf.mxu0  ;;  %v5922_v22 = vunpack.i.l.bf16 %v5921_v18 }
 0x45e   : > { %v3456_v13 = vadd.f32 %v3455_v10, %v3367_v41  ;;  %v3544_v55 = vpop.f32.mrf.mxu3  ;;  %v3369_v38 = vpop.f32.mrf.mxu1  ;;  %v5925_v41 = vunpack.i.h.bf16 %v5921_v18 }
 0x45f   : > { %v3832_v9 = vadd.f32 %v3800_v14, %v3704_v24  ;;  %v3370_v58 = vadd.f32 %v3369_v38, %v3280_v43 }
 0x460   : > { %v8349_v0 = vadd.f32 %v3544_v55, %v3456_v13  ;;  %3319 = vmatmul.bf16.gmra.mxu0 %v9238_v34  ;;  %v2434_v55 = vpack.c.bf16 %v5925_v41, %v5922_v22 }
 0x461   : > { %v3864_v28 = vpack.c.bf16 %v3832_v9, %v3832_v9  ;;  %3408 = vmatmul.bf16.gmra.mxu1 %v9239_v4  ;;  %v3705_v4 = vmul.f32 %v3641_v53, %v8204_v36  ;;  %v3643_v53 = vld [vmem:[%s6989_s18 + $0xa8] sm:$0xff] }
 0x462   : > { %3497 = vmatmul.bf16.gmra.mxu2 %v9323_v1  ;;  %3944 = vrot.lane.b32.xlu1 %v8349_v0, %s6531_s2  ;;  %2450 = vst [vmem:[%s8327_s8 + $0x20] sm:$0xff] %v2434_v55  ;;  %v9327_v1 = vld [vmem:[#allocation95_spill] sm:$0xff] }
 0x463   : > { %3896 = vst [vmem:[%s8168_s1 + $0x90] sm:$0xf] %v3864_v28  ;;  %3586 = vmatmul.bf16.gmra.mxu3 %v9324_v31  ;;  %v5926_v9 = vpop.trf.xlu2  ;;  %v9325_v28 = vld [vmem:[#allocation93_spill] sm:$0xff]  ;;  %v9328_v31 = vld [vmem:[#allocation96_spill] sm:$0xff] }
 0x464   : > { %v3757_v19 = vpop.permute.xlu1 %3756  ;;  %v5930_v5 = vunpack.i.h.bf16 %v5926_v9  ;;  %v5927_v35 = vunpack.i.l.bf16 %v5926_v9 }
 0x465   : > { %v3458_v34 = vpop.f32.mrf.mxu2  ;;  %v3801_v15 = vmul.f32 %v3757_v19, %v3673_v45  ;;  %v3282_v56 = vpop.f32.mrf.mxu0  ;;  %v3675_v45 = vld [vmem:[%s6995_s24 + $0xa8] sm:$0xff] }
 0x466   : > { %v3459_v61 = vadd.f32 %v3458_v34, %v3370_v58  ;;  %v3547_v21 = vpop.f32.mrf.mxu3  ;;  %v3371_v52 = vpop.f32.mrf.mxu1  ;;  %v2435_v26 = vpack.c.bf16 %v5930_v5, %v5927_v35 }
 0x467   : > { %v3833_v47 = vadd.f32 %v3801_v15, %v3705_v4  ;;  %v3372_v60 = vadd.f32 %v3371_v52, %v3282_v56  ;;  %v3707_v4 = vmul.f32 %v3643_v53, %v8224_v20 }
 0x468   : > { %v8363_v37 = vadd.f32 %v3547_v21, %v3459_v61  ;;  %2451 = vst [vmem:[%s8327_s8 + $0x28] sm:$0xff] %v2435_v26 }
 0x469   : > { %v3865_v30 = vpack.c.bf16 %v3833_v47, %v3833_v47 }
 0x46a   : > { %3946 = vrot.lane.b32.xlu0 %v8363_v37, %s6531_s2 }
 0x46b   : > { %3897 = vst [vmem:[%s8168_s1 + $0x98] sm:$0xf] %v3865_v30  ;;  %v5931_v18 = vpop.trf.xlu2  ;;  %v3644_v30 = vld [vmem:[%s6989_s18 + $0xb0] sm:$0xff] }
 0x46c   : > { %v3759_v36 = vpop.permute.xlu0 %3758  ;;  %v5935_v41 = vunpack.i.h.bf16 %v5931_v18  ;;  %v5932_v22 = vunpack.i.l.bf16 %v5931_v18 }
 0x46d   : > { %v3802_v12 = vmul.f32 %v3759_v36, %v3674_v59  ;;  %v3460_v24 = vpop.f32.mrf.mxu2  ;;  %v3285_v13 = vpop.f32.mrf.mxu0 }
 0x46e   : > { %v3461_v14 = vadd.f32 %v3460_v24, %v3372_v60  ;;  %v3549_v10 = vpop.f32.mrf.mxu3  ;;  %v3374_v7 = vpop.f32.mrf.mxu1  ;;  %v3676_v60 = vld [vmem:[%s6995_s24 + $0xb0] sm:$0xff]  ;;  %v2436_v55 = vpack.c.bf16 %v5935_v41, %v5932_v22 }
 0x46f   : > { %v3834_v43 = vadd.f32 %v3802_v12, %v3706_v49  ;;  %v3375_v58 = vadd.f32 %v3374_v7, %v3285_v13  ;;  %v3708_v49 = vmul.f32 %v3644_v30, %v8236_v3  ;;  %v3645_v3 = vld [vmem:[%s6989_s18 + $0xb8] sm:$0xff] }
 0x470   : > { %v8371_v38 = vadd.f32 %v3549_v10, %v3461_v14  ;;  %3324 = vmatmul.bf16.gmra.mxu0 %v9325_v28  ;;  %2452 = vst [vmem:[%s8327_s8 + $0x30] sm:$0xff] %v2436_v55  ;;  %v9331_v55 = vld [vmem:[#allocation104_spill] sm:$0xff] }
 0x471   : > { %v3866_v29 = vpack.c.bf16 %v3834_v43, %v3834_v43  ;;  %3413 = vmatmul.bf16.gmra.mxu1 %v9326_v32  ;;  %v3677_v32 = vld [vmem:[%s6995_s24 + $0xb8] sm:$0xff] }
 0x472   : > { %3502 = vmatmul.bf16.gmra.mxu2 %v9327_v1  ;;  %3948 = vrot.lane.b32.xlu1 %v8371_v38, %s6531_s2 }
 0x473   : > { %3898 = vst [vmem:[%s8168_s1 + $0xa0] sm:$0xf] %v3866_v29  ;;  %3591 = vmatmul.bf16.gmra.mxu3 %v9328_v31  ;;  %v5936_v9 = vpop.trf.xlu2 }
 0x474   : > { %v3761_v19 = vpop.permute.xlu1 %3760  ;;  %v5940_v1 = vunpack.i.h.bf16 %v5936_v9  ;;  %v5937_v31 = vunpack.i.l.bf16 %v5936_v9  ;;  %v8435_v9 = vld [vmem:[%s6995_s24 + $0xc8] sm:$0xff] }
 0x475   : > { %v3463_v34 = vpop.f32.mrf.mxu2  ;;  %v3803_v15 = vmul.f32 %v3761_v19, %v3675_v45  ;;  %v3287_v56 = vpop.f32.mrf.mxu0 }
 0x476   : > { %v3464_v61 = vadd.f32 %v3463_v34, %v3375_v58  ;;  %v3552_v21 = vpop.f32.mrf.mxu3  ;;  %v3376_v52 = vpop.f32.mrf.mxu1  ;;  %v2437_v45 = vpack.c.bf16 %v5940_v1, %v5937_v31 }
 0x477   : > { %v3835_v47 = vadd.f32 %v3803_v15, %v3707_v4  ;;  %v3377_v36 = vadd.f32 %v3376_v52, %v3287_v56  ;;  %v8410_v15 = vld [vmem:[%s6989_s18 + $0xc0] sm:$0xff] }
 0x478   : > { %v8385_v48 = vadd.f32 %v3552_v21, %v3464_v61  ;;  %2453 = vst [vmem:[%s8327_s8 + $0x38] sm:$0xff] %v2437_v45  ;;  %v8415_v21 = vld [vmem:[%s6995_s24 + $0xc0] sm:$0xff] }
 0x479   : > { %v3867_v59 = vpack.c.bf16 %v3835_v47, %v3835_v47  ;;  %v3710_v47 = vmul.f32 %v8410_v15, %v8256_v51 }
 0x47a   : > { %3950 = vrot.lane.b32.xlu0 %v8385_v48, %s6531_s2 }
 0x47b   : > { %3899 = vst [vmem:[%s8168_s1 + $0xa8] sm:$0xf] %v3867_v59  ;;  %v5941_v34 = vpop.trf.xlu2 }
 0x47c   : > { %v3763_v20 = vpop.permute.xlu0 %3762  ;;  %v5945_v52 = vunpack.i.h.bf16 %v5941_v34  ;;  %v5942_v18 = vunpack.i.l.bf16 %v5941_v34 }
 0x47d   : > { %v3804_v12 = vmul.f32 %v3763_v20, %v3676_v60  ;;  %v3465_v24 = vpop.f32.mrf.mxu2  ;;  %v3290_v13 = vpop.f32.mrf.mxu0 }
 0x47e   : > { %v3466_v14 = vadd.f32 %v3465_v24, %v3377_v36  ;;  %v3554_v10 = vpop.f32.mrf.mxu3  ;;  %v3379_v7 = vpop.f32.mrf.mxu1  ;;  %v2438_v41 = vpack.c.bf16 %v5945_v52, %v5942_v18 }
 0x47f   : > { %v3836_v43 = vadd.f32 %v3804_v12, %v3708_v49  ;;  %v3380_v58 = vadd.f32 %v3379_v7, %v3290_v13  ;;  %v9330_v13 = vld [vmem:[#allocation103_spill] sm:$0xff]  ;;  %v8432_v7 = vld [vmem:[%s6989_s18 + $0xc8] sm:$0xff] }
 0x480   : > { %v8393_v29 = vadd.f32 %v3554_v10, %v3466_v14  ;;  %3329 = vmatmul.bf16.gmra.mxu0 %v9251_v25  ;;  %2454 = vst [vmem:[%s8327_s8 + $0x40] sm:$0xff] %v2438_v41  ;;  %v9329_v10 = vld [vmem:[#allocation102_spill] sm:$0xff]  ;;  %v3711_v31 = vmul.f32 %v8432_v7, %v8264_v6 }
 0x481   : > { %v3868_v28 = vpack.c.bf16 %v3836_v43, %v3836_v43  ;;  %3418 = vmatmul.bf16.gmra.mxu1 %v9252_v27  ;;  %v3709_v27 = vmul.f32 %v3645_v3, %v8244_v57  ;;  %v9332_v43 = vld [vmem:[#allocation105_spill] sm:$0xff] }
 0x482   : > { %3507 = vmatmul.bf16.gmra.mxu2 %v9253_v42  ;;  %3952 = vrot.lane.b32.xlu1 %v8393_v29, %s6531_s2 }
 0x483   : > { %3900 = vst [vmem:[%s8168_s1 + $0xb0] sm:$0xf] %v3868_v28  ;;  %3596 = vmatmul.bf16.gmra.mxu3 %v9254_v44  ;;  %v5946_v12 = vpop.trf.xlu2 }
 0x484   : > { %v3765_v53 = vpop.permute.xlu1 %3764  ;;  %v5950_v28 = vunpack.i.h.bf16 %v5946_v12 }
 0x485   : > { %v3468_v25 = vpop.f32.mrf.mxu2  ;;  %v3805_v42 = vmul.f32 %v3765_v53, %v3677_v32  ;;  %v3292_v19 = vpop.f32.mrf.mxu0 }
 0x486   : > { %v3469_v5 = vadd.f32 %v3468_v25, %v3380_v58  ;;  %v3557_v35 = vpop.f32.mrf.mxu3  ;;  %v3381_v44 = vpop.f32.mrf.mxu1  ;;  %v5947_v58 = vunpack.i.l.bf16 %v5946_v12 }
 0x487   : > { %v3837_v26 = vadd.f32 %v3805_v42, %v3709_v27  ;;  %v3382_v57 = vadd.f32 %v3381_v44, %v3292_v19  ;;  %v8444_v44 = vld [vmem:[%s6989_s18 + $0xd0] sm:$0xff] }
 0x488   : > { %v8407_v4 = vadd.f32 %v3557_v35, %v3469_v5  ;;  %v2439_v1 = vpack.c.bf16 %v5950_v28, %v5947_v58  ;;  %v3712_v52 = vmul.f32 %v8444_v44, %v8276_v50 }
 0x489   : > { %v3869_v61 = vpack.c.bf16 %v3837_v26, %v3837_v26  ;;  %v8449_v26 = vld [vmem:[%s6995_s24 + $0xd0] sm:$0xff] }
 0x48a   : > { %3954 = vrot.lane.b32.xlu2 %v8407_v4, %s6531_s2  ;;  %2455 = vst [vmem:[%s8327_s8 + $0x48] sm:$0xff] %v2439_v1 }
 0x48b   : > { %3901 = vst [vmem:[%s8168_s1 + $0xb8] sm:$0xf] %v3869_v61  ;;  %v5951_v5 = vpop.trf.xlu2 }
 0x48c   : > { %v3767_v56 = vpop.permute.xlu0 %3766 }
 0x48d   : > { %v3806_v30 = vmul.f32 %v3767_v56, %v8415_v21  ;;  %v3470_v59 = vpop.f32.mrf.mxu2  ;;  %v3295_v20 = vpop.f32.mrf.mxu0  ;;  %v5952_v56 = vunpack.i.l.bf16 %v5951_v5 }
 0x48e   : > { %v3471_v60 = vadd.f32 %v3470_v59, %v3382_v57  ;;  %v3559_v36 = vpop.f32.mrf.mxu3  ;;  %v3384_v49 = vpop.f32.mrf.mxu1  ;;  %v5955_v57 = vunpack.i.h.bf16 %v5951_v5 }
 0x48f   : > { %v3838_v22 = vadd.f32 %v3806_v30, %v3710_v47  ;;  %v3385_v51 = vadd.f32 %v3384_v49, %v3295_v20 }
 0x490   : > { %v8421_v24 = vadd.f32 %v3559_v36, %v3471_v60  ;;  %3334 = vmatmul.bf16.gmra.mxu0 %v9329_v10  ;;  %v2440_v36 = vpack.c.bf16 %v5955_v57, %v5952_v56  ;;  %v8469_v10 = vld [vmem:[%s6995_s24 + $0xd8] sm:$0xff] }
 0x491   : > { %v3870_v14 = vpack.c.bf16 %v3838_v22, %v3838_v22  ;;  %3423 = vmatmul.bf16.gmra.mxu1 %v9330_v13 }
 0x492   : > { %3512 = vmatmul.bf16.gmra.mxu2 %v9331_v55  ;;  %3956 = vrot.lane.b32.xlu0 %v8421_v24, %s6531_s2  ;;  %2456 = vst [vmem:[%s8327_s8 + $0x50] sm:$0xff] %v2440_v36  ;;  %v9333_v36 = vld [vmem:[#allocation113_spill] sm:$0xff] }
 0x493   : > { %3902 = vst [vmem:[%s8168_s1 + $0xc0] sm:$0xf] %v3870_v14  ;;  %3601 = vmatmul.bf16.gmra.mxu3 %v9332_v43  ;;  %v5956_v22 = vpop.trf.xlu2  ;;  %v8466_v14 = vld [vmem:[%s6989_s18 + $0xd8] sm:$0xff] }
 0x494   : > { %v3769_v3 = vpop.permute.xlu1 %3768  ;;  %v5957_v13 = vunpack.i.l.bf16 %v5956_v22 }
 0x495   : > { %v3473_v32 = vpop.f32.mrf.mxu2  ;;  %v3807_v53 = vmul.f32 %v3769_v3, %v8435_v9  ;;  %v3297_v27 = vpop.f32.mrf.mxu0 }
 0x496   : > { %v3474_v25 = vadd.f32 %v3473_v32, %v3385_v51  ;;  %v3562_v45 = vpop.f32.mrf.mxu3  ;;  %v3386_v42 = vpop.f32.mrf.mxu1  ;;  %v5960_v51 = vunpack.i.h.bf16 %v5956_v22 }
 0x497   : > { %v3839_v35 = vadd.f32 %v3807_v53, %v3711_v31  ;;  %v3387_v6 = vadd.f32 %v3386_v42, %v3297_v27  ;;  %v8478_v53 = vld [vmem:[%s6989_s18 + $0xe0] sm:$0xff] }
 0x498   : > { %v8441_v19 = vadd.f32 %v3562_v45, %v3474_v25  ;;  %v8483_v45 = vld [vmem:[%s6995_s24 + $0xe0] sm:$0xff] }
 0x499   : > { %v3871_v34 = vpack.c.bf16 %v3839_v35, %v3839_v35  ;;  %v3714_v35 = vmul.f32 %v8478_v53, %v8296_v11 }
 0x49a   : > { %3958 = vrot.lane.b32.xlu1 %v8441_v19, %s6531_s2 }
 0x49b   : > { %3903 = vst [vmem:[%s8168_s1 + $0xc8] sm:$0xf] %v3871_v34  ;;  %v5961_v32 = vpop.trf.xlu2 }
 0x49c   : > { %v3771_v61 = vpop.permute.xlu0 %3770  ;;  %v5965_v42 = vunpack.i.h.bf16 %v5961_v32  ;;  %v5962_v5 = vunpack.i.l.bf16 %v5961_v32 }
 0x49d   : > { %v3808_v18 = vmul.f32 %v3771_v61, %v8449_v26  ;;  %v3475_v47 = vpop.f32.mrf.mxu2  ;;  %v3300_v60 = vpop.f32.mrf.mxu0 }
 0x49e   : > { %v3476_v30 = vadd.f32 %v3475_v47, %v3387_v6  ;;  %v3564_v59 = vpop.f32.mrf.mxu3  ;;  %v3389_v41 = vpop.f32.mrf.mxu1 }
 0x49f   : > { %v3840_v20 = vadd.f32 %v3808_v18, %v3712_v52  ;;  %v3390_v50 = vadd.f32 %v3389_v41, %v3300_v60  ;;  %v2442_v52 = vpack.c.bf16 %v5965_v42, %v5962_v5  ;;  %v8503_v41 = vld [vmem:[%s6995_s24 + $0xe8] sm:$0xff] }
 0x4a0   : > { %v8455_v49 = vadd.f32 %v3564_v59, %v3476_v30  ;;  %3339 = vmatmul.bf16.gmra.mxu0 %v9262_v40 }
 0x4a1   : > { %v3872_v12 = vpack.c.bf16 %v3840_v20, %v3840_v20  ;;  %3428 = vmatmul.bf16.gmra.mxu1 %v9263_v46  ;;  %v2441_v46 = vpack.c.bf16 %v5960_v51, %v5957_v13  ;;  %2458 = vst [vmem:[%s8327_s8 + $0x60] sm:$0xff] %v2442_v52  ;;  %v8500_v20 = vld [vmem:[%s6989_s18 + $0xe8] sm:$0xff] }
 0x4a2   : > { %3517 = vmatmul.bf16.gmra.mxu2 %v9264_v63  ;;  %3960 = vrot.lane.b32.xlu0 %v8455_v49, %s6531_s2  ;;  %v3713_v63 = vmul.f32 %v8466_v14, %v8284_v8 }
 0x4a3   : > { %3904 = vst [vmem:[%s8168_s1 + $0xd0] sm:$0xf] %v3872_v12  ;;  %3606 = vmatmul.bf16.gmra.mxu3 %v9265_v54  ;;  %v5966_v30 = vpop.trf.xlu2 }
 0x4a4   : > { %v3773_v40 = vpop.permute.xlu1 %3772  ;;  %2457 = vst [vmem:[%s8327_s8 + $0x58] sm:$0xff] %v2441_v46  ;;  %v5970_v22 = vunpack.i.h.bf16 %v5966_v30  ;;  %v5967_v12 = vunpack.i.l.bf16 %v5966_v30  ;;  %v9335_v30 = vld [vmem:[#allocation115_spill] sm:$0xff] }
 0x4a5   : > { %v3478_v55 = vpop.f32.mrf.mxu2  ;;  %v3809_v54 = vmul.f32 %v3773_v40, %v8469_v10  ;;  %v3302_v58 = vpop.f32.mrf.mxu0 }
 0x4a6   : > { %v3479_v43 = vadd.f32 %v3478_v55, %v3390_v50  ;;  %v3567_v28 = vpop.f32.mrf.mxu3  ;;  %v3391_v3 = vpop.f32.mrf.mxu1 }
 0x4a7   : > { %v3841_v1 = vadd.f32 %v3809_v54, %v3713_v63  ;;  %v3392_v8 = vadd.f32 %v3391_v3, %v3302_v58  ;;  %v8517_v3 = vld [vmem:[%s6995_s24 + $0xf0] sm:$0xff] }
 0x4a8   : > { %v8475_v31 = vadd.f32 %v3567_v28, %v3479_v43  ;;  %v8512_v28 = vld [vmem:[%s6989_s18 + $0xf0] sm:$0xff] }
 0x4a9   : > { %v3873_v25 = vpack.c.bf16 %v3841_v1, %v3841_v1 }
 0x4aa   : > { %3962 = vrot.lane.b32.xlu1 %v8475_v31, %s6531_s2 }
 0x4ab   : > { %3905 = vst [vmem:[%s8168_s1 + $0xd8] sm:$0xf] %v3873_v25  ;;  %v5971_v63 = vpop.trf.xlu2 }
 0x4ac   : > { %v3775_v27 = vpop.permute.xlu0 %3774  ;;  %v5975_v1 = vunpack.i.h.bf16 %v5971_v63  ;;  %v5972_v25 = vunpack.i.l.bf16 %v5971_v63 }
 0x4ad   : > { %v3810_v34 = vmul.f32 %v3775_v27, %v8483_v45  ;;  %v3480_v6 = vpop.f32.mrf.mxu2  ;;  %v3305_v56 = vpop.f32.mrf.mxu0 }
 0x4ae   : > { %v3481_v61 = vadd.f32 %v3480_v6, %v3392_v8  ;;  %v3569_v57 = vpop.f32.mrf.mxu3  ;;  %v3394_v47 = vpop.f32.mrf.mxu1  ;;  %v3716_v8 = vmul.f32 %v8512_v28, %v8317_v23  ;;  %v2444_v6 = vpack.c.bf16 %v5975_v1, %v5972_v25 }
 0x4af   : > { %v3842_v18 = vadd.f32 %v3810_v34, %v3714_v35  ;;  %v3395_v11 = vadd.f32 %v3394_v47, %v3305_v56  ;;  %v9334_v47 = vld [vmem:[#allocation114_spill] sm:$0xff] }
 0x4b0   : > { %v8489_v59 = vadd.f32 %v3569_v57, %v3481_v61  ;;  %3344 = vmatmul.bf16.gmra.mxu0 %v9267_v16  ;;  %2460 = vst [vmem:[%s8327_s8 + $0x70] sm:$0xff] %v2444_v6 }
 0x4b1   : > { %v3874_v60 = vpack.c.bf16 %v3842_v18, %v3842_v18  ;;  %3433 = vmatmul.bf16.gmra.mxu1 %v9268_v62  ;;  %v2443_v62 = vpack.c.bf16 %v5970_v22, %v5967_v12  ;;  %v8537_v22 = vld [vmem:[%s6995_s24 + $0xf8] sm:$0xff] }
 0x4b2   : > { %3522 = vmatmul.bf16.gmra.mxu2 %v9269_v17  ;;  %3964 = vrot.lane.b32.xlu0 %v8489_v59, %s6531_s2  ;;  %v3715_v17 = vmul.f32 %v8500_v20, %v8304_v33 }
 0x4b3   : > { %3906 = vst [vmem:[%s8168_s1 + $0xe0] sm:$0xf] %v3874_v60  ;;  %3611 = vmatmul.bf16.gmra.mxu3 %v9333_v36  ;;  %v5976_v56 = vpop.trf.xlu2  ;;  %v9336_v60 = vld [vmem:[#allocation116_spill] sm:$0xff]  ;;  %v8534_v36 = vld [vmem:[%s6989_s18 + $0xf8] sm:$0xff] }
 0x4b4   : > { %v3777_v16 = vpop.permute.xlu1 %3776  ;;  %2459 = vst [vmem:[%s8327_s8 + $0x68] sm:$0xff] %v2443_v62  ;;  %v5980_v12 = vunpack.i.h.bf16 %v5976_v56 }
 0x4b5   : > { %v3483_v50 = vpop.f32.mrf.mxu2  ;;  %v3811_v51 = vmul.f32 %v3777_v16, %v8503_v41  ;;  %v3307_v55 = vpop.f32.mrf.mxu0  ;;  %v5977_v16 = vunpack.i.l.bf16 %v5976_v56 }
 0x4b6   : > { %v3484_v13 = vadd.f32 %v3483_v50, %v3395_v11  ;;  %v3572_v40 = vpop.f32.mrf.mxu3  ;;  %v3396_v46 = vpop.f32.mrf.mxu1  ;;  %v9337_v11 = vld [vmem:[#allocation117_spill] sm:$0xff] }
 0x4b7   : > { %v3843_v54 = vadd.f32 %v3811_v51, %v3715_v17  ;;  %v3397_v33 = vadd.f32 %v3396_v46, %v3307_v55  ;;  %v2445_v17 = vpack.c.bf16 %v5980_v12, %v5977_v16  ;;  %v3717_v51 = vmul.f32 %v8534_v36, %v8325_v2  ;;  %v5981_v2 = vld [vmem:[%s6989_s18] sm:$0xff] }
 0x4b8   : > { %v8509_v43 = vadd.f32 %v3572_v40, %v3484_v13  ;;  %v3910_v25 = vmul.f32 %v5981_v2, %v8341_v39 }
 0x4b9   : > { %v3875_v58 = vpack.c.bf16 %v3843_v54, %v3843_v54  ;;  %2461 = vst [vmem:[%s8327_s8 + $0x78] sm:$0xff] %v2445_v17 }
 0x4ba   : > { %3966 = vrot.lane.b32.xlu1 %v8509_v43, %s6531_s2 }
 0x4bb   : > { %3907 = vst [vmem:[%s8168_s1 + $0xe8] sm:$0xf] %v3875_v58 }
 0x4bc   : > { %v3779_v32 = vpop.permute.xlu0 %3778 }
 0x4bd   : > { %v3812_v27 = vmul.f32 %v3779_v32, %v8517_v3  ;;  %v3485_v42 = vpop.f32.mrf.mxu2  ;;  %v3310_v34 = vpop.f32.mrf.mxu0 }
 0x4be   : > { %v3486_v5 = vadd.f32 %v3485_v42, %v3397_v33  ;;  %v3574_v35 = vpop.f32.mrf.mxu3  ;;  %v3399_v57 = vpop.f32.mrf.mxu1 }
 0x4bf   : > { %v3844_v61 = vadd.f32 %v3812_v27, %v3716_v8  ;;  %v3400_v23 = vadd.f32 %v3399_v57, %v3310_v34  ;;  %v5982_v8 = vld [vmem:[%s6995_s24] sm:$0xff] }
 0x4c0   : > { %v8523_v52 = vadd.f32 %v3574_v35, %v3486_v5  ;;  %3349 = vmatmul.bf16.gmra.mxu0 %v9334_v47 }
 0x4c1   : > { %v3876_v18 = vpack.c.bf16 %v3844_v61, %v3844_v61  ;;  %3438 = vmatmul.bf16.gmra.mxu1 %v9335_v30 }
 0x4c2   : > { %3527 = vmatmul.bf16.gmra.mxu2 %v9336_v60  ;;  %3968 = vrot.lane.b32.xlu0 %v8523_v52, %s6531_s2  ;;  %v5984_v60 = vld [vmem:[%s6995_s24 + $0x8] sm:$0xff] }
 0x4c3   : > { %3908 = vst [vmem:[%s8168_s1 + $0xf0] sm:$0xf] %v3876_v18  ;;  %3616 = vmatmul.bf16.gmra.mxu3 %v9337_v11 }
 0x4c4   : > { %v3781_v50 = vpop.permute.xlu1 %3780 }
 0x4c5   : > { %v3488_v62 = vpop.f32.mrf.mxu2  ;;  %v3813_v13 = vmul.f32 %v3781_v50, %v8537_v22  ;;  %v3312_v46 = vpop.f32.mrf.mxu0 }
 0x4c6   : > { %v3489_v40 = vadd.f32 %v3488_v62, %v3400_v23  ;;  %v3577_v55 = vpop.f32.mrf.mxu3  ;;  %v3401_v63 = vpop.f32.mrf.mxu1  ;;  %v5983_v23 = vld [vmem:[%s6989_s18 + $0x8] sm:$0xff] }
 0x4c7   : > { %v3845_v54 = vadd.f32 %v3813_v13, %v3717_v51  ;;  %v3402_v32 = vadd.f32 %v3401_v63, %v3312_v46  ;;  %v3911_v30 = vmul.f32 %v5983_v23, %v8349_v0  ;;  %v5985_v46 = vld [vmem:[%s6989_s18 + $0x10] sm:$0xff]  ;;  %v5990_v23 = vld [vmem:[%s6995_s24 + $0x18] sm:$0xff] }
 0x4c8   : > { %v8543_v58 = vadd.f32 %v3577_v55, %v3489_v40  ;;  %v3912_v0 = vmul.f32 %v5985_v46, %v8363_v37  ;;  %v5986_v63 = vld [vmem:[%s6995_s24 + $0x10] sm:$0xff] }
 0x4c9   : > { %v3877_v33 = vpack.c.bf16 %v3845_v54, %v3845_v54 }
 0x4ca   : > { %3970 = vrot.lane.b32.xlu1 %v8543_v58, %s6531_s2 }
 0x4cb   : > { %3909 = vst [vmem:[%s8168_s1 + $0xf8] sm:$0xf] %v3877_v33 }
 0x4cc   : > { %v3943_v1 = vpop.permute.xlu0 %3942 }
 0x4cd   : > { %v4006_v27 = vmul.f32 %v5982_v8, %v3943_v1  ;;  %v3490_v42 = vpop.f32.mrf.mxu2  ;;  %v3315_v34 = vpop.f32.mrf.mxu0 }
 0x4ce   : > { %v3491_v5 = vadd.f32 %v3490_v42, %v3402_v32  ;;  %v3579_v35 = vpop.f32.mrf.mxu3  ;;  %v3404_v61 = vpop.f32.mrf.mxu1 }
 0x4cf   : > { %v4038_v6 = vadd.f32 %v4006_v27, %v3910_v25  ;;  %v3405_v18 = vadd.f32 %v3404_v61, %v3315_v34  ;;  %v5988_v61 = vld [vmem:[%s6995_s24 + $0x30] sm:$0xff] }
 0x4d0   : > { %v8551_v57 = vadd.f32 %v3579_v35, %v3491_v5  ;;  %v5987_v35 = vld [vmem:[%s6989_s18 + $0x30] sm:$0xff] }
 0x4d1   : > { %v4070_v56 = vpack.c.bf16 %v4038_v6, %v4038_v6  ;;  %v3916_v34 = vmul.f32 %v5987_v35, %v8407_v4  ;;  %v5993_v35 = vld [vmem:[%s6989_s18 + $0x28] sm:$0xff] }
 0x4d2   : > { %3972 = vrot.lane.b32.xlu0 %v8551_v57, %s6531_s2 }
 0x4d3   : > { %4102 = vst [vmem:[%s8168_s1 + $0x4] sm:$0xf] %v4070_v56 }
 0x4d4   : > { %v3945_v39 = vpop.permute.xlu1 %3944 }
 0x4d5   : > { %v3493_v47 = vpop.f32.mrf.mxu2  ;;  %v4007_v11 = vmul.f32 %v5984_v60, %v3945_v39  ;;  %v3317_v50 = vpop.f32.mrf.mxu0  ;;  %v5989_v39 = vld [vmem:[%s6989_s18 + $0x18] sm:$0xff] }
 0x4d6   : > { %v3494_v12 = vadd.f32 %v3493_v47, %v3405_v18  ;;  %v3582_v16 = vpop.f32.mrf.mxu3  ;;  %v3406_v62 = vpop.f32.mrf.mxu1  ;;  %v3913_v47 = vmul.f32 %v5989_v39, %v8371_v38 }
 0x4d7   : > { %v4039_v17 = vadd.f32 %v4007_v11, %v3911_v30  ;;  %v3407_v40 = vadd.f32 %v3406_v62, %v3317_v50 }
 0x4d8   : > { %v8559_v51 = vadd.f32 %v3582_v16, %v3494_v12 }
 0x4d9   : > { %v4071_v13 = vpack.c.bf16 %v4039_v17, %v4039_v17 }
 0x4da   : > { %3974 = vrot.lane.b32.xlu1 %v8559_v51, %s6531_s2 }
 0x4db   : > { %4103 = vst [vmem:[%s8168_s1 + $0xc] sm:$0xf] %v4071_v13 }
 0x4dc   : > { %v3947_v55 = vpop.permute.xlu0 %3946 }
 0x4dd   : > { %v4008_v54 = vmul.f32 %v5986_v63, %v3947_v55  ;;  %v3495_v33 = vpop.f32.mrf.mxu2  ;;  %v3320_v2 = vpop.f32.mrf.mxu0  ;;  %v5991_v55 = vld [vmem:[%s6989_s18 + $0x20] sm:$0xff] }
 0x4de   : > { %v3496_v32 = vadd.f32 %v3495_v33, %v3407_v40  ;;  %v3584_v1 = vpop.f32.mrf.mxu3  ;;  %v3409_v8 = vpop.f32.mrf.mxu1  ;;  %v3914_v46 = vmul.f32 %v5991_v55, %v8385_v48  ;;  %v5995_v55 = vld [vmem:[%s6989_s18 + $0x38] sm:$0xff] }
 0x4df   : > { %v4040_v25 = vadd.f32 %v4008_v54, %v3912_v0  ;;  %v3410_v5 = vadd.f32 %v3409_v8, %v3320_v2  ;;  %v5992_v0 = vld [vmem:[%s6995_s24 + $0x20] sm:$0xff] }
 0x4e0   : > { %v8567_v27 = vadd.f32 %v3584_v1, %v3496_v32 }
 0x4e1   : > { %v4072_v42 = vpack.c.bf16 %v4040_v25, %v4040_v25 }
 0x4e2   : > { %3976 = vrot.lane.b32.xlu0 %v8567_v27, %s6531_s2 }
 0x4e3   : > { %4104 = vst [vmem:[%s8168_s1 + $0x14] sm:$0xf] %v4072_v42 }
 0x4e4   : > { %v3955_v37 = vpop.permute.xlu2 %3954  ;;  %v3949_v6 = vpop.permute.xlu1 %3948 }
 0x4e5   : > { %v4012_v56 = vmul.f32 %v5988_v61, %v3955_v37  ;;  %v3498_v18 = vpop.f32.mrf.mxu2  ;;  %v4009_v30 = vmul.f32 %v5990_v23, %v3949_v6  ;;  %v3322_v12 = vpop.f32.mrf.mxu0  ;;  %v5994_v6 = vld [vmem:[%s6995_s24 + $0x28] sm:$0xff] }
 0x4e6   : > { %v3499_v60 = vadd.f32 %v3498_v18, %v3410_v5  ;;  %v3587_v11 = vpop.f32.mrf.mxu3  ;;  %v3411_v50 = vpop.f32.mrf.mxu1 }
 0x4e7   : > { %v4044_v16 = vadd.f32 %v4012_v56, %v3916_v34  ;;  %v4041_v62 = vadd.f32 %v4009_v30, %v3913_v47  ;;  %v3412_v38 = vadd.f32 %v3411_v50, %v3322_v12  ;;  %v3915_v34 = vmul.f32 %v5993_v35, %v8393_v29  ;;  %v5998_v35 = vld [vmem:[%s6995_s24 + $0x40] sm:$0xff] }
 0x4e8   : > { %v8578_v4 = vadd.f32 %v3587_v11, %v3499_v60 }
 0x4e9   : > { %v4076_v17 = vpack.c.bf16 %v4044_v16, %v4044_v16  ;;  %v4073_v13 = vpack.c.bf16 %v4041_v62, %v4041_v62 }
 0x4ea   : > { %3978 = vrot.lane.b32.xlu1 %v8578_v4, %s6531_s2 }
 0x4eb   : > { %4108 = vst [vmem:[%s8168_s1 + $0x34] sm:$0xf] %v4076_v17 }
 0x4ec   : > { %4105 = vst [vmem:[%s8168_s1 + $0x1c] sm:$0xf] %v4073_v13  ;;  %v3951_v40 = vpop.permute.xlu0 %3950 }
 0x4ed   : > { %v4010_v63 = vmul.f32 %v5992_v0, %v3951_v40  ;;  %v3500_v54 = vpop.f32.mrf.mxu2  ;;  %v3325_v1 = vpop.f32.mrf.mxu0  ;;  %v5996_v0 = vld [vmem:[%s6995_s24 + $0x38] sm:$0xff] }
 0x4ee   : > { %v3501_v33 = vadd.f32 %v3500_v54, %v3412_v38  ;;  %v3589_v32 = vpop.f32.mrf.mxu3  ;;  %v3414_v25 = vpop.f32.mrf.mxu1 }
 0x4ef   : > { %v4042_v2 = vadd.f32 %v4010_v63, %v3914_v46  ;;  %v3415_v5 = vadd.f32 %v3414_v25, %v3325_v1  ;;  %v3917_v46 = vmul.f32 %v5995_v55, %v8421_v24 }
 0x4f0   : > { %v8587_v8 = vadd.f32 %v3589_v32, %v3501_v33 }
 0x4f1   : > { %v4074_v42 = vpack.c.bf16 %v4042_v2, %v4042_v2 }
 0x4f2   : > { %3980 = vrot.lane.b32.xlu0 %v8587_v8, %s6531_s2 }
 0x4f3   : > { %4106 = vst [vmem:[%s8168_s1 + $0x24] sm:$0xf] %v4074_v42 }
 0x4f4   : > { %v3953_v48 = vpop.permute.xlu1 %3952 }
 0x4f5   : > { %v3503_v37 = vpop.f32.mrf.mxu2  ;;  %v4011_v61 = vmul.f32 %v5994_v6, %v3953_v48  ;;  %v3327_v39 = vpop.f32.mrf.mxu0 }
 0x4f6   : > { %v3504_v56 = vadd.f32 %v3503_v37, %v3415_v5  ;;  %v3592_v18 = vpop.f32.mrf.mxu3  ;;  %v3416_v47 = vpop.f32.mrf.mxu1  ;;  %v5997_v37 = vld [vmem:[%s6989_s18 + $0x40] sm:$0xff] }
 0x4f7   : > { %v4043_v23 = vadd.f32 %v4011_v61, %v3915_v34  ;;  %v3417_v11 = vadd.f32 %v3416_v47, %v3327_v39  ;;  %v3918_v24 = vmul.f32 %v5997_v37, %v8441_v19 }
 0x4f8   : > { %v8595_v30 = vadd.f32 %v3592_v18, %v3504_v56 }
 0x4f9   : > { %v4075_v60 = vpack.c.bf16 %v4043_v23, %v4043_v23 }
 0x4fa   : > { %3982 = vrot.lane.b32.xlu1 %v8595_v30, %s6531_s2 }
 0x4fb   : > { %4107 = vst [vmem:[%s8168_s1 + $0x2c] sm:$0xf] %v4075_v60 }
 0x4fd   : > { %v3505_v12 = vpop.f32.mrf.mxu2  ;;  %v3330_v50 = vpop.f32.mrf.mxu0 }
 0x4fe   : > { %v3506_v16 = vadd.f32 %v3505_v12, %v3417_v11  ;;  %v3594_v29 = vpop.f32.mrf.mxu3  ;;  %v3419_v62 = vpop.f32.mrf.mxu1 }
 0x4ff   : > { %v3420_v13 = vadd.f32 %v3419_v62, %v3330_v50  ;;  %v6000_v50 = vld [vmem:[%s6995_s24 + $0x48] sm:$0xff] }
 0x500   : > { %v8600_v17 = vadd.f32 %v3594_v29, %v3506_v16  ;;  %v5999_v16 = vld [vmem:[%s6989_s18 + $0x48] sm:$0xff] }
 0x501   : > { %v3919_v29 = vmul.f32 %v5999_v16, %v8455_v49 }
 0x502   : > { %3984 = vrot.lane.b32.xlu0 %v8600_v17, %s6531_s2 }
 0x504   : > { %v3957_v38 = vpop.permute.xlu0 %3956 }
 0x505   : > { %v3508_v40 = vpop.f32.mrf.mxu2  ;;  %v4013_v63 = vmul.f32 %v5996_v0, %v3957_v38  ;;  %v3332_v32 = vpop.f32.mrf.mxu0 }
 0x506   : > { %v3509_v54 = vadd.f32 %v3508_v40, %v3420_v13  ;;  %v3597_v33 = vpop.f32.mrf.mxu3  ;;  %v3421_v1 = vpop.f32.mrf.mxu1 }
 0x507   : > { %v4045_v2 = vadd.f32 %v4013_v63, %v3917_v46  ;;  %v3422_v5 = vadd.f32 %v3421_v1, %v3332_v32  ;;  %v6001_v32 = vld [vmem:[%s6989_s18 + $0x50] sm:$0xff] }
 0x508   : > { %v8607_v25 = vadd.f32 %v3597_v33, %v3509_v54  ;;  %v3920_v49 = vmul.f32 %v6001_v32, %v8475_v31  ;;  %v6002_v1 = vld [vmem:[%s6995_s24 + $0x50] sm:$0xff] }
 0x509   : > { %v4077_v42 = vpack.c.bf16 %v4045_v2, %v4045_v2 }
 0x50a   : > { %3986 = vrot.lane.b32.xlu1 %v8607_v25, %s6531_s2 }
 0x50b   : > { %4109 = vst [vmem:[%s8168_s1 + $0x3c] sm:$0xf] %v4077_v42 }
 0x50c   : > { %v3959_v48 = vpop.permute.xlu1 %3958 }
 0x50d   : > { %v4014_v34 = vmul.f32 %v5998_v35, %v3959_v48  ;;  %v3510_v6 = vpop.f32.mrf.mxu2  ;;  %v3335_v18 = vpop.f32.mrf.mxu0 }
 0x50e   : > { %v3511_v61 = vadd.f32 %v3510_v6, %v3422_v5  ;;  %v3599_v56 = vpop.f32.mrf.mxu3  ;;  %v3424_v47 = vpop.f32.mrf.mxu1 }
 0x50f   : > { %v4046_v39 = vadd.f32 %v4014_v34, %v3918_v24  ;;  %v3425_v11 = vadd.f32 %v3424_v47, %v3335_v18  ;;  %v6003_v18 = vld [vmem:[%s6989_s18 + $0x58] sm:$0xff] }
 0x510   : > { %v8615_v23 = vadd.f32 %v3599_v56, %v3511_v61  ;;  %v6004_v47 = vld [vmem:[%s6995_s24 + $0x58] sm:$0xff] }
 0x511   : > { %v4078_v60 = vpack.c.bf16 %v4046_v39, %v4046_v39  ;;  %v3921_v39 = vmul.f32 %v6003_v18, %v8489_v59 }
 0x512   : > { %3988 = vrot.lane.b32.xlu0 %v8615_v23, %s6531_s2 }
 0x513   : > { %4110 = vst [vmem:[%s8168_s1 + $0x44] sm:$0xf] %v4078_v60 }
 0x514   : > { %v3961_v19 = vpop.permute.xlu0 %3960 }
 0x515   : > { %v3513_v12 = vpop.f32.mrf.mxu2  ;;  %v4015_v62 = vmul.f32 %v6000_v50, %v3961_v19  ;;  %v3337_v40 = vpop.f32.mrf.mxu0 }
 0x516   : > { %v3514_v13 = vadd.f32 %v3513_v12, %v3425_v11  ;;  %v3602_v38 = vpop.f32.mrf.mxu3  ;;  %v3426_v55 = vpop.f32.mrf.mxu1 }
 0x517   : > { %v4047_v46 = vadd.f32 %v4015_v62, %v3919_v29  ;;  %v3427_v54 = vadd.f32 %v3426_v55, %v3337_v40  ;;  %v6005_v40 = vld [vmem:[%s6989_s18 + $0x60] sm:$0xff] }
 0x518   : > { %v8623_v0 = vadd.f32 %v3602_v38, %v3514_v13  ;;  %v3922_v59 = vmul.f32 %v6005_v40, %v8509_v43  ;;  %v6006_v55 = vld [vmem:[%s6995_s24 + $0x60] sm:$0xff] }
 0x519   : > { %v4079_v63 = vpack.c.bf16 %v4047_v46, %v4047_v46 }
 0x51a   : > { %3990 = vrot.lane.b32.xlu1 %v8623_v0, %s6531_s2 }
 0x51b   : > { %4111 = vst [vmem:[%s8168_s1 + $0x4c] sm:$0xf] %v4079_v63 }
 0x51c   : > { %v3963_v33 = vpop.permute.xlu1 %3962 }
 0x51d   : > { %v4016_v2 = vmul.f32 %v6002_v1, %v3963_v33  ;;  %v3515_v42 = vpop.f32.mrf.mxu2  ;;  %v3340_v37 = vpop.f32.mrf.mxu0 }
 0x51e   : > { %v3516_v5 = vadd.f32 %v3515_v42, %v3427_v54  ;;  %v3604_v48 = vpop.f32.mrf.mxu3  ;;  %v3429_v35 = vpop.f32.mrf.mxu1 }
 0x51f   : > { %v4048_v24 = vadd.f32 %v4016_v2, %v3920_v49  ;;  %v3430_v61 = vadd.f32 %v3429_v35, %v3340_v37  ;;  %v6007_v37 = vld [vmem:[%s6989_s18 + $0x68] sm:$0xff] }
 0x520   : > { %v8631_v34 = vadd.f32 %v3604_v48, %v3516_v5  ;;  %v6008_v35 = vld [vmem:[%s6995_s24 + $0x68] sm:$0xff] }
 0x521   : > { %v4080_v6 = vpack.c.bf16 %v4048_v24, %v4048_v24  ;;  %v3923_v24 = vmul.f32 %v6007_v37, %v8523_v52 }
 0x522   : > { %3992 = vrot.lane.b32.xlu0 %v8631_v34, %s6531_s2 }
 0x523   : > { %4112 = vst [vmem:[%s8168_s1 + $0x54] sm:$0xf] %v4080_v6 }
 0x524   : > { %v3965_v31 = vpop.permute.xlu0 %3964 }
 0x525   : > { %v3518_v56 = vpop.f32.mrf.mxu2  ;;  %v4017_v60 = vmul.f32 %v6004_v47, %v3965_v31  ;;  %v3342_v12 = vpop.f32.mrf.mxu0 }
 0x526   : > { %v3519_v11 = vadd.f32 %v3518_v56, %v3430_v61  ;;  %v3607_v19 = vpop.f32.mrf.mxu3  ;;  %v3431_v16 = vpop.f32.mrf.mxu1 }
 0x527   : > { %v4049_v29 = vadd.f32 %v4017_v60, %v3921_v39  ;;  %v3432_v13 = vadd.f32 %v3431_v16, %v3342_v12  ;;  %v6009_v12 = vld [vmem:[%s6989_s18 + $0x70] sm:$0xff] }
 0x528   : > { %v8639_v50 = vadd.f32 %v3607_v19, %v3519_v11  ;;  %v3924_v52 = vmul.f32 %v6009_v12, %v8543_v58  ;;  %v6010_v16 = vld [vmem:[%s6995_s24 + $0x70] sm:$0xff] }
 0x529   : > { %v4081_v62 = vpack.c.bf16 %v4049_v29, %v4049_v29 }
 0x52a   : > { %3994 = vrot.lane.b32.xlu1 %v8639_v50, %s6531_s2 }
 0x52b   : > { %4113 = vst [vmem:[%s8168_s1 + $0x5c] sm:$0xf] %v4081_v62 }
 0x52c   : > { %v3967_v38 = vpop.permute.xlu1 %3966 }
 0x52d   : > { %v4018_v46 = vmul.f32 %v6006_v55, %v3967_v38  ;;  %v3520_v63 = vpop.f32.mrf.mxu2  ;;  %v3345_v32 = vpop.f32.mrf.mxu0 }
 0x52e   : > { %v3521_v54 = vadd.f32 %v3520_v63, %v3432_v13  ;;  %v3609_v33 = vpop.f32.mrf.mxu3  ;;  %v3434_v1 = vpop.f32.mrf.mxu1 }
 0x52f   : > { %v4050_v49 = vadd.f32 %v4018_v46, %v3922_v59  ;;  %v3435_v5 = vadd.f32 %v3434_v1, %v3345_v32 }
 0x530   : > { %v8647_v2 = vadd.f32 %v3609_v33, %v3521_v54  ;;  %v6011_v33 = vld [vmem:[%s6989_s18 + $0x78] sm:$0xff] }
 0x531   : > { %v4082_v42 = vpack.c.bf16 %v4050_v49, %v4050_v49  ;;  %v3925_v32 = vmul.f32 %v6011_v33, %v8551_v57  ;;  %v6012_v49 = vld [vmem:[%s6995_s24 + $0x78] sm:$0xff] }
 0x532   : > { %3996 = vrot.lane.b32.xlu0 %v8647_v2, %s6531_s2 }
 0x533   : > { %4114 = vst [vmem:[%s8168_s1 + $0x64] sm:$0xf] %v4082_v42 }
 0x534   : > { %v3969_v43 = vpop.permute.xlu0 %3968 }
 0x535   : > { %v3523_v48 = vpop.f32.mrf.mxu2  ;;  %v4019_v6 = vmul.f32 %v6008_v35, %v3969_v43  ;;  %v3347_v56 = vpop.f32.mrf.mxu0 }
 0x536   : > { %v3524_v61 = vadd.f32 %v3523_v48, %v3435_v5  ;;  %v3612_v31 = vpop.f32.mrf.mxu3  ;;  %v3436_v18 = vpop.f32.mrf.mxu1 }
 0x537   : > { %v4051_v39 = vadd.f32 %v4019_v6, %v3923_v24  ;;  %v3437_v11 = vadd.f32 %v3436_v18, %v3347_v56  ;;  %v6014_v18 = vld [vmem:[%s6995_s24 + $0x80] sm:$0xff] }
 0x538   : > { %v8655_v47 = vadd.f32 %v3612_v31, %v3524_v61  ;;  %v6013_v31 = vld [vmem:[%s6989_s18 + $0x80] sm:$0xff] }
 0x539   : > { %v4083_v60 = vpack.c.bf16 %v4051_v39, %v4051_v39  ;;  %v3926_v56 = vmul.f32 %v6013_v31, %v8559_v51 }
 0x53a   : > { %3998 = vrot.lane.b32.xlu1 %v8655_v47, %s6531_s2 }
 0x53b   : > { %4115 = vst [vmem:[%s8168_s1 + $0x6c] sm:$0xf] %v4083_v60 }
 0x53c   : > { %v3971_v19 = vpop.permute.xlu1 %3970 }
 0x53d   : > { %v4020_v29 = vmul.f32 %v6010_v16, %v3971_v19  ;;  %v3525_v62 = vpop.f32.mrf.mxu2  ;;  %v3350_v59 = vpop.f32.mrf.mxu0 }
 0x53e   : > { %v3526_v13 = vadd.f32 %v3525_v62, %v3437_v11  ;;  %v3614_v38 = vpop.f32.mrf.mxu3  ;;  %v3439_v55 = vpop.f32.mrf.mxu1 }
 0x53f   : > { %v4052_v40 = vadd.f32 %v4020_v29, %v3924_v52  ;;  %v3440_v54 = vadd.f32 %v3439_v55, %v3350_v59 }
 0x540   : > { %v8663_v46 = vadd.f32 %v3614_v38, %v3526_v13 }
 0x541   : > { %v4084_v63 = vpack.c.bf16 %v4052_v40, %v4052_v40 }
 0x542   : > { %4000 = vrot.lane.b32.xlu0 %v8663_v46, %s6531_s2 }
 0x543   : > { %4116 = vst [vmem:[%s8168_s1 + $0x74] sm:$0xf] %v4084_v63 }
 0x544   : > { %v3973_v58 = vpop.permute.xlu0 %3972 }
 0x545   : > { %v4021_v1 = vmul.f32 %v6012_v49, %v3973_v58  ;;  %v3528_v42 = vpop.f32.mrf.mxu2  ;;  %v3352_v24 = vpop.f32.mrf.mxu0 }
 0x546   : > { %v3529_v5 = vadd.f32 %v3528_v42, %v3440_v54  ;;  %v3617_v43 = vpop.f32.mrf.mxu3  ;;  %v3441_v35 = vpop.f32.mrf.mxu1 }
 0x547   : > { %v4053_v48 = vadd.f32 %v4021_v1, %v3925_v32  ;;  %v3442_v6 = vadd.f32 %v3441_v35, %v3352_v24 }
 0x548   : > { %v8675_v37 = vadd.f32 %v3617_v43, %v3529_v5 }
 0x549   : > { %v4085_v57 = vpack.c.bf16 %v4053_v48, %v4053_v48 }
 0x54a   : > { %4002 = vrot.lane.b32.xlu1 %v8675_v37, %s6531_s2 }
 0x54b   : > { %4117 = vst [vmem:[%s8168_s1 + $0x7c] sm:$0xf] %v4085_v57 }
 0x54c   : > { %v3975_v61 = vpop.permute.xlu1 %3974 }
 0x54d   : > { %v4022_v39 = vmul.f32 %v6014_v18, %v3975_v61  ;;  %v3530_v60 = vpop.f32.mrf.mxu2 }
 0x54e   : > { %v3531_v11 = vadd.f32 %v3530_v60, %v3442_v6 }
 0x54f   : > { %6266 = shalt.err (!%p6263_p2)
}
 0x550   : > { %s6532_s4 = smov 128   ;;  %s6533_s22 = smov 512   ;;  %v4054_v51 = vadd.f32 %v4022_v39, %v3926_v56  ;;  %v3619_v19 = vpop.f32.mrf.mxu3  ;;  %v6015_v29 = vld [vmem:[%s6989_s18 + $0x88] sm:$0xff] }
 0x551   : > { %s6534_s29 = smov 8   ;;  %s5329_s15 = sshll.u32 %s8681_s19, 2  ;;  %v8706_v12 = vadd.f32 %v3619_v19, %v3531_v11  ;;  %v3927_v62 = vmul.f32 %v6015_v29, %v8567_v27  ;;  %v6016_v13 = vld [vmem:[%s6995_s24 + $0x88] sm:$0xff] }
 0x552   : > { %5644 = dma.vmem_to_hbm [thread:$0]  (%p6920_p8), %s4185_s11, 2048, %s4187_s26, %s4140_s17, %s6532_s4, %s6533_s22, %s6534_s29   ;;  %v4086_v52 = vpack.c.bf16 %v4054_v51, %v4054_v51 }
 0x553   : > { %s9343_s9 = sld [smem:[#allocation127_spill]]  ;;  %4004 = vrot.lane.b32.xlu0 %v8706_v12, %s6531_s2  ;;  %s4205_s19 = sshll.u32 %s7803_s30, 4  ;;  %s4206_s19 = int_to_ptr.vmem [resolvable:$true] %s4205_s19 }
 0x554   : > { %4118 = vst [vmem:[%s8168_s1 + $0x84] sm:$0xf] %v4086_v52  ;;  %v3977_v16 = vpop.permute.xlu0 %3976  ;;  %p9344_p5 = scmp.ne.s32.totalorder %s9134_s3, 0 }
 0x555   : > { %v4023_v38 = vmul.f32 %v6016_v13, %v3977_v16 }
 0x557   : > { %v4055_v40 = vadd.f32 %v4023_v38, %v3927_v62 }
 0x559   : > { %s4204_s8 = scalar_lea.hbm %s9343_s9, %s5329_s15  ;;  %v4087_v59 = vpack.c.bf16 %v4055_v40, %v4055_v40  ;;  %s6287_s6 = scalar_lea.hbm %s9343_s9, 2048 }
 0x55a   : > { %s4207_s14 = sshll.u32 %s4204_s8, 4  ;;  %s4208_s14 = int_to_ptr.hbm [resolvable:$true] %s4207_s14 }
 0x55b   : > { %s6281_s11 = sshra.s32 %s4208_s14, 4  ;;  %s6282_s11 = int_to_ptr.hbm [resolvable:$true] %s6281_s11 }
 0x55c   : > { %s6283_s26 = scalar_lea.hbm %s6282_s11, 128  ;;  %p6288_p13 = scmp.lt.s32.totalorder %s6282_s11, %s9343_s9 }
 0x55d   : > { %p6284_p8 = scmp.ne.s32.totalorder %s6282_s11, %s6283_s26  ;;  %p6289_p12 = scmp.lt.s32.totalorder %s6287_s6, %s6283_s26 }
 0x55f   : > { %p6285_p11 = pnand %p6284_p8, %p9344_p5  ;;  %p6290_p0 = por %p6289_p12, %p6288_p13 }
 0x561   : > { %p6286_p10 = pneg %p6285_p11 }
 0x563   : > { %p6291_p6 = pnand %p6290_p0, %p6286_p10 }
 0x565   : > { %6294 = shalt.err (!%p6291_p6)
}
 0x566   : > { %s6535_s30 = smov 4   ;;  %4119 = vst [vmem:[%s8168_s1 + $0x8c] sm:$0xf] %v4087_v59  ;;  %v3979_v27 = vpop.permute.xlu1 %3978  ;;  %v6017_v55 = vld [vmem:[%s6989_s18 + $0x90] sm:$0xff]  ;;  %v3981_v49 = vpop.permute.xlu0 %3980  ;;  %v6019_v1 = vld [vmem:[%s6989_s18 + $0x98] sm:$0xff]  ;;  %v6021_v24 = vld [vmem:[%s6989_s18 + $0xa0] sm:$0xff] }
 0x567   : > { %5645 = dma.vmem_to_hbm [thread:$0]  (%p9344_p5), %s4206_s19, 2048, %s4208_s14, %s4140_s17, %s6531_s2, %s6532_s4, %s6535_s30   ;;  %v3928_v63 = vmul.f32 %v6017_v55, %v8578_v4  ;;  %v3929_v42 = vmul.f32 %v6019_v1, %v8587_v8  ;;  %v3930_v35 = vmul.f32 %v6021_v24, %v8595_v30 }
 0x568   : > { %v6018_v54 = vld [vmem:[%s6995_s24 + $0x90] sm:$0xff]  ;;  %v6020_v5 = vld [vmem:[%s6995_s24 + $0x98] sm:$0xff]  ;;  %v6022_v6 = vld [vmem:[%s6995_s24 + $0xa0] sm:$0xff]  ;;  %s5317_s21 = sshll.u32 %s9339_s10, 1  ;;  %s5319_s2 = sshll.u32 %s9340_s12, 9 }
 0x569   : > { %v4024_v58 = vmul.f32 %v6018_v54, %v3979_v27  ;;  %v4025_v43 = vmul.f32 %v6020_v5, %v3981_v49  ;;  %v6023_v18 = vld [vmem:[%s6989_s18 + $0xa8] sm:$0xff]  ;;  %v6025_v52 = vld [vmem:[%s6989_s18 + $0xb0] sm:$0xff]  ;;  %v6027_v59 = vld [vmem:[%s6989_s18 + $0xb8] sm:$0xff]  ;;  %s5531_s18 = sshll.u32 %s9338_s28, 7  ;;  %s9345_s20 = sld [smem:[#allocation125_spill]] }
 0x56a   : > { %v3931_v39 = vmul.f32 %v6023_v18, %v8600_v17  ;;  %v6024_v60 = vld [vmem:[%s6995_s24 + $0xa8] sm:$0xff]  ;;  %v3932_v16 = vmul.f32 %v6025_v52, %v8607_v25  ;;  %v6026_v29 = vld [vmem:[%s6995_s24 + $0xb0] sm:$0xff]  ;;  %v3933_v17 = vmul.f32 %v6027_v59, %v8615_v23  ;;  %v6028_v27 = vld [vmem:[%s6995_s24 + $0xb8] sm:$0xff]  ;;  %v3934_v25 = vmul.f32 %v8410_v15, %v8623_v0  ;;  %s4157_s24 = sadd.s32 %s5531_s18, %s5317_s21  ;;  %s4162_s12 = sshll.u32 %s8168_s1, 4  ;;  %s4163_s12 = int_to_ptr.vmem [resolvable:$true] %s4162_s12 }
 0x56b   : > { %v4056_v33 = vadd.f32 %v4024_v58, %v3928_v63  ;;  %v4057_v48 = vadd.f32 %v4025_v43, %v3929_v42  ;;  %v3935_v23 = vmul.f32 %v8432_v7, %v8631_v34  ;;  %v3936_v15 = vmul.f32 %v8444_v44, %v8639_v50  ;;  %s4159_s17 = sadd.s32 %s5319_s2, %s4157_s24  ;;  %s4135_s19 = scalar_lea.sflag [#allocation4], %s7783_s13 }
 0x56c   : > { %v3937_v7 = vmul.f32 %v8466_v14, %v8647_v2  ;;  %v3939_v14 = vmul.f32 %v8500_v20, %v8663_v46  ;;  %s5320_s15 = sshll.u32 %s4159_s17, 2 }
 0x56d   : > { %v4088_v32 = vpack.c.bf16 %v4056_v33, %v4056_v33  ;;  %v4089_v57 = vpack.c.bf16 %v4057_v48, %v4057_v48 }
 0x56e   : > { %v3983_v4 = vpop.permute.xlu1 %3982 }
 0x56f   : > { %4120 = vst [vmem:[%s8168_s1 + $0x94] sm:$0xf] %v4088_v32  ;;  %v4026_v61 = vmul.f32 %v6022_v6, %v3983_v4  ;;  %s9346_s8 = smov %s9345_s20  ;;  %s4161_s23 = scalar_lea.hbm %s9345_s20, %s5320_s15 }
 0x570   : > { %4121 = vst [vmem:[%s8168_s1 + $0x9c] sm:$0xf] %v4089_v57  ;;  %s4164_s14 = sshll.u32 %s4161_s23, 4  ;;  %s6315_s6 = scalar_lea.hbm %s9346_s8, 4096  ;;  %s4165_s14 = int_to_ptr.hbm [resolvable:$true] %s4164_s14 }
 0x571   : > { %v4058_v31 = vadd.f32 %v4026_v61, %v3930_v35  ;;  %s6309_s11 = sshra.s32 %s4165_s14, 4  ;;  %s6310_s11 = int_to_ptr.hbm [resolvable:$true] %s6309_s11 }
 0x572   : > { %s6311_s26 = scalar_lea.hbm %s6310_s11, 256  ;;  %p6316_p2 = scmp.lt.s32.totalorder %s6310_s11, %s9346_s8 }
 0x573   : > { %v4090_v56 = vpack.c.bf16 %v4058_v31, %v4058_v31  ;;  %p6312_p3 = scmp.ne.s32.totalorder %s6310_s11, %s6311_s26  ;;  %p6317_p8 = scmp.lt.s32.totalorder %s6315_s6, %s6311_s26 }
 0x574   : > { %v3985_v8 = vpop.permute.xlu0 %3984 }
 0x575   : > { %4122 = vst [vmem:[%s8168_s1 + $0xa4] sm:$0xf] %v4090_v56  ;;  %v4027_v11 = vmul.f32 %v6024_v60, %v3985_v8  ;;  %v3941_v56 = vmul.f32 %v8534_v36, %v8706_v12  ;;  %p6313_p4 = pnand %p6312_p3, %p9344_p5  ;;  %p6318_p11 = por %p6317_p8, %p6316_p2 }
 0x577   : > { %v4059_v51 = vadd.f32 %v4027_v11, %v3931_v39  ;;  %p6314_p7 = pneg %p6313_p4 }
 0x579   : > { %v4091_v19 = vpack.c.bf16 %v4059_v51, %v4059_v51  ;;  %p6319_p10 = pnand %p6318_p11, %p6314_p7 }
 0x57b   : > { %4123 = vst [vmem:[%s8168_s1 + $0xac] sm:$0xf] %v4091_v19 }
 0x57c   : > { %v3987_v30 = vpop.permute.xlu1 %3986 }
 0x57d   : > { %v4028_v62 = vmul.f32 %v6026_v29, %v3987_v30 }
 0x57f   : > { %v4060_v13 = vadd.f32 %v4028_v62, %v3932_v16 }
 0x581   : > { %v4092_v38 = vpack.c.bf16 %v4060_v13, %v4060_v13 }
 0x583   : > { %4124 = vst [vmem:[%s8168_s1 + $0xb4] sm:$0xf] %v4092_v38 }
 0x584   : > { %v3989_v40 = vpop.permute.xlu0 %3988 }
 0x585   : > { %v4029_v55 = vmul.f32 %v6028_v27, %v3989_v40 }
 0x587   : > { %v4061_v63 = vadd.f32 %v4029_v55, %v3933_v17 }
 0x589   : > { %v4093_v54 = vpack.c.bf16 %v4061_v63, %v4061_v63 }
 0x58b   : > { %4125 = vst [vmem:[%s8168_s1 + $0xbc] sm:$0xf] %v4093_v54 }
 0x58c   : > { %v3991_v58 = vpop.permute.xlu1 %3990 }
 0x58d   : > { %v4030_v33 = vmul.f32 %v3991_v58, %v8415_v21 }
 0x58f   : > { %v4062_v32 = vadd.f32 %v4030_v33, %v3934_v25 }
 0x591   : > { %v4094_v49 = vpack.c.bf16 %v4062_v32, %v4062_v32 }
 0x593   : > { %4126 = vst [vmem:[%s8168_s1 + $0xc4] sm:$0xf] %v4094_v49 }
 0x594   : > { %v3993_v1 = vpop.permute.xlu0 %3992 }
 0x595   : > { %v4031_v42 = vmul.f32 %v3993_v1, %v8435_v9 }
 0x597   : > { %v4063_v5 = vadd.f32 %v4031_v42, %v3935_v23 }
 0x599   : > { %v4095_v43 = vpack.c.bf16 %v4063_v5, %v4063_v5 }
 0x59b   : > { %4127 = vst [vmem:[%s8168_s1 + $0xcc] sm:$0xf] %v4095_v43 }
 0x59c   : > { %v3995_v48 = vpop.permute.xlu1 %3994 }
 0x59d   : > { %v4032_v21 = vmul.f32 %v3995_v48, %v8449_v26  ;;  %v3938_v26 = vmul.f32 %v8478_v53, %v8655_v47 }
 0x59f   : > { %v4064_v0 = vadd.f32 %v4032_v21, %v3936_v15 }
 0x5a1   : > { %v4096_v57 = vpack.c.bf16 %v4064_v0, %v4064_v0 }
 0x5a3   : > { %4128 = vst [vmem:[%s8168_s1 + $0xd4] sm:$0xf] %v4096_v57 }
 0x5a4   : > { %v3997_v4 = vpop.permute.xlu0 %3996 }
 0x5a5   : > { %v4033_v9 = vmul.f32 %v3997_v4, %v8469_v10 }
 0x5a7   : > { %v4065_v34 = vadd.f32 %v4033_v9, %v3937_v7 }
 0x5a9   : > { %v4097_v24 = vpack.c.bf16 %v4065_v34, %v4065_v34 }
 0x5ab   : > { %4129 = vst [vmem:[%s8168_s1 + $0xdc] sm:$0xf] %v4097_v24 }
 0x5ac   : > { %v3999_v44 = vpop.permute.xlu1 %3998 }
 0x5ad   : > { %v4034_v50 = vmul.f32 %v3999_v44, %v8483_v45  ;;  %v3940_v45 = vmul.f32 %v8512_v28, %v8675_v37 }
 0x5af   : > { %v4066_v35 = vadd.f32 %v4034_v50, %v3938_v26 }
 0x5b1   : > { %v4098_v6 = vpack.c.bf16 %v4066_v35, %v4066_v35 }
 0x5b3   : > { %4130 = vst [vmem:[%s8168_s1 + $0xe4] sm:$0xf] %v4098_v6 }
 0x5b4   : > { %v4001_v61 = vpop.permute.xlu0 %4000 }
 0x5b5   : > { %v4035_v10 = vmul.f32 %v4001_v61, %v8503_v41 }
 0x5b7   : > { %v4067_v2 = vadd.f32 %v4035_v10, %v3939_v14 }
 0x5b9   : > { %v4099_v31 = vpack.c.bf16 %v4067_v2, %v4067_v2 }
 0x5bb   : > { %4131 = vst [vmem:[%s8168_s1 + $0xec] sm:$0xf] %v4099_v31 }
 0x5bc   : > { %v4003_v53 = vpop.permute.xlu1 %4002 }
 0x5bd   : > { %v4036_v47 = vmul.f32 %v4003_v53, %v8517_v3 }
 0x5bf   : > { %v4068_v20 = vadd.f32 %v4036_v47, %v3940_v45 }
 0x5c1   : > { %v4100_v41 = vpack.c.bf16 %v4068_v20, %v4068_v20 }
 0x5c3   : > { %4132 = vst [vmem:[%s8168_s1 + $0xf4] sm:$0xf] %v4100_v41 }
 0x5c5   : > { %v4005_v46 = vpop.permute.xlu0 %4004 }
 0x5c6   : > { %v4037_v28 = vmul.f32 %v4005_v46, %v8537_v22 }
 0x5c8   : > { %v4069_v3 = vadd.f32 %v4037_v28, %v3941_v56 }
 0x5ca   : > { %v4101_v37 = vpack.c.bf16 %v4069_v3, %v4069_v3 }
 0x5cc   : > { %4133 = vst [vmem:[%s8168_s1 + $0xfc] sm:$0xf] %v4101_v37 }
 0x5cd   : > { %6322 = shalt.err (!%p6319_p10)
}
 0x5ce   : > { %s6536_s13 = smov 256  }
 0x5cf   : > { %5643 = dma.vmem_to_hbm [thread:$0]  (%p9344_p5), %s4163_s12, 4096, %s4165_s14, %s4135_s19, %s6532_s4, %s6536_s13, %s6534_s29  }
 0x5d0 PF: > { %s9347_s1 = sld [smem:[#allocation28_spill]]  ;;  %p5682_p13 = scmp.ge.s32.totalorder %s6525_s7, 2 }
 0x5d2   : > { %p5672_p12 = pnand %p5682_p13, %p6903_p9 }
 0x5d4   : > { %p5673_p0 = pneg %p5672_p12 }
 0x5d6   : > { %s4222_s30 = sand.u32 1, %s9347_s1  }
 0x5d7   : > { %s4223_s21 = scalar_lea.sflag [#allocation4], %s4222_s30 }
 0x5d8   : > { %6428 = dma.done.wait (%p5673_p0), %s4223_s21, 4096  }
 0x5d9   : > { %6430 = vsyncadd (%p5673_p0), %s4223_s21, 4294963200  ;;  %s9348_s18 = sadd.s32 4294967294, %s6525_s7   ;;  %p5675_p6 = pnand %p5682_p13, %p6926_p1 }
 0x5da   : > { %s4232_s2 = sand.u32 1, %s9348_s18  }
 0x5db   : > { %p5676_p3 = pneg %p5675_p6  ;;  %s4233_s3 = scalar_lea.sflag [#allocation16], %s4232_s2 }
 0x5dd   : > { %6432 = dma.done.wait (%p5676_p3), %s4233_s3, 2048  }
 0x5de   : > { %6434 = vsyncadd (%p5676_p3), %s4233_s3, 4294965248 }
 0x5df   : > { %6436 = dma.done.wait (%p5673_p0), %s4233_s3, 2048  }
 0x5e0   : > { %6438 = vsyncadd (%p5673_p0), %s4233_s3, 4294965248  ;;  %s38_s7 = sadd.s32 1, %s6525_s7   ;;  %s9351_s30 = sld [smem:[#allocation26_spill]] }
 0x5e1   : > { %p8818_p5 = scmp.ge.s32.totalorder %s38_s7, 18   ;;  %s9352_s10 = sld [smem:[#allocation27_spill]] }
 0x5e2   : > { %s9353_s11 = sld [smem:[#allocation55_spill]] }
 0x5e3   : > { %s9354_s12 = sld [smem:[#allocation29_spill]] }
 0x5e4   : > { %s9355_s13 = sld [smem:[#allocation30_spill]] }
 0x5e5   : > { %s9356_s14 = sld [smem:[#allocation54_spill]] }
 0x5e6   : > { %s9357_s15 = sld [smem:[#allocation31_spill]] }
 0x5e7   : > { %s9358_s16 = sld [smem:[#allocation32_spill]] }
 0x5e8   : > { %s9359_s17 = sld [smem:[#allocation50_spill]] }
 0x5e9   : > { %s9360_s18 = sld [smem:[#allocation33_spill]] }
 0x5ea   : > { %s9361_s19 = sld [smem:[#allocation34_spill]] }
 0x5eb   : > { %s9362_s20 = sld [smem:[#allocation46_spill]] }
 0x5ec   : > { %s9363_s21 = sld [smem:[#allocation35_spill]] }
 0x5ed   : > { %s9364_s22 = sld [smem:[#allocation36_spill]] }
 0x5ee   : > { %s9365_s23 = sld [smem:[#allocation53_spill]] }
 0x5ef   : > { %s9366_s24 = sld [smem:[#allocation40_spill]] }
 0x5f0   : > { %s9367_s4 = sld [smem:[#allocation41_spill]] }
 0x5f1   : > { %s9368_s26 = sld [smem:[#allocation42_spill]] }
 0x5f2   : > { %s9369_s27 = sld [smem:[#allocation43_spill]]  ;;  %37 = sbr.rel (!%p8818_p5) target bundleno = 33 (0x21), region = 197 }
 0x5f3   : > { %s9370_s28 = sld [smem:[#allocation49_spill]] }
 0x5f4   : > { %s9371_s29 = sld [smem:[#allocation52_spill]] }
 0x5f6   : > { %s9373_s25 = smov %s9367_s4 }
 0x5f7   :  { %4249 = vsyncpa [#allocation3], 1 }
 0x5f8   :  { %4251 = vsyncpa [#allocation3 + $0x1], 1 }
 0x5f9   :  { %4252 = vsyncpa [#allocation6], 1 }
 0x5fa   :  { %4254 = vsyncpa [#allocation6 + $0x1], 1 }
 0x5fb   :  { %4255 = vsyncpa [#allocation9], 1 }
 0x5fc   :  { %4257 = vsyncpa [#allocation9 + $0x1], 1 }
 0x5fd   :  { %4258 = vsyncpa [#allocation12], 1 }
 0x5fe   :  { %4260 = vsyncpa [#allocation12 + $0x1], 1 }
 0x5ff   :  { %4261 = vsyncpa [#allocation4], 1 }
 0x600   :  { %4263 = vsyncpa [#allocation4 + $0x1], 1 }
 0x601   :  { %4264 = vsyncpa [#allocation16], 1 }
 0x602   :  { %4266 = vsyncpa [#allocation16 + $0x1], 1 }

</bundles_post_ra>
